<compile_context>
chip_gen: v7x
topology: tpu7x:2x2x1
jax: 0.10.0
libtpu: 0.0.40
codegen_flags: <defaults>
</compile_context>

<pallas_src>
import math

import jax
import jax.numpy as jnp
import numpy as np
from jax import lax
from jax.experimental import pallas as pl
from jax.experimental.pallas import tpu as pltpu

C_IN = 3    # cifar-10 input channels
C_MID = 3   # hidden channels of DefensiveModel2
C_OUT = 3   # output channels (= in_channels)
KH = KW = 3


def _cdiv(a, b):
    return -(-a // b)


def _round_up(x, m):
    return _cdiv(x, m) * m


def _conv_rows_acc(src_ref, w_ref, bias_rows, c_in, c_out, h, W):
    """Accumulate one output row (all c_out channels) of a 3x3 'same' conv.

    src_ref   : (c_in, Hp, Wp, Bt) VMEM ref, zero halo already present.
    w_ref     : (c_out*c_in*9,) SMEM ref, flattened OIHW, pre-scaled by 0.5.
    bias_rows : list of c_out hoisted (1, W, Bt) bias broadcasts (pre-scaled).
    Returns a list of c_out (1, W, Bt) f32 accumulators (== z/2 of the conv).
    """
    accs = list(bias_rows)
    for ci in range(c_in):
        for ky in range(KH):
            # One aligned, full-width row load per (ci, ky); reused by all taps.
            row = src_ref[ci, pl.ds(h + ky, 1), :, :]            # (1, Wp, Bt)
            for kx in range(KW):
                # Each shifted tap is extracted ONCE from the register-resident
                # row and reused for every output channel (no per-co unaligned
                # reloads).  Only one tap is live at a time -> low vreg pressure.
                tap = row[:, kx:kx + W, :]                        # (1, W, Bt)
                for co in range(c_out):
                    widx = ((co * c_in + ci) * KH + ky) * KW + kx
                    accs[co] = accs[co] + w_ref[widx] * tap
    return accs


def _magnet_kernel(x_ref, w1_ref, b1_ref, w2_ref, b2_ref, out_ref, hid_ref):
    """One batch tile (Bt images) per grid step, batch-minor layout.

    x_ref   : VMEM (C_IN,  H+2, W+2, Bt) f32  zero-padded input (halo included)
    w1_ref  : SMEM (C_MID*C_IN*9,)       f32  flattened OIHW, pre-scaled by 0.5
    b1_ref  : SMEM (C_MID,)              f32  pre-scaled by 0.5
    w2_ref  : SMEM (C_OUT*C_MID*9,)      f32  pre-scaled by 0.5
    b2_ref  : SMEM (C_OUT,)              f32  pre-scaled by 0.5
    out_ref : VMEM (C_OUT, H,   W,   Bt) f32
    hid_ref : VMEM (C_MID, H+2, W+2, Bt) f32  scratch: padded conv1 activations
    """
    Hp, Wp, Bt = x_ref.shape[1], x_ref.shape[2], x_ref.shape[3]
    H, W = Hp - 2, Wp - 2

    # ---- zero the halo of the hidden scratch (per grid step, so it stays
    #      correct when the parallel batch axis is sharded across TensorCores).
    # TODO(synk): the two 1-sublane-wide column stores per channel are masked
    #             vst.msk's on the (non-binding) vst slot; replacing them with a
    #             full-width conv1 store would need a sublane concat/roll and is
    #             not worth the lowering risk here.
    zrow = jnp.zeros((1, Wp, Bt), jnp.float32)
    zcol = jnp.zeros((H, 1, Bt), jnp.float32)
    for c in range(C_MID):
        hid_ref[c, pl.ds(0, 1), :, :] = zrow
        hid_ref[c, pl.ds(Hp - 1, 1), :, :] = zrow
        hid_ref[c, pl.ds(1, H), pl.ds(0, 1), :] = zcol
        hid_ref[c, pl.ds(1, H), pl.ds(Wp - 1, 1), :] = zcol

    # ---- bias broadcasts hoisted out of the row loops (built once per grid
    #      step; they already carry the folded 0.5 sigmoid pre-scale). ----
    bias1 = [jnp.full((1, W, Bt), b1_ref[co], jnp.float32) for co in range(C_MID)]
    bias2 = [jnp.full((1, W, Bt), b2_ref[co], jnp.float32) for co in range(C_OUT)]

    # ---- conv1 (3x3, pad=1) + sigmoid : x -> hid interior ----
    @pl.loop(0, H)
    def _conv1_row(h):
        accs = _conv_rows_acc(x_ref, w1_ref, bias1, C_IN, C_MID, h, W)
        for co in range(C_MID):
            # sigmoid(z) = 0.5*tanh(z/2) + 0.5 ; acc already equals z/2.
            hid_ref[co, pl.ds(h + 1, 1), pl.ds(1, W), :] = (
                0.5 * jnp.tanh(accs[co]) + 0.5)

    # ---- conv2 (3x3, pad=1) + sigmoid : hid -> out ----
    @pl.loop(0, H)
    def _conv2_row(h):
        accs = _conv_rows_acc(hid_ref, w2_ref, bias2, C_MID, C_OUT, h, W)
        for co in range(C_OUT):
            out_ref[co, pl.ds(h, 1), :, :] = 0.5 * jnp.tanh(accs[co]) + 0.5


def _padded_block_bytes(shape, itemsize=4):
    """VMEM bytes of one block, honoring (8, 128) padding of the last two dims."""
    *lead, sub, lane = shape
    n = itemsize * _round_up(sub, 8) * _round_up(lane, 128)
    for d in lead:
        n *= d
    return n


def _pick_batch_tile(B, batch_tile):
    """Batch tile in images (multiple of 128).

    Never pads a small batch past one 128-lane tile, and whenever there is more
    than one 128-lane tile of real work it guarantees >= 2 grid steps so the
    'parallel' batch axis can feed both TensorCores on v7x.
    """
    assert batch_tile % 128 == 0 and batch_tile >= 128
    n128 = _cdiv(B, 128)                       # 128-lane tiles of real work
    tiles = min(batch_tile // 128, n128)
    if n128 >= 2:
        tiles = min(tiles, _cdiv(n128, 2))     # ensure >= 2 grid steps
    return 128 * tiles


def magnet_detector_forward(x, w1, b1, w2, b2, *, batch_tile=256):
    """MagNet DefensiveModel2 forward (cifar-10 branch).

    x : (B, 3, H, W) f32, NCHW.  w1/w2 : (3, 3, 3, 3) OIHW.  b1/b2 : (3,).
    Returns (B, 3, H, W) f32.

    batch_tile: upper bound on images per grid step (multiple of 128).  The
    kernel is VALU-bound (~20K compute cycles per step vs ~0.35 us step
    overhead), so tiles beyond 256 buy <2%; the scoped-VMEM limit passed to the
    compiler is derived from the actual block footprint, so it stays consistent
    with whatever tile is chosen on v5e/v6e (128 MiB) and v7x (64 MiB).
    """
    B, C, H, W = x.shape
    assert C == C_IN, f"DefensiveModel2 expects {C_IN} input channels, got {C}"

    Bt = _pick_batch_tile(B, batch_tile)
    n_blocks = _cdiv(B, Bt)
    Bp = n_blocks * Bt
    Hp, Wp = H + 2, W + 2

    # NCHW -> batch-minor (C, H, W, B); zero-pad the conv halo (H,W += 2) and the
    # batch up to a whole number of tiles (padded images are sliced off below).
    # TODO(synk): callers that keep activations batch-minor across calls can skip
    #             this transpose (a full HBM pass outside the kernel).
    xt = jnp.transpose(x.astype(jnp.float32), (1, 2, 3, 0))
    xt = jnp.pad(xt, ((0, 0), (1, 1), (1, 1), (0, Bp - B)))

    # Fold the sigmoid's 0.5 pre-scale into the conv weights/biases so the kernel
    # computes 0.5*tanh(acc)+0.5 directly (acc == z/2).
    w1s = (0.5 * w1.astype(jnp.float32)).reshape(-1)
    b1s = 0.5 * b1.astype(jnp.float32)
    w2s = (0.5 * w2.astype(jnp.float32)).reshape(-1)
    b2s = 0.5 * b2.astype(jnp.float32)

    # Scoped-VMEM limit from the real footprint: double-buffered in/out blocks
    # plus the hidden scratch, with headroom (min 16 MiB, capped for v7x).
    vmem_bytes = (2 * _padded_block_bytes((C_IN, Hp, Wp, Bt))
                  + 2 * _padded_block_bytes((C_OUT, H, W, Bt))
                  + _padded_block_bytes((C_MID, Hp, Wp, Bt)))
    vmem_limit = min(max(int(vmem_bytes * 1.3) + (2 << 20), 16 << 20), 56 << 20)

    smem = pl.BlockSpec(memory_space=pltpu.MemorySpace.SMEM)
    grid_spec = pltpu.PrefetchScalarGridSpec(
        num_scalar_prefetch=0,
        grid=(n_blocks,),
        in_specs=[
            pl.BlockSpec((C_IN, Hp, Wp, Bt), lambda b: (0, 0, 0, b)),
            smem,   # w1 (flattened OIHW, pre-scaled)
            smem,   # b1 (pre-scaled)
            smem,   # w2 (flattened OIHW, pre-scaled)
            smem,   # b2 (pre-scaled)
        ],
        out_specs=pl.BlockSpec((C_OUT, H, W, Bt), lambda b: (0, 0, 0, b)),
        scratch_shapes=[pltpu.VMEM((C_MID, Hp, Wp, Bt), jnp.float32)],
    )

    out_t = pl.pallas_call(
        _magnet_kernel,
        out_shape=jax.ShapeDtypeStruct((C_OUT, H, W, Bp), jnp.float32),
        grid_spec=grid_spec,
        compiler_params=pltpu.CompilerParams(
            dimension_semantics=("parallel",),   # batch tiles across TensorCores
            vmem_limit_bytes=vmem_limit,
        ),
    )(xt, w1s, b1s, w2s, b2s)

    # (C, H, W, Bp) -> NCHW, drop batch padding.
    return jnp.transpose(out_t[:, :, :, :B], (3, 0, 1, 2))


def _ref_forward(x, w1, b1, w2, b2):
    """Plain-JAX reference of DefensiveModel2 forward (NCHW, OIHW, pad=1)."""
    dn = lax.conv_dimension_numbers(x.shape, w1.shape, ("NCHW", "OIHW", "NCHW"))
    h = lax.conv_general_dilated(x, w1, (1, 1), "SAME", dimension_numbers=dn)
    h = jax.nn.sigmoid(h + b1[None, :, None, None])
    o = lax.conv_general_dilated(h, w2, (1, 1), "SAME", dimension_numbers=dn)
    return jax.nn.sigmoid(o + b2[None, :, None, None])


if __name__ == "__main__":
    key = jax.random.PRNGKey(0)
    k_x, k_w1, k_b1, k_w2, k_b2 = jax.random.split(key, 5)

    B, H, W = 2, 16, 16
    x = jax.random.uniform(k_x, (B, C_IN, H, W), dtype=jnp.float32)

    # Deterministic PyTorch-style Conv2d init: U(-1/sqrt(fan_in), 1/sqrt(fan_in)).
    fan_in1 = C_IN * KH * KW
    bnd1 = 1.0 / math.sqrt(fan_in1)
    w1 = jax.random.uniform(k_w1, (C_MID, C_IN, KH, KW), jnp.float32, -bnd1, bnd1)
    b1 = jax.random.uniform(k_b1, (C_MID,), jnp.float32, -bnd1, bnd1)

    fan_in2 = C_MID * KH * KW
    bnd2 = 1.0 / math.sqrt(fan_in2)
    w2 = jax.random.uniform(k_w2, (C_OUT, C_MID, KH, KW), jnp.float32, -bnd2, bnd2)
    b2 = jax.random.uniform(k_b2, (C_OUT,), jnp.float32, -bnd2, bnd2)

    out = jax.jit(magnet_detector_forward)(x, w1, b1, w2, b2)
    out = jax.block_until_ready(out)

    ref = jax.block_until_ready(_ref_forward(x, w1, b1, w2, b2))
    np.testing.assert_allclose(np.asarray(out), np.asarray(ref), atol=1e-5, rtol=1e-5)

    print("KERNEL_OK")
</pallas_src>

<mosaic_0001>
module attributes {stable_mosaic.version = 11 : i64} {
  func.func @_magnet_kernel(%arg0: i32, %arg1: memref<3x18x18x128xf32, #tpu.memory_space<vmem>>, %arg2: memref<81xf32, #tpu.memory_space<smem>>, %arg3: memref<3xf32, #tpu.memory_space<smem>>, %arg4: memref<81xf32, #tpu.memory_space<smem>>, %arg5: memref<3xf32, #tpu.memory_space<smem>>, %arg6: memref<3x16x16x128xf32, #tpu.memory_space<vmem>>, %arg7: memref<3x18x18x128xf32, #tpu.memory_space<vmem>>) attributes {dimension_semantics = [#tpu.dimension_semantics<parallel>], iteration_bounds = array<i64: 1>, scalar_prefetch = 0 : i64, scratch_operands = 1 : i64, tpu.core_type = #tpu.core_type<tc>, window_params = [{transform_indices = @transform_0, window_bounds = array<i64: 3, 18, 18, 128>}, {transform_indices = @transform_1, window_bounds = array<i64: 81>}, {transform_indices = @transform_2, window_bounds = array<i64: 3>}, {transform_indices = @transform_3, window_bounds = array<i64: 81>}, {transform_indices = @transform_4, window_bounds = array<i64: 3>}, {transform_indices = @transform_5, window_bounds = array<i64: 3, 16, 16, 128>}]} {
    %cst = arith.constant 0.000000e+00 : f32
    %0 = vector.broadcast %cst : f32 to vector<1x18x128xf32>
    %cst_0 = arith.constant 0.000000e+00 : f32
    %1 = vector.broadcast %cst_0 : f32 to vector<16x1x128xf32>
    %c0 = arith.constant 0 : index
    %c0_1 = arith.constant 0 : index
    %c0_2 = arith.constant 0 : index
    %c0_3 = arith.constant 0 : index
    %2 = vector.load %arg7[%c0, %c0_1, %c0_2, %c0_3] : memref<3x18x18x128xf32, #tpu.memory_space<vmem>>, vector<1x1x18x128xf32>
    %3 = vector.shape_cast %2 : vector<1x1x18x128xf32> to vector<1x18x128xf32>
    %4 = vector.shape_cast %0 : vector<1x18x128xf32> to vector<1x1x18x128xf32>
    tpu.vector_store %arg7[%c0, %c0_1, %c0_2, %c0_3], %4 {strides = array<i32>} : memref<3x18x18x128xf32, #tpu.memory_space<vmem>>, vector<1x1x18x128xf32>,
    %c0_4 = arith.constant 0 : index
    %c17 = arith.constant 17 : index
    %c0_5 = arith.constant 0 : index
    %c0_6 = arith.constant 0 : index
    %5 = vector.load %arg7[%c0_4, %c17, %c0_5, %c0_6] : memref<3x18x18x128xf32, #tpu.memory_space<vmem>>, vector<1x1x18x128xf32>
    %6 = vector.shape_cast %5 : vector<1x1x18x128xf32> to vector<1x18x128xf32>
    %7 = vector.shape_cast %0 : vector<1x18x128xf32> to vector<1x1x18x128xf32>
    tpu.vector_store %arg7[%c0_4, %c17, %c0_5, %c0_6], %7 {strides = array<i32>} : memref<3x18x18x128xf32, #tpu.memory_space<vmem>>, vector<1x1x18x128xf32>,
    %c0_7 = arith.constant 0 : index
    %c1 = arith.constant 1 : index
    %c0_8 = arith.constant 0 : index
    %c0_9 = arith.constant 0 : index
    %8 = vector.load %arg7[%c0_7, %c1, %c0_8, %c0_9] : memref<3x18x18x128xf32, #tpu.memory_space<vmem>>, vector<1x16x1x128xf32>
    %9 = vector.shape_cast %8 : vector<1x16x1x128xf32> to vector<16x1x128xf32>
    %10 = vector.shape_cast %1 : vector<16x1x128xf32> to vector<1x16x1x128xf32>
    tpu.vector_store %arg7[%c0_7, %c1, %c0_8, %c0_9], %10 {strides = array<i32>} : memref<3x18x18x128xf32, #tpu.memory_space<vmem>>, vector<1x16x1x128xf32>,
    %c0_10 = arith.constant 0 : index
    %c1_11 = arith.constant 1 : index
    %c17_12 = arith.constant 17 : index
    %c0_13 = arith.constant 0 : index
    %11 = vector.load %arg7[%c0_10, %c1_11, %c17_12, %c0_13] : memref<3x18x18x128xf32, #tpu.memory_space<vmem>>, vector<1x16x1x128xf32>
    %12 = vector.shape_cast %11 : vector<1x16x1x128xf32> to vector<16x1x128xf32>
    %13 = vector.shape_cast %1 : vector<16x1x128xf32> to vector<1x16x1x128xf32>
    tpu.vector_store %arg7[%c0_10, %c1_11, %c17_12, %c0_13], %13 {strides = array<i32>} : memref<3x18x18x128xf32, #tpu.memory_space<vmem>>, vector<1x16x1x128xf32>,
    %c1_14 = arith.constant 1 : index
    %c0_15 = arith.constant 0 : index
    %c0_16 = arith.constant 0 : index
    %c0_17 = arith.constant 0 : index
    %14 = vector.load %arg7[%c1_14, %c0_15, %c0_16, %c0_17] : memref<3x18x18x128xf32, #tpu.memory_space<vmem>>, vector<1x1x18x128xf32>
    %15 = vector.shape_cast %14 : vector<1x1x18x128xf32> to vector<1x18x128xf32>
    %16 = vector.shape_cast %0 : vector<1x18x128xf32> to vector<1x1x18x128xf32>
    tpu.vector_store %arg7[%c1_14, %c0_15, %c0_16, %c0_17], %16 {strides = array<i32>} : memref<3x18x18x128xf32, #tpu.memory_space<vmem>>, vector<1x1x18x128xf32>,
    %c1_18 = arith.constant 1 : index
    %c17_19 = arith.constant 17 : index
    %c0_20 = arith.constant 0 : index
    %c0_21 = arith.constant 0 : index
    %17 = vector.load %arg7[%c1_18, %c17_19, %c0_20, %c0_21] : memref<3x18x18x128xf32, #tpu.memory_space<vmem>>, vector<1x1x18x128xf32>
    %18 = vector.shape_cast %17 : vector<1x1x18x128xf32> to vector<1x18x128xf32>
    %19 = vector.shape_cast %0 : vector<1x18x128xf32> to vector<1x1x18x128xf32>
    tpu.vector_store %arg7[%c1_18, %c17_19, %c0_20, %c0_21], %19 {strides = array<i32>} : memref<3x18x18x128xf32, #tpu.memory_space<vmem>>, vector<1x1x18x128xf32>,
    %c1_22 = arith.constant 1 : index
    %c1_23 = arith.constant 1 : index
    %c0_24 = arith.constant 0 : index
    %c0_25 = arith.constant 0 : index
    %20 = vector.load %arg7[%c1_22, %c1_23, %c0_24, %c0_25] : memref<3x18x18x128xf32, #tpu.memory_space<vmem>>, vector<1x16x1x128xf32>
    %21 = vector.shape_cast %20 : vector<1x16x1x128xf32> to vector<16x1x128xf32>
    %22 = vector.shape_cast %1 : vector<16x1x128xf32> to vector<1x16x1x128xf32>
    tpu.vector_store %arg7[%c1_22, %c1_23, %c0_24, %c0_25], %22 {strides = array<i32>} : memref<3x18x18x128xf32, #tpu.memory_space<vmem>>, vector<1x16x1x128xf32>,
    %c1_26 = arith.constant 1 : index
    %c1_27 = arith.constant 1 : index
    %c17_28 = arith.constant 17 : index
    %c0_29 = arith.constant 0 : index
    %23 = vector.load %arg7[%c1_26, %c1_27, %c17_28, %c0_29] : memref<3x18x18x128xf32, #tpu.memory_space<vmem>>, vector<1x16x1x128xf32>
    %24 = vector.shape_cast %23 : vector<1x16x1x128xf32> to vector<16x1x128xf32>
    %25 = vector.shape_cast %1 : vector<16x1x128xf32> to vector<1x16x1x128xf32>
    tpu.vector_store %arg7[%c1_26, %c1_27, %c17_28, %c0_29], %25 {strides = array<i32>} : memref<3x18x18x128xf32, #tpu.memory_space<vmem>>, vector<1x16x1x128xf32>,
    %c2 = arith.constant 2 : index
    %c0_30 = arith.constant 0 : index
    %c0_31 = arith.constant 0 : index
    %c0_32 = arith.constant 0 : index
    %26 = vector.load %arg7[%c2, %c0_30, %c0_31, %c0_32] : memref<3x18x18x128xf32, #tpu.memory_space<vmem>>, vector<1x1x18x128xf32>
    %27 = vector.shape_cast %26 : vector<1x1x18x128xf32> to vector<1x18x128xf32>
    %28 = vector.shape_cast %0 : vector<1x18x128xf32> to vector<1x1x18x128xf32>
    tpu.vector_store %arg7[%c2, %c0_30, %c0_31, %c0_32], %28 {strides = array<i32>} : memref<3x18x18x128xf32, #tpu.memory_space<vmem>>, vector<1x1x18x128xf32>,
    %c2_33 = arith.constant 2 : index
    %c17_34 = arith.constant 17 : index
    %c0_35 = arith.constant 0 : index
    %c0_36 = arith.constant 0 : index
    %29 = vector.load %arg7[%c2_33, %c17_34, %c0_35, %c0_36] : memref<3x18x18x128xf32, #tpu.memory_space<vmem>>, vector<1x1x18x128xf32>
    %30 = vector.shape_cast %29 : vector<1x1x18x128xf32> to vector<1x18x128xf32>
    %31 = vector.shape_cast %0 : vector<1x18x128xf32> to vector<1x1x18x128xf32>
    tpu.vector_store %arg7[%c2_33, %c17_34, %c0_35, %c0_36], %31 {strides = array<i32>} : memref<3x18x18x128xf32, #tpu.memory_space<vmem>>, vector<1x1x18x128xf32>,
    %c2_37 = arith.constant 2 : index
    %c1_38 = arith.constant 1 : index
    %c0_39 = arith.constant 0 : index
    %c0_40 = arith.constant 0 : index
    %32 = vector.load %arg7[%c2_37, %c1_38, %c0_39, %c0_40] : memref<3x18x18x128xf32, #tpu.memory_space<vmem>>, vector<1x16x1x128xf32>
    %33 = vector.shape_cast %32 : vector<1x16x1x128xf32> to vector<16x1x128xf32>
    %34 = vector.shape_cast %1 : vector<16x1x128xf32> to vector<1x16x1x128xf32>
    tpu.vector_store %arg7[%c2_37, %c1_38, %c0_39, %c0_40], %34 {strides = array<i32>} : memref<3x18x18x128xf32, #tpu.memory_space<vmem>>, vector<1x16x1x128xf32>,
    %c2_41 = arith.constant 2 : index
    %c1_42 = arith.constant 1 : index
    %c17_43 = arith.constant 17 : index
    %c0_44 = arith.constant 0 : index
    %35 = vector.load %arg7[%c2_41, %c1_42, %c17_43, %c0_44] : memref<3x18x18x128xf32, #tpu.memory_space<vmem>>, vector<1x16x1x128xf32>
    %36 = vector.shape_cast %35 : vector<1x16x1x128xf32> to vector<16x1x128xf32>
    %37 = vector.shape_cast %1 : vector<16x1x128xf32> to vector<1x16x1x128xf32>
    tpu.vector_store %arg7[%c2_41, %c1_42, %c17_43, %c0_44], %37 {strides = array<i32>} : memref<3x18x18x128xf32, #tpu.memory_space<vmem>>, vector<1x16x1x128xf32>,
    %c0_45 = arith.constant 0 : index
    %38 = memref.load %arg3[%c0_45] : memref<3xf32, #tpu.memory_space<smem>>
    %39 = vector.broadcast %38 : f32 to vector<1x16x128xf32>
    %c1_46 = arith.constant 1 : index
    %40 = memref.load %arg3[%c1_46] : memref<3xf32, #tpu.memory_space<smem>>
    %41 = vector.broadcast %40 : f32 to vector<1x16x128xf32>
    %c2_47 = arith.constant 2 : index
    %42 = memref.load %arg3[%c2_47] : memref<3xf32, #tpu.memory_space<smem>>
    %43 = vector.broadcast %42 : f32 to vector<1x16x128xf32>
    %c0_48 = arith.constant 0 : index
    %44 = memref.load %arg5[%c0_48] : memref<3xf32, #tpu.memory_space<smem>>
    %45 = vector.broadcast %44 : f32 to vector<1x16x128xf32>
    %c1_49 = arith.constant 1 : index
    %46 = memref.load %arg5[%c1_49] : memref<3xf32, #tpu.memory_space<smem>>
    %47 = vector.broadcast %46 : f32 to vector<1x16x128xf32>
    %c2_50 = arith.constant 2 : index
    %48 = memref.load %arg5[%c2_50] : memref<3xf32, #tpu.memory_space<smem>>
    %49 = vector.broadcast %48 : f32 to vector<1x16x128xf32>
    %c0_i32 = arith.constant 0 : i32
    %c16_i32 = arith.constant 16 : i32
    %50 = arith.addi %c0_i32, %c16_i32 : i32
    %c1_i32 = arith.constant 1 : i32
    scf.for %arg8 = %c0_i32 to %50 step %c1_i32  : i32 {
      %c1_i32_56 = arith.constant 1 : i32
      %52 = arith.muli %arg8, %c1_i32_56 : i32
      %c0_i32_57 = arith.constant 0 : i32
      %53 = arith.addi %c0_i32_57, %52 : i32
      %c0_i32_58 = arith.constant 0 : i32
      %54 = arith.addi %53, %c0_i32_58 : i32
      %c0_59 = arith.constant 0 : index
      %55 = arith.index_cast %54 : i32 to index
      %c0_60 = arith.constant 0 : index
      %c0_61 = arith.constant 0 : index
      %56 = vector.load %arg1[%c0_59, %55, %c0_60, %c0_61] : memref<3x18x18x128xf32, #tpu.memory_space<vmem>>, vector<1x1x18x128xf32>
      %57 = vector.shape_cast %56 : vector<1x1x18x128xf32> to vector<1x18x128xf32>
      %58 = vector.extract_strided_slice %57 {offsets = [0, 0, 0], sizes = [1, 16, 128], strides = [1, 1, 1]} : vector<1x18x128xf32> to vector<1x16x128xf32>
      %c0_62 = arith.constant 0 : index
      %59 = memref.load %arg2[%c0_62] : memref<81xf32, #tpu.memory_space<smem>>
      %60 = vector.broadcast %59 : f32 to vector<1x16x128xf32>
      %61 = arith.mulf %60, %58 : vector<1x16x128xf32>
      %62 = arith.addf %39, %61 : vector<1x16x128xf32>
      %c27 = arith.constant 27 : index
      %63 = memref.load %arg2[%c27] : memref<81xf32, #tpu.memory_space<smem>>
      %64 = vector.broadcast %63 : f32 to vector<1x16x128xf32>
      %65 = arith.mulf %64, %58 : vector<1x16x128xf32>
      %66 = arith.addf %41, %65 : vector<1x16x128xf32>
      %c54 = arith.constant 54 : index
      %67 = memref.load %arg2[%c54] : memref<81xf32, #tpu.memory_space<smem>>
      %68 = vector.broadcast %67 : f32 to vector<1x16x128xf32>
      %69 = arith.mulf %68, %58 : vector<1x16x128xf32>
      %70 = arith.addf %43, %69 : vector<1x16x128xf32>
      %71 = vector.extract_strided_slice %57 {offsets = [0, 1, 0], sizes = [1, 16, 128], strides = [1, 1, 1]} : vector<1x18x128xf32> to vector<1x16x128xf32>
      %c1_63 = arith.constant 1 : index
      %72 = memref.load %arg2[%c1_63] : memref<81xf32, #tpu.memory_space<smem>>
      %73 = vector.broadcast %72 : f32 to vector<1x16x128xf32>
      %74 = arith.mulf %73, %71 : vector<1x16x128xf32>
      %75 = arith.addf %62, %74 : vector<1x16x128xf32>
      %c28 = arith.constant 28 : index
      %76 = memref.load %arg2[%c28] : memref<81xf32, #tpu.memory_space<smem>>
      %77 = vector.broadcast %76 : f32 to vector<1x16x128xf32>
      %78 = arith.mulf %77, %71 : vector<1x16x128xf32>
      %79 = arith.addf %66, %78 : vector<1x16x128xf32>
      %c55 = arith.constant 55 : index
      %80 = memref.load %arg2[%c55] : memref<81xf32, #tpu.memory_space<smem>>
      %81 = vector.broadcast %80 : f32 to vector<1x16x128xf32>
      %82 = arith.mulf %81, %71 : vector<1x16x128xf32>
      %83 = arith.addf %70, %82 : vector<1x16x128xf32>
      %84 = vector.extract_strided_slice %57 {offsets = [0, 2, 0], sizes = [1, 16, 128], strides = [1, 1, 1]} : vector<1x18x128xf32> to vector<1x16x128xf32>
      %c2_64 = arith.constant 2 : index
      %85 = memref.load %arg2[%c2_64] : memref<81xf32, #tpu.memory_space<smem>>
      %86 = vector.broadcast %85 : f32 to vector<1x16x128xf32>
      %87 = arith.mulf %86, %84 : vector<1x16x128xf32>
      %88 = arith.addf %75, %87 : vector<1x16x128xf32>
      %c29 = arith.constant 29 : index
      %89 = memref.load %arg2[%c29] : memref<81xf32, #tpu.memory_space<smem>>
      %90 = vector.broadcast %89 : f32 to vector<1x16x128xf32>
      %91 = arith.mulf %90, %84 : vector<1x16x128xf32>
      %92 = arith.addf %79, %91 : vector<1x16x128xf32>
      %c56 = arith.constant 56 : index
      %93 = memref.load %arg2[%c56] : memref<81xf32, #tpu.memory_space<smem>>
      %94 = vector.broadcast %93 : f32 to vector<1x16x128xf32>
      %95 = arith.mulf %94, %84 : vector<1x16x128xf32>
      %96 = arith.addf %83, %95 : vector<1x16x128xf32>
      %c1_i32_65 = arith.constant 1 : i32
      %97 = arith.addi %53, %c1_i32_65 : i32
      %c0_66 = arith.constant 0 : index
      %98 = arith.index_cast %97 : i32 to index
      %c0_67 = arith.constant 0 : index
      %c0_68 = arith.constant 0 : index
      %99 = vector.load %arg1[%c0_66, %98, %c0_67, %c0_68] : memref<3x18x18x128xf32, #tpu.memory_space<vmem>>, vector<1x1x18x128xf32>
      %100 = vector.shape_cast %99 : vector<1x1x18x128xf32> to vector<1x18x128xf32>
      %101 = vector.extract_strided_slice %100 {offsets = [0, 0, 0], sizes = [1, 16, 128], strides = [1, 1, 1]} : vector<1x18x128xf32> to vector<1x16x128xf32>
      %c3 = arith.constant 3 : index
      %102 = memref.load %arg2[%c3] : memref<81xf32, #tpu.memory_space<smem>>
      %103 = vector.broadcast %102 : f32 to vector<1x16x128xf32>
      %104 = arith.mulf %103, %101 : vector<1x16x128xf32>
      %105 = arith.addf %88, %104 : vector<1x16x128xf32>
      %c30 = arith.constant 30 : index
      %106 = memref.load %arg2[%c30] : memref<81xf32, #tpu.memory_space<smem>>
      %107 = vector.broadcast %106 : f32 to vector<1x16x128xf32>
      %108 = arith.mulf %107, %101 : vector<1x16x128xf32>
      %109 = arith.addf %92, %108 : vector<1x16x128xf32>
      %c57 = arith.constant 57 : index
      %110 = memref.load %arg2[%c57] : memref<81xf32, #tpu.memory_space<smem>>
      %111 = vector.broadcast %110 : f32 to vector<1x16x128xf32>
      %112 = arith.mulf %111, %101 : vector<1x16x128xf32>
      %113 = arith.addf %96, %112 : vector<1x16x128xf32>
      %114 = vector.extract_strided_slice %100 {offsets = [0, 1, 0], sizes = [1, 16, 128], strides = [1, 1, 1]} : vector<1x18x128xf32> to vector<1x16x128xf32>
      %c4 = arith.constant 4 : index
      %115 = memref.load %arg2[%c4] : memref<81xf32, #tpu.memory_space<smem>>
      %116 = vector.broadcast %115 : f32 to vector<1x16x128xf32>
      %117 = arith.mulf %116, %114 : vector<1x16x128xf32>
      %118 = arith.addf %105, %117 : vector<1x16x128xf32>
      %c31 = arith.constant 31 : index
      %119 = memref.load %arg2[%c31] : memref<81xf32, #tpu.memory_space<smem>>
      %120 = vector.broadcast %119 : f32 to vector<1x16x128xf32>
      %121 = arith.mulf %120, %114 : vector<1x16x128xf32>
      %122 = arith.addf %109, %121 : vector<1x16x128xf32>
      %c58 = arith.constant 58 : index
      %123 = memref.load %arg2[%c58] : memref<81xf32, #tpu.memory_space<smem>>
      %124 = vector.broadcast %123 : f32 to vector<1x16x128xf32>
      %125 = arith.mulf %124, %114 : vector<1x16x128xf32>
      %126 = arith.addf %113, %125 : vector<1x16x128xf32>
      %127 = vector.extract_strided_slice %100 {offsets = [0, 2, 0], sizes = [1, 16, 128], strides = [1, 1, 1]} : vector<1x18x128xf32> to vector<1x16x128xf32>
      %c5 = arith.constant 5 : index
      %128 = memref.load %arg2[%c5] : memref<81xf32, #tpu.memory_space<smem>>
      %129 = vector.broadcast %128 : f32 to vector<1x16x128xf32>
      %130 = arith.mulf %129, %127 : vector<1x16x128xf32>
      %131 = arith.addf %118, %130 : vector<1x16x128xf32>
      %c32 = arith.constant 32 : index
      %132 = memref.load %arg2[%c32] : memref<81xf32, #tpu.memory_space<smem>>
      %133 = vector.broadcast %132 : f32 to vector<1x16x128xf32>
      %134 = arith.mulf %133, %127 : vector<1x16x128xf32>
      %135 = arith.addf %122, %134 : vector<1x16x128xf32>
      %c59 = arith.constant 59 : index
      %136 = memref.load %arg2[%c59] : memref<81xf32, #tpu.memory_space<smem>>
      %137 = vector.broadcast %136 : f32 to vector<1x16x128xf32>
      %138 = arith.mulf %137, %127 : vector<1x16x128xf32>
      %139 = arith.addf %126, %138 : vector<1x16x128xf32>
      %c2_i32 = arith.constant 2 : i32
      %140 = arith.addi %53, %c2_i32 : i32
      %c0_69 = arith.constant 0 : index
      %141 = arith.index_cast %140 : i32 to index
      %c0_70 = arith.constant 0 : index
      %c0_71 = arith.constant 0 : index
      %142 = vector.load %arg1[%c0_69, %141, %c0_70, %c0_71] : memref<3x18x18x128xf32, #tpu.memory_space<vmem>>, vector<1x1x18x128xf32>
      %143 = vector.shape_cast %142 : vector<1x1x18x128xf32> to vector<1x18x128xf32>
      %144 = vector.extract_strided_slice %143 {offsets = [0, 0, 0], sizes = [1, 16, 128], strides = [1, 1, 1]} : vector<1x18x128xf32> to vector<1x16x128xf32>
      %c6 = arith.constant 6 : index
      %145 = memref.load %arg2[%c6] : memref<81xf32, #tpu.memory_space<smem>>
      %146 = vector.broadcast %145 : f32 to vector<1x16x128xf32>
      %147 = arith.mulf %146, %144 : vector<1x16x128xf32>
      %148 = arith.addf %131, %147 : vector<1x16x128xf32>
      %c33 = arith.constant 33 : index
      %149 = memref.load %arg2[%c33] : memref<81xf32, #tpu.memory_space<smem>>
      %150 = vector.broadcast %149 : f32 to vector<1x16x128xf32>
      %151 = arith.mulf %150, %144 : vector<1x16x128xf32>
      %152 = arith.addf %135, %151 : vector<1x16x128xf32>
      %c60 = arith.constant 60 : index
      %153 = memref.load %arg2[%c60] : memref<81xf32, #tpu.memory_space<smem>>
      %154 = vector.broadcast %153 : f32 to vector<1x16x128xf32>
      %155 = arith.mulf %154, %144 : vector<1x16x128xf32>
      %156 = arith.addf %139, %155 : vector<1x16x128xf32>
      %157 = vector.extract_strided_slice %143 {offsets = [0, 1, 0], sizes = [1, 16, 128], strides = [1, 1, 1]} : vector<1x18x128xf32> to vector<1x16x128xf32>
      %c7 = arith.constant 7 : index
      %158 = memref.load %arg2[%c7] : memref<81xf32, #tpu.memory_space<smem>>
      %159 = vector.broadcast %158 : f32 to vector<1x16x128xf32>
      %160 = arith.mulf %159, %157 : vector<1x16x128xf32>
      %161 = arith.addf %148, %160 : vector<1x16x128xf32>
      %c34 = arith.constant 34 : index
      %162 = memref.load %arg2[%c34] : memref<81xf32, #tpu.memory_space<smem>>
      %163 = vector.broadcast %162 : f32 to vector<1x16x128xf32>
      %164 = arith.mulf %163, %157 : vector<1x16x128xf32>
      %165 = arith.addf %152, %164 : vector<1x16x128xf32>
      %c61 = arith.constant 61 : index
      %166 = memref.load %arg2[%c61] : memref<81xf32, #tpu.memory_space<smem>>
      %167 = vector.broadcast %166 : f32 to vector<1x16x128xf32>
      %168 = arith.mulf %167, %157 : vector<1x16x128xf32>
      %169 = arith.addf %156, %168 : vector<1x16x128xf32>
      %170 = vector.extract_strided_slice %143 {offsets = [0, 2, 0], sizes = [1, 16, 128], strides = [1, 1, 1]} : vector<1x18x128xf32> to vector<1x16x128xf32>
      %c8 = arith.constant 8 : index
      %171 = memref.load %arg2[%c8] : memref<81xf32, #tpu.memory_space<smem>>
      %172 = vector.broadcast %171 : f32 to vector<1x16x128xf32>
      %173 = arith.mulf %172, %170 : vector<1x16x128xf32>
      %174 = arith.addf %161, %173 : vector<1x16x128xf32>
      %c35 = arith.constant 35 : index
      %175 = memref.load %arg2[%c35] : memref<81xf32, #tpu.memory_space<smem>>
      %176 = vector.broadcast %175 : f32 to vector<1x16x128xf32>
      %177 = arith.mulf %176, %170 : vector<1x16x128xf32>
      %178 = arith.addf %165, %177 : vector<1x16x128xf32>
      %c62 = arith.constant 62 : index
      %179 = memref.load %arg2[%c62] : memref<81xf32, #tpu.memory_space<smem>>
      %180 = vector.broadcast %179 : f32 to vector<1x16x128xf32>
      %181 = arith.mulf %180, %170 : vector<1x16x128xf32>
      %182 = arith.addf %169, %181 : vector<1x16x128xf32>
      %c0_i32_72 = arith.constant 0 : i32
      %183 = arith.addi %53, %c0_i32_72 : i32
      %c1_73 = arith.constant 1 : index
      %184 = arith.index_cast %183 : i32 to index
      %c0_74 = arith.constant 0 : index
      %c0_75 = arith.constant 0 : index
      %185 = vector.load %arg1[%c1_73, %184, %c0_74, %c0_75] : memref<3x18x18x128xf32, #tpu.memory_space<vmem>>, vector<1x1x18x128xf32>
      %186 = vector.shape_cast %185 : vector<1x1x18x128xf32> to vector<1x18x128xf32>
      %187 = vector.extract_strided_slice %186 {offsets = [0, 0, 0], sizes = [1, 16, 128], strides = [1, 1, 1]} : vector<1x18x128xf32> to vector<1x16x128xf32>
      %c9 = arith.constant 9 : index
      %188 = memref.load %arg2[%c9] : memref<81xf32, #tpu.memory_space<smem>>
      %189 = vector.broadcast %188 : f32 to vector<1x16x128xf32>
      %190 = arith.mulf %189, %187 : vector<1x16x128xf32>
      %191 = arith.addf %174, %190 : vector<1x16x128xf32>
      %c36 = arith.constant 36 : index
      %192 = memref.load %arg2[%c36] : memref<81xf32, #tpu.memory_space<smem>>
      %193 = vector.broadcast %192 : f32 to vector<1x16x128xf32>
      %194 = arith.mulf %193, %187 : vector<1x16x128xf32>
      %195 = arith.addf %178, %194 : vector<1x16x128xf32>
      %c63 = arith.constant 63 : index
      %196 = memref.load %arg2[%c63] : memref<81xf32, #tpu.memory_space<smem>>
      %197 = vector.broadcast %196 : f32 to vector<1x16x128xf32>
      %198 = arith.mulf %197, %187 : vector<1x16x128xf32>
      %199 = arith.addf %182, %198 : vector<1x16x128xf32>
      %200 = vector.extract_strided_slice %186 {offsets = [0, 1, 0], sizes = [1, 16, 128], strides = [1, 1, 1]} : vector<1x18x128xf32> to vector<1x16x128xf32>
      %c10 = arith.constant 10 : index
      %201 = memref.load %arg2[%c10] : memref<81xf32, #tpu.memory_space<smem>>
      %202 = vector.broadcast %201 : f32 to vector<1x16x128xf32>
      %203 = arith.mulf %202, %200 : vector<1x16x128xf32>
      %204 = arith.addf %191, %203 : vector<1x16x128xf32>
      %c37 = arith.constant 37 : index
      %205 = memref.load %arg2[%c37] : memref<81xf32, #tpu.memory_space<smem>>
      %206 = vector.broadcast %205 : f32 to vector<1x16x128xf32>
      %207 = arith.mulf %206, %200 : vector<1x16x128xf32>
      %208 = arith.addf %195, %207 : vector<1x16x128xf32>
      %c64 = arith.constant 64 : index
      %209 = memref.load %arg2[%c64] : memref<81xf32, #tpu.memory_space<smem>>
      %210 = vector.broadcast %209 : f32 to vector<1x16x128xf32>
      %211 = arith.mulf %210, %200 : vector<1x16x128xf32>
      %212 = arith.addf %199, %211 : vector<1x16x128xf32>
      %213 = vector.extract_strided_slice %186 {offsets = [0, 2, 0], sizes = [1, 16, 128], strides = [1, 1, 1]} : vector<1x18x128xf32> to vector<1x16x128xf32>
      %c11 = arith.constant 11 : index
      %214 = memref.load %arg2[%c11] : memref<81xf32, #tpu.memory_space<smem>>
      %215 = vector.broadcast %214 : f32 to vector<1x16x128xf32>
      %216 = arith.mulf %215, %213 : vector<1x16x128xf32>
      %217 = arith.addf %204, %216 : vector<1x16x128xf32>
      %c38 = arith.constant 38 : index
      %218 = memref.load %arg2[%c38] : memref<81xf32, #tpu.memory_space<smem>>
      %219 = vector.broadcast %218 : f32 to vector<1x16x128xf32>
      %220 = arith.mulf %219, %213 : vector<1x16x128xf32>
      %221 = arith.addf %208, %220 : vector<1x16x128xf32>
      %c65 = arith.constant 65 : index
      %222 = memref.load %arg2[%c65] : memref<81xf32, #tpu.memory_space<smem>>
      %223 = vector.broadcast %222 : f32 to vector<1x16x128xf32>
      %224 = arith.mulf %223, %213 : vector<1x16x128xf32>
      %225 = arith.addf %212, %224 : vector<1x16x128xf32>
      %c1_i32_76 = arith.constant 1 : i32
      %226 = arith.addi %53, %c1_i32_76 : i32
      %c1_77 = arith.constant 1 : index
      %227 = arith.index_cast %226 : i32 to index
      %c0_78 = arith.constant 0 : index
      %c0_79 = arith.constant 0 : index
      %228 = vector.load %arg1[%c1_77, %227, %c0_78, %c0_79] : memref<3x18x18x128xf32, #tpu.memory_space<vmem>>, vector<1x1x18x128xf32>
      %229 = vector.shape_cast %228 : vector<1x1x18x128xf32> to vector<1x18x128xf32>
      %230 = vector.extract_strided_slice %229 {offsets = [0, 0, 0], sizes = [1, 16, 128], strides = [1, 1, 1]} : vector<1x18x128xf32> to vector<1x16x128xf32>
      %c12 = arith.constant 12 : index
      %231 = memref.load %arg2[%c12] : memref<81xf32, #tpu.memory_space<smem>>
      %232 = vector.broadcast %231 : f32 to vector<1x16x128xf32>
      %233 = arith.mulf %232, %230 : vector<1x16x128xf32>
      %234 = arith.addf %217, %233 : vector<1x16x128xf32>
      %c39 = arith.constant 39 : index
      %235 = memref.load %arg2[%c39] : memref<81xf32, #tpu.memory_space<smem>>
      %236 = vector.broadcast %235 : f32 to vector<1x16x128xf32>
      %237 = arith.mulf %236, %230 : vector<1x16x128xf32>
      %238 = arith.addf %221, %237 : vector<1x16x128xf32>
      %c66 = arith.constant 66 : index
      %239 = memref.load %arg2[%c66] : memref<81xf32, #tpu.memory_space<smem>>
      %240 = vector.broadcast %239 : f32 to vector<1x16x128xf32>
      %241 = arith.mulf %240, %230 : vector<1x16x128xf32>
      %242 = arith.addf %225, %241 : vector<1x16x128xf32>
      %243 = vector.extract_strided_slice %229 {offsets = [0, 1, 0], sizes = [1, 16, 128], strides = [1, 1, 1]} : vector<1x18x128xf32> to vector<1x16x128xf32>
      %c13 = arith.constant 13 : index
      %244 = memref.load %arg2[%c13] : memref<81xf32, #tpu.memory_space<smem>>
      %245 = vector.broadcast %244 : f32 to vector<1x16x128xf32>
      %246 = arith.mulf %245, %243 : vector<1x16x128xf32>
      %247 = arith.addf %234, %246 : vector<1x16x128xf32>
      %c40 = arith.constant 40 : index
      %248 = memref.load %arg2[%c40] : memref<81xf32, #tpu.memory_space<smem>>
      %249 = vector.broadcast %248 : f32 to vector<1x16x128xf32>
      %250 = arith.mulf %249, %243 : vector<1x16x128xf32>
      %251 = arith.addf %238, %250 : vector<1x16x128xf32>
      %c67 = arith.constant 67 : index
      %252 = memref.load %arg2[%c67] : memref<81xf32, #tpu.memory_space<smem>>
      %253 = vector.broadcast %252 : f32 to vector<1x16x128xf32>
      %254 = arith.mulf %253, %243 : vector<1x16x128xf32>
      %255 = arith.addf %242, %254 : vector<1x16x128xf32>
      %256 = vector.extract_strided_slice %229 {offsets = [0, 2, 0], sizes = [1, 16, 128], strides = [1, 1, 1]} : vector<1x18x128xf32> to vector<1x16x128xf32>
      %c14 = arith.constant 14 : index
      %257 = memref.load %arg2[%c14] : memref<81xf32, #tpu.memory_space<smem>>
      %258 = vector.broadcast %257 : f32 to vector<1x16x128xf32>
      %259 = arith.mulf %258, %256 : vector<1x16x128xf32>
      %260 = arith.addf %247, %259 : vector<1x16x128xf32>
      %c41 = arith.constant 41 : index
      %261 = memref.load %arg2[%c41] : memref<81xf32, #tpu.memory_space<smem>>
      %262 = vector.broadcast %261 : f32 to vector<1x16x128xf32>
      %263 = arith.mulf %262, %256 : vector<1x16x128xf32>
      %264 = arith.addf %251, %263 : vector<1x16x128xf32>
      %c68 = arith.constant 68 : index
      %265 = memref.load %arg2[%c68] : memref<81xf32, #tpu.memory_space<smem>>
      %266 = vector.broadcast %265 : f32 to vector<1x16x128xf32>
      %267 = arith.mulf %266, %256 : vector<1x16x128xf32>
      %268 = arith.addf %255, %267 : vector<1x16x128xf32>
      %c2_i32_80 = arith.constant 2 : i32
      %269 = arith.addi %53, %c2_i32_80 : i32
      %c1_81 = arith.constant 1 : index
      %270 = arith.index_cast %269 : i32 to index
      %c0_82 = arith.constant 0 : index
      %c0_83 = arith.constant 0 : index
      %271 = vector.load %arg1[%c1_81, %270, %c0_82, %c0_83] : memref<3x18x18x128xf32, #tpu.memory_space<vmem>>, vector<1x1x18x128xf32>
      %272 = vector.shape_cast %271 : vector<1x1x18x128xf32> to vector<1x18x128xf32>
      %273 = vector.extract_strided_slice %272 {offsets = [0, 0, 0], sizes = [1, 16, 128], strides = [1, 1, 1]} : vector<1x18x128xf32> to vector<1x16x128xf32>
      %c15 = arith.constant 15 : index
      %274 = memref.load %arg2[%c15] : memref<81xf32, #tpu.memory_space<smem>>
      %275 = vector.broadcast %274 : f32 to vector<1x16x128xf32>
      %276 = arith.mulf %275, %273 : vector<1x16x128xf32>
      %277 = arith.addf %260, %276 : vector<1x16x128xf32>
      %c42 = arith.constant 42 : index
      %278 = memref.load %arg2[%c42] : memref<81xf32, #tpu.memory_space<smem>>
      %279 = vector.broadcast %278 : f32 to vector<1x16x128xf32>
      %280 = arith.mulf %279, %273 : vector<1x16x128xf32>
      %281 = arith.addf %264, %280 : vector<1x16x128xf32>
      %c69 = arith.constant 69 : index
      %282 = memref.load %arg2[%c69] : memref<81xf32, #tpu.memory_space<smem>>
      %283 = vector.broadcast %282 : f32 to vector<1x16x128xf32>
      %284 = arith.mulf %283, %273 : vector<1x16x128xf32>
      %285 = arith.addf %268, %284 : vector<1x16x128xf32>
      %286 = vector.extract_strided_slice %272 {offsets = [0, 1, 0], sizes = [1, 16, 128], strides = [1, 1, 1]} : vector<1x18x128xf32> to vector<1x16x128xf32>
      %c16 = arith.constant 16 : index
      %287 = memref.load %arg2[%c16] : memref<81xf32, #tpu.memory_space<smem>>
      %288 = vector.broadcast %287 : f32 to vector<1x16x128xf32>
      %289 = arith.mulf %288, %286 : vector<1x16x128xf32>
      %290 = arith.addf %277, %289 : vector<1x16x128xf32>
      %c43 = arith.constant 43 : index
      %291 = memref.load %arg2[%c43] : memref<81xf32, #tpu.memory_space<smem>>
      %292 = vector.broadcast %291 : f32 to vector<1x16x128xf32>
      %293 = arith.mulf %292, %286 : vector<1x16x128xf32>
      %294 = arith.addf %281, %293 : vector<1x16x128xf32>
      %c70 = arith.constant 70 : index
      %295 = memref.load %arg2[%c70] : memref<81xf32, #tpu.memory_space<smem>>
      %296 = vector.broadcast %295 : f32 to vector<1x16x128xf32>
      %297 = arith.mulf %296, %286 : vector<1x16x128xf32>
      %298 = arith.addf %285, %297 : vector<1x16x128xf32>
      %299 = vector.extract_strided_slice %272 {offsets = [0, 2, 0], sizes = [1, 16, 128], strides = [1, 1, 1]} : vector<1x18x128xf32> to vector<1x16x128xf32>
      %c17_84 = arith.constant 17 : index
      %300 = memref.load %arg2[%c17_84] : memref<81xf32, #tpu.memory_space<smem>>
      %301 = vector.broadcast %300 : f32 to vector<1x16x128xf32>
      %302 = arith.mulf %301, %299 : vector<1x16x128xf32>
      %303 = arith.addf %290, %302 : vector<1x16x128xf32>
      %c44 = arith.constant 44 : index
      %304 = memref.load %arg2[%c44] : memref<81xf32, #tpu.memory_space<smem>>
      %305 = vector.broadcast %304 : f32 to vector<1x16x128xf32>
      %306 = arith.mulf %305, %299 : vector<1x16x128xf32>
      %307 = arith.addf %294, %306 : vector<1x16x128xf32>
      %c71 = arith.constant 71 : index
      %308 = memref.load %arg2[%c71] : memref<81xf32, #tpu.memory_space<smem>>
      %309 = vector.broadcast %308 : f32 to vector<1x16x128xf32>
      %310 = arith.mulf %309, %299 : vector<1x16x128xf32>
      %311 = arith.addf %298, %310 : vector<1x16x128xf32>
      %c0_i32_85 = arith.constant 0 : i32
      %312 = arith.addi %53, %c0_i32_85 : i32
      %c2_86 = arith.constant 2 : index
      %313 = arith.index_cast %312 : i32 to index
      %c0_87 = arith.constant 0 : index
      %c0_88 = arith.constant 0 : index
      %314 = vector.load %arg1[%c2_86, %313, %c0_87, %c0_88] : memref<3x18x18x128xf32, #tpu.memory_space<vmem>>, vector<1x1x18x128xf32>
      %315 = vector.shape_cast %314 : vector<1x1x18x128xf32> to vector<1x18x128xf32>
      %316 = vector.extract_strided_slice %315 {offsets = [0, 0, 0], sizes = [1, 16, 128], strides = [1, 1, 1]} : vector<1x18x128xf32> to vector<1x16x128xf32>
      %c18 = arith.constant 18 : index
      %317 = memref.load %arg2[%c18] : memref<81xf32, #tpu.memory_space<smem>>
      %318 = vector.broadcast %317 : f32 to vector<1x16x128xf32>
      %319 = arith.mulf %318, %316 : vector<1x16x128xf32>
      %320 = arith.addf %303, %319 : vector<1x16x128xf32>
      %c45 = arith.constant 45 : index
      %321 = memref.load %arg2[%c45] : memref<81xf32, #tpu.memory_space<smem>>
      %322 = vector.broadcast %321 : f32 to vector<1x16x128xf32>
      %323 = arith.mulf %322, %316 : vector<1x16x128xf32>
      %324 = arith.addf %307, %323 : vector<1x16x128xf32>
      %c72 = arith.constant 72 : index
      %325 = memref.load %arg2[%c72] : memref<81xf32, #tpu.memory_space<smem>>
      %326 = vector.broadcast %325 : f32 to vector<1x16x128xf32>
      %327 = arith.mulf %326, %316 : vector<1x16x128xf32>
      %328 = arith.addf %311, %327 : vector<1x16x128xf32>
      %329 = vector.extract_strided_slice %315 {offsets = [0, 1, 0], sizes = [1, 16, 128], strides = [1, 1, 1]} : vector<1x18x128xf32> to vector<1x16x128xf32>
      %c19 = arith.constant 19 : index
      %330 = memref.load %arg2[%c19] : memref<81xf32, #tpu.memory_space<smem>>
      %331 = vector.broadcast %330 : f32 to vector<1x16x128xf32>
      %332 = arith.mulf %331, %329 : vector<1x16x128xf32>
      %333 = arith.addf %320, %332 : vector<1x16x128xf32>
      %c46 = arith.constant 46 : index
      %334 = memref.load %arg2[%c46] : memref<81xf32, #tpu.memory_space<smem>>
      %335 = vector.broadcast %334 : f32 to vector<1x16x128xf32>
      %336 = arith.mulf %335, %329 : vector<1x16x128xf32>
      %337 = arith.addf %324, %336 : vector<1x16x128xf32>
      %c73 = arith.constant 73 : index
      %338 = memref.load %arg2[%c73] : memref<81xf32, #tpu.memory_space<smem>>
      %339 = vector.broadcast %338 : f32 to vector<1x16x128xf32>
      %340 = arith.mulf %339, %329 : vector<1x16x128xf32>
      %341 = arith.addf %328, %340 : vector<1x16x128xf32>
      %342 = vector.extract_strided_slice %315 {offsets = [0, 2, 0], sizes = [1, 16, 128], strides = [1, 1, 1]} : vector<1x18x128xf32> to vector<1x16x128xf32>
      %c20 = arith.constant 20 : index
      %343 = memref.load %arg2[%c20] : memref<81xf32, #tpu.memory_space<smem>>
      %344 = vector.broadcast %343 : f32 to vector<1x16x128xf32>
      %345 = arith.mulf %344, %342 : vector<1x16x128xf32>
      %346 = arith.addf %333, %345 : vector<1x16x128xf32>
      %c47 = arith.constant 47 : index
      %347 = memref.load %arg2[%c47] : memref<81xf32, #tpu.memory_space<smem>>
      %348 = vector.broadcast %347 : f32 to vector<1x16x128xf32>
      %349 = arith.mulf %348, %342 : vector<1x16x128xf32>
      %350 = arith.addf %337, %349 : vector<1x16x128xf32>
      %c74 = arith.constant 74 : index
      %351 = memref.load %arg2[%c74] : memref<81xf32, #tpu.memory_space<smem>>
      %352 = vector.broadcast %351 : f32 to vector<1x16x128xf32>
      %353 = arith.mulf %352, %342 : vector<1x16x128xf32>
      %354 = arith.addf %341, %353 : vector<1x16x128xf32>
      %c1_i32_89 = arith.constant 1 : i32
      %355 = arith.addi %53, %c1_i32_89 : i32
      %c2_90 = arith.constant 2 : index
      %356 = arith.index_cast %355 : i32 to index
      %c0_91 = arith.constant 0 : index
      %c0_92 = arith.constant 0 : index
      %357 = vector.load %arg1[%c2_90, %356, %c0_91, %c0_92] : memref<3x18x18x128xf32, #tpu.memory_space<vmem>>, vector<1x1x18x128xf32>
      %358 = vector.shape_cast %357 : vector<1x1x18x128xf32> to vector<1x18x128xf32>
      %359 = vector.extract_strided_slice %358 {offsets = [0, 0, 0], sizes = [1, 16, 128], strides = [1, 1, 1]} : vector<1x18x128xf32> to vector<1x16x128xf32>
      %c21 = arith.constant 21 : index
      %360 = memref.load %arg2[%c21] : memref<81xf32, #tpu.memory_space<smem>>
      %361 = vector.broadcast %360 : f32 to vector<1x16x128xf32>
      %362 = arith.mulf %361, %359 : vector<1x16x128xf32>
      %363 = arith.addf %346, %362 : vector<1x16x128xf32>
      %c48 = arith.constant 48 : index
      %364 = memref.load %arg2[%c48] : memref<81xf32, #tpu.memory_space<smem>>
      %365 = vector.broadcast %364 : f32 to vector<1x16x128xf32>
      %366 = arith.mulf %365, %359 : vector<1x16x128xf32>
      %367 = arith.addf %350, %366 : vector<1x16x128xf32>
      %c75 = arith.constant 75 : index
      %368 = memref.load %arg2[%c75] : memref<81xf32, #tpu.memory_space<smem>>
      %369 = vector.broadcast %368 : f32 to vector<1x16x128xf32>
      %370 = arith.mulf %369, %359 : vector<1x16x128xf32>
      %371 = arith.addf %354, %370 : vector<1x16x128xf32>
      %372 = vector.extract_strided_slice %358 {offsets = [0, 1, 0], sizes = [1, 16, 128], strides = [1, 1, 1]} : vector<1x18x128xf32> to vector<1x16x128xf32>
      %c22 = arith.constant 22 : index
      %373 = memref.load %arg2[%c22] : memref<81xf32, #tpu.memory_space<smem>>
      %374 = vector.broadcast %373 : f32 to vector<1x16x128xf32>
      %375 = arith.mulf %374, %372 : vector<1x16x128xf32>
      %376 = arith.addf %363, %375 : vector<1x16x128xf32>
      %c49 = arith.constant 49 : index
      %377 = memref.load %arg2[%c49] : memref<81xf32, #tpu.memory_space<smem>>
      %378 = vector.broadcast %377 : f32 to vector<1x16x128xf32>
      %379 = arith.mulf %378, %372 : vector<1x16x128xf32>
      %380 = arith.addf %367, %379 : vector<1x16x128xf32>
      %c76 = arith.constant 76 : index
      %381 = memref.load %arg2[%c76] : memref<81xf32, #tpu.memory_space<smem>>
      %382 = vector.broadcast %381 : f32 to vector<1x16x128xf32>
      %383 = arith.mulf %382, %372 : vector<1x16x128xf32>
      %384 = arith.addf %371, %383 : vector<1x16x128xf32>
      %385 = vector.extract_strided_slice %358 {offsets = [0, 2, 0], sizes = [1, 16, 128], strides = [1, 1, 1]} : vector<1x18x128xf32> to vector<1x16x128xf32>
      %c23 = arith.constant 23 : index
      %386 = memref.load %arg2[%c23] : memref<81xf32, #tpu.memory_space<smem>>
      %387 = vector.broadcast %386 : f32 to vector<1x16x128xf32>
      %388 = arith.mulf %387, %385 : vector<1x16x128xf32>
      %389 = arith.addf %376, %388 : vector<1x16x128xf32>
      %c50 = arith.constant 50 : index
      %390 = memref.load %arg2[%c50] : memref<81xf32, #tpu.memory_space<smem>>
      %391 = vector.broadcast %390 : f32 to vector<1x16x128xf32>
      %392 = arith.mulf %391, %385 : vector<1x16x128xf32>
      %393 = arith.addf %380, %392 : vector<1x16x128xf32>
      %c77 = arith.constant 77 : index
      %394 = memref.load %arg2[%c77] : memref<81xf32, #tpu.memory_space<smem>>
      %395 = vector.broadcast %394 : f32 to vector<1x16x128xf32>
      %396 = arith.mulf %395, %385 : vector<1x16x128xf32>
      %397 = arith.addf %384, %396 : vector<1x16x128xf32>
      %c2_i32_93 = arith.constant 2 : i32
      %398 = arith.addi %53, %c2_i32_93 : i32
      %c2_94 = arith.constant 2 : index
      %399 = arith.index_cast %398 : i32 to index
      %c0_95 = arith.constant 0 : index
      %c0_96 = arith.constant 0 : index
      %400 = vector.load %arg1[%c2_94, %399, %c0_95, %c0_96] : memref<3x18x18x128xf32, #tpu.memory_space<vmem>>, vector<1x1x18x128xf32>
      %401 = vector.shape_cast %400 : vector<1x1x18x128xf32> to vector<1x18x128xf32>
      %402 = vector.extract_strided_slice %401 {offsets = [0, 0, 0], sizes = [1, 16, 128], strides = [1, 1, 1]} : vector<1x18x128xf32> to vector<1x16x128xf32>
      %c24 = arith.constant 24 : index
      %403 = memref.load %arg2[%c24] : memref<81xf32, #tpu.memory_space<smem>>
      %404 = vector.broadcast %403 : f32 to vector<1x16x128xf32>
      %405 = arith.mulf %404, %402 : vector<1x16x128xf32>
      %406 = arith.addf %389, %405 : vector<1x16x128xf32>
      %c51 = arith.constant 51 : index
      %407 = memref.load %arg2[%c51] : memref<81xf32, #tpu.memory_space<smem>>
      %408 = vector.broadcast %407 : f32 to vector<1x16x128xf32>
      %409 = arith.mulf %408, %402 : vector<1x16x128xf32>
      %410 = arith.addf %393, %409 : vector<1x16x128xf32>
      %c78 = arith.constant 78 : index
      %411 = memref.load %arg2[%c78] : memref<81xf32, #tpu.memory_space<smem>>
      %412 = vector.broadcast %411 : f32 to vector<1x16x128xf32>
      %413 = arith.mulf %412, %402 : vector<1x16x128xf32>
      %414 = arith.addf %397, %413 : vector<1x16x128xf32>
      %415 = vector.extract_strided_slice %401 {offsets = [0, 1, 0], sizes = [1, 16, 128], strides = [1, 1, 1]} : vector<1x18x128xf32> to vector<1x16x128xf32>
      %c25 = arith.constant 25 : index
      %416 = memref.load %arg2[%c25] : memref<81xf32, #tpu.memory_space<smem>>
      %417 = vector.broadcast %416 : f32 to vector<1x16x128xf32>
      %418 = arith.mulf %417, %415 : vector<1x16x128xf32>
      %419 = arith.addf %406, %418 : vector<1x16x128xf32>
      %c52 = arith.constant 52 : index
      %420 = memref.load %arg2[%c52] : memref<81xf32, #tpu.memory_space<smem>>
      %421 = vector.broadcast %420 : f32 to vector<1x16x128xf32>
      %422 = arith.mulf %421, %415 : vector<1x16x128xf32>
      %423 = arith.addf %410, %422 : vector<1x16x128xf32>
      %c79 = arith.constant 79 : index
      %424 = memref.load %arg2[%c79] : memref<81xf32, #tpu.memory_space<smem>>
      %425 = vector.broadcast %424 : f32 to vector<1x16x128xf32>
      %426 = arith.mulf %425, %415 : vector<1x16x128xf32>
      %427 = arith.addf %414, %426 : vector<1x16x128xf32>
      %428 = vector.extract_strided_slice %401 {offsets = [0, 2, 0], sizes = [1, 16, 128], strides = [1, 1, 1]} : vector<1x18x128xf32> to vector<1x16x128xf32>
      %c26 = arith.constant 26 : index
      %429 = memref.load %arg2[%c26] : memref<81xf32, #tpu.memory_space<smem>>
      %430 = vector.broadcast %429 : f32 to vector<1x16x128xf32>
      %431 = arith.mulf %430, %428 : vector<1x16x128xf32>
      %432 = arith.addf %419, %431 : vector<1x16x128xf32>
      %c53 = arith.constant 53 : index
      %433 = memref.load %arg2[%c53] : memref<81xf32, #tpu.memory_space<smem>>
      %434 = vector.broadcast %433 : f32 to vector<1x16x128xf32>
      %435 = arith.mulf %434, %428 : vector<1x16x128xf32>
      %436 = arith.addf %423, %435 : vector<1x16x128xf32>
      %c80 = arith.constant 80 : index
      %437 = memref.load %arg2[%c80] : memref<81xf32, #tpu.memory_space<smem>>
      %438 = vector.broadcast %437 : f32 to vector<1x16x128xf32>
      %439 = arith.mulf %438, %428 : vector<1x16x128xf32>
      %440 = arith.addf %427, %439 : vector<1x16x128xf32>
      %441 = math.tanh %432 : vector<1x16x128xf32>
      %cst_97 = arith.constant 5.000000e-01 : f32
      %442 = vector.broadcast %cst_97 : f32 to vector<1x16x128xf32>
      %443 = arith.mulf %442, %441 : vector<1x16x128xf32>
      %cst_98 = arith.constant 5.000000e-01 : f32
      %444 = vector.broadcast %cst_98 : f32 to vector<1x16x128xf32>
      %445 = arith.addf %443, %444 : vector<1x16x128xf32>
      %c1_i32_99 = arith.constant 1 : i32
      %446 = arith.addi %53, %c1_i32_99 : i32
      %c0_100 = arith.constant 0 : index
      %447 = arith.index_cast %446 : i32 to index
      %c1_101 = arith.constant 1 : index
      %c0_102 = arith.constant 0 : index
      %448 = vector.load %arg7[%c0_100, %447, %c1_101, %c0_102] : memref<3x18x18x128xf32, #tpu.memory_space<vmem>>, vector<1x1x16x128xf32>
      %449 = vector.shape_cast %448 : vector<1x1x16x128xf32> to vector<1x16x128xf32>
      %450 = vector.shape_cast %445 : vector<1x16x128xf32> to vector<1x1x16x128xf32>
      tpu.vector_store %arg7[%c0_100, %447, %c1_101, %c0_102], %450 {strides = array<i32>} : memref<3x18x18x128xf32, #tpu.memory_space<vmem>>, vector<1x1x16x128xf32>,
      %451 = math.tanh %436 : vector<1x16x128xf32>
      %cst_103 = arith.constant 5.000000e-01 : f32
      %452 = vector.broadcast %cst_103 : f32 to vector<1x16x128xf32>
      %453 = arith.mulf %452, %451 : vector<1x16x128xf32>
      %cst_104 = arith.constant 5.000000e-01 : f32
      %454 = vector.broadcast %cst_104 : f32 to vector<1x16x128xf32>
      %455 = arith.addf %453, %454 : vector<1x16x128xf32>
      %c1_i32_105 = arith.constant 1 : i32
      %456 = arith.addi %53, %c1_i32_105 : i32
      %c1_106 = arith.constant 1 : index
      %457 = arith.index_cast %456 : i32 to index
      %c1_107 = arith.constant 1 : index
      %c0_108 = arith.constant 0 : index
      %458 = vector.load %arg7[%c1_106, %457, %c1_107, %c0_108] : memref<3x18x18x128xf32, #tpu.memory_space<vmem>>, vector<1x1x16x128xf32>
      %459 = vector.shape_cast %458 : vector<1x1x16x128xf32> to vector<1x16x128xf32>
      %460 = vector.shape_cast %455 : vector<1x16x128xf32> to vector<1x1x16x128xf32>
      tpu.vector_store %arg7[%c1_106, %457, %c1_107, %c0_108], %460 {strides = array<i32>} : memref<3x18x18x128xf32, #tpu.memory_space<vmem>>, vector<1x1x16x128xf32>,
      %461 = math.tanh %440 : vector<1x16x128xf32>
      %cst_109 = arith.constant 5.000000e-01 : f32
      %462 = vector.broadcast %cst_109 : f32 to vector<1x16x128xf32>
      %463 = arith.mulf %462, %461 : vector<1x16x128xf32>
      %cst_110 = arith.constant 5.000000e-01 : f32
      %464 = vector.broadcast %cst_110 : f32 to vector<1x16x128xf32>
      %465 = arith.addf %463, %464 : vector<1x16x128xf32>
      %c1_i32_111 = arith.constant 1 : i32
      %466 = arith.addi %53, %c1_i32_111 : i32
      %c2_112 = arith.constant 2 : index
      %467 = arith.index_cast %466 : i32 to index
      %c1_113 = arith.constant 1 : index
      %c0_114 = arith.constant 0 : index
      %468 = vector.load %arg7[%c2_112, %467, %c1_113, %c0_114] : memref<3x18x18x128xf32, #tpu.memory_space<vmem>>, vector<1x1x16x128xf32>
      %469 = vector.shape_cast %468 : vector<1x1x16x128xf32> to vector<1x16x128xf32>
      %470 = vector.shape_cast %465 : vector<1x16x128xf32> to vector<1x1x16x128xf32>
      tpu.vector_store %arg7[%c2_112, %467, %c1_113, %c0_114], %470 {strides = array<i32>} : memref<3x18x18x128xf32, #tpu.memory_space<vmem>>, vector<1x1x16x128xf32>,
    }
    %c16_i32_51 = arith.constant 16 : i32
    %c0_i32_52 = arith.constant 0 : i32
    %c16_i32_53 = arith.constant 16 : i32
    %51 = arith.addi %c0_i32_52, %c16_i32_53 : i32
    %c1_i32_54 = arith.constant 1 : i32
    scf.for %arg8 = %c0_i32_52 to %51 step %c1_i32_54  : i32 {
      %c1_i32_56 = arith.constant 1 : i32
      %52 = arith.muli %arg8, %c1_i32_56 : i32
      %c0_i32_57 = arith.constant 0 : i32
      %53 = arith.addi %c0_i32_57, %52 : i32
      %c0_i32_58 = arith.constant 0 : i32
      %54 = arith.addi %53, %c0_i32_58 : i32
      %c0_59 = arith.constant 0 : index
      %55 = arith.index_cast %54 : i32 to index
      %c0_60 = arith.constant 0 : index
      %c0_61 = arith.constant 0 : index
      %56 = vector.load %arg7[%c0_59, %55, %c0_60, %c0_61] : memref<3x18x18x128xf32, #tpu.memory_space<vmem>>, vector<1x1x18x128xf32>
      %57 = vector.shape_cast %56 : vector<1x1x18x128xf32> to vector<1x18x128xf32>
      %58 = vector.extract_strided_slice %57 {offsets = [0, 0, 0], sizes = [1, 16, 128], strides = [1, 1, 1]} : vector<1x18x128xf32> to vector<1x16x128xf32>
      %c0_62 = arith.constant 0 : index
      %59 = memref.load %arg4[%c0_62] : memref<81xf32, #tpu.memory_space<smem>>
      %60 = vector.broadcast %59 : f32 to vector<1x16x128xf32>
      %61 = arith.mulf %60, %58 : vector<1x16x128xf32>
      %62 = arith.addf %45, %61 : vector<1x16x128xf32>
      %c27 = arith.constant 27 : index
      %63 = memref.load %arg4[%c27] : memref<81xf32, #tpu.memory_space<smem>>
      %64 = vector.broadcast %63 : f32 to vector<1x16x128xf32>
      %65 = arith.mulf %64, %58 : vector<1x16x128xf32>
      %66 = arith.addf %47, %65 : vector<1x16x128xf32>
      %c54 = arith.constant 54 : index
      %67 = memref.load %arg4[%c54] : memref<81xf32, #tpu.memory_space<smem>>
      %68 = vector.broadcast %67 : f32 to vector<1x16x128xf32>
      %69 = arith.mulf %68, %58 : vector<1x16x128xf32>
      %70 = arith.addf %49, %69 : vector<1x16x128xf32>
      %71 = vector.extract_strided_slice %57 {offsets = [0, 1, 0], sizes = [1, 16, 128], strides = [1, 1, 1]} : vector<1x18x128xf32> to vector<1x16x128xf32>
      %c1_63 = arith.constant 1 : index
      %72 = memref.load %arg4[%c1_63] : memref<81xf32, #tpu.memory_space<smem>>
      %73 = vector.broadcast %72 : f32 to vector<1x16x128xf32>
      %74 = arith.mulf %73, %71 : vector<1x16x128xf32>
      %75 = arith.addf %62, %74 : vector<1x16x128xf32>
      %c28 = arith.constant 28 : index
      %76 = memref.load %arg4[%c28] : memref<81xf32, #tpu.memory_space<smem>>
      %77 = vector.broadcast %76 : f32 to vector<1x16x128xf32>
      %78 = arith.mulf %77, %71 : vector<1x16x128xf32>
      %79 = arith.addf %66, %78 : vector<1x16x128xf32>
      %c55 = arith.constant 55 : index
      %80 = memref.load %arg4[%c55] : memref<81xf32, #tpu.memory_space<smem>>
      %81 = vector.broadcast %80 : f32 to vector<1x16x128xf32>
      %82 = arith.mulf %81, %71 : vector<1x16x128xf32>
      %83 = arith.addf %70, %82 : vector<1x16x128xf32>
      %84 = vector.extract_strided_slice %57 {offsets = [0, 2, 0], sizes = [1, 16, 128], strides = [1, 1, 1]} : vector<1x18x128xf32> to vector<1x16x128xf32>
      %c2_64 = arith.constant 2 : index
      %85 = memref.load %arg4[%c2_64] : memref<81xf32, #tpu.memory_space<smem>>
      %86 = vector.broadcast %85 : f32 to vector<1x16x128xf32>
      %87 = arith.mulf %86, %84 : vector<1x16x128xf32>
      %88 = arith.addf %75, %87 : vector<1x16x128xf32>
      %c29 = arith.constant 29 : index
      %89 = memref.load %arg4[%c29] : memref<81xf32, #tpu.memory_space<smem>>
      %90 = vector.broadcast %89 : f32 to vector<1x16x128xf32>
      %91 = arith.mulf %90, %84 : vector<1x16x128xf32>
      %92 = arith.addf %79, %91 : vector<1x16x128xf32>
      %c56 = arith.constant 56 : index
      %93 = memref.load %arg4[%c56] : memref<81xf32, #tpu.memory_space<smem>>
      %94 = vector.broadcast %93 : f32 to vector<1x16x128xf32>
      %95 = arith.mulf %94, %84 : vector<1x16x128xf32>
      %96 = arith.addf %83, %95 : vector<1x16x128xf32>
      %c1_i32_65 = arith.constant 1 : i32
      %97 = arith.addi %53, %c1_i32_65 : i32
      %c0_66 = arith.constant 0 : index
      %98 = arith.index_cast %97 : i32 to index
      %c0_67 = arith.constant 0 : index
      %c0_68 = arith.constant 0 : index
      %99 = vector.load %arg7[%c0_66, %98, %c0_67, %c0_68] : memref<3x18x18x128xf32, #tpu.memory_space<vmem>>, vector<1x1x18x128xf32>
      %100 = vector.shape_cast %99 : vector<1x1x18x128xf32> to vector<1x18x128xf32>
      %101 = vector.extract_strided_slice %100 {offsets = [0, 0, 0], sizes = [1, 16, 128], strides = [1, 1, 1]} : vector<1x18x128xf32> to vector<1x16x128xf32>
      %c3 = arith.constant 3 : index
      %102 = memref.load %arg4[%c3] : memref<81xf32, #tpu.memory_space<smem>>
      %103 = vector.broadcast %102 : f32 to vector<1x16x128xf32>
      %104 = arith.mulf %103, %101 : vector<1x16x128xf32>
      %105 = arith.addf %88, %104 : vector<1x16x128xf32>
      %c30 = arith.constant 30 : index
      %106 = memref.load %arg4[%c30] : memref<81xf32, #tpu.memory_space<smem>>
      %107 = vector.broadcast %106 : f32 to vector<1x16x128xf32>
      %108 = arith.mulf %107, %101 : vector<1x16x128xf32>
      %109 = arith.addf %92, %108 : vector<1x16x128xf32>
      %c57 = arith.constant 57 : index
      %110 = memref.load %arg4[%c57] : memref<81xf32, #tpu.memory_space<smem>>
      %111 = vector.broadcast %110 : f32 to vector<1x16x128xf32>
      %112 = arith.mulf %111, %101 : vector<1x16x128xf32>
      %113 = arith.addf %96, %112 : vector<1x16x128xf32>
      %114 = vector.extract_strided_slice %100 {offsets = [0, 1, 0], sizes = [1, 16, 128], strides = [1, 1, 1]} : vector<1x18x128xf32> to vector<1x16x128xf32>
      %c4 = arith.constant 4 : index
      %115 = memref.load %arg4[%c4] : memref<81xf32, #tpu.memory_space<smem>>
      %116 = vector.broadcast %115 : f32 to vector<1x16x128xf32>
      %117 = arith.mulf %116, %114 : vector<1x16x128xf32>
      %118 = arith.addf %105, %117 : vector<1x16x128xf32>
      %c31 = arith.constant 31 : index
      %119 = memref.load %arg4[%c31] : memref<81xf32, #tpu.memory_space<smem>>
      %120 = vector.broadcast %119 : f32 to vector<1x16x128xf32>
      %121 = arith.mulf %120, %114 : vector<1x16x128xf32>
      %122 = arith.addf %109, %121 : vector<1x16x128xf32>
      %c58 = arith.constant 58 : index
      %123 = memref.load %arg4[%c58] : memref<81xf32, #tpu.memory_space<smem>>
      %124 = vector.broadcast %123 : f32 to vector<1x16x128xf32>
      %125 = arith.mulf %124, %114 : vector<1x16x128xf32>
      %126 = arith.addf %113, %125 : vector<1x16x128xf32>
      %127 = vector.extract_strided_slice %100 {offsets = [0, 2, 0], sizes = [1, 16, 128], strides = [1, 1, 1]} : vector<1x18x128xf32> to vector<1x16x128xf32>
      %c5 = arith.constant 5 : index
      %128 = memref.load %arg4[%c5] : memref<81xf32, #tpu.memory_space<smem>>
      %129 = vector.broadcast %128 : f32 to vector<1x16x128xf32>
      %130 = arith.mulf %129, %127 : vector<1x16x128xf32>
      %131 = arith.addf %118, %130 : vector<1x16x128xf32>
      %c32 = arith.constant 32 : index
      %132 = memref.load %arg4[%c32] : memref<81xf32, #tpu.memory_space<smem>>
      %133 = vector.broadcast %132 : f32 to vector<1x16x128xf32>
      %134 = arith.mulf %133, %127 : vector<1x16x128xf32>
      %135 = arith.addf %122, %134 : vector<1x16x128xf32>
      %c59 = arith.constant 59 : index
      %136 = memref.load %arg4[%c59] : memref<81xf32, #tpu.memory_space<smem>>
      %137 = vector.broadcast %136 : f32 to vector<1x16x128xf32>
      %138 = arith.mulf %137, %127 : vector<1x16x128xf32>
      %139 = arith.addf %126, %138 : vector<1x16x128xf32>
      %c2_i32 = arith.constant 2 : i32
      %140 = arith.addi %53, %c2_i32 : i32
      %c0_69 = arith.constant 0 : index
      %141 = arith.index_cast %140 : i32 to index
      %c0_70 = arith.constant 0 : index
      %c0_71 = arith.constant 0 : index
      %142 = vector.load %arg7[%c0_69, %141, %c0_70, %c0_71] : memref<3x18x18x128xf32, #tpu.memory_space<vmem>>, vector<1x1x18x128xf32>
      %143 = vector.shape_cast %142 : vector<1x1x18x128xf32> to vector<1x18x128xf32>
      %144 = vector.extract_strided_slice %143 {offsets = [0, 0, 0], sizes = [1, 16, 128], strides = [1, 1, 1]} : vector<1x18x128xf32> to vector<1x16x128xf32>
      %c6 = arith.constant 6 : index
      %145 = memref.load %arg4[%c6] : memref<81xf32, #tpu.memory_space<smem>>
      %146 = vector.broadcast %145 : f32 to vector<1x16x128xf32>
      %147 = arith.mulf %146, %144 : vector<1x16x128xf32>
      %148 = arith.addf %131, %147 : vector<1x16x128xf32>
      %c33 = arith.constant 33 : index
      %149 = memref.load %arg4[%c33] : memref<81xf32, #tpu.memory_space<smem>>
      %150 = vector.broadcast %149 : f32 to vector<1x16x128xf32>
      %151 = arith.mulf %150, %144 : vector<1x16x128xf32>
      %152 = arith.addf %135, %151 : vector<1x16x128xf32>
      %c60 = arith.constant 60 : index
      %153 = memref.load %arg4[%c60] : memref<81xf32, #tpu.memory_space<smem>>
      %154 = vector.broadcast %153 : f32 to vector<1x16x128xf32>
      %155 = arith.mulf %154, %144 : vector<1x16x128xf32>
      %156 = arith.addf %139, %155 : vector<1x16x128xf32>
      %157 = vector.extract_strided_slice %143 {offsets = [0, 1, 0], sizes = [1, 16, 128], strides = [1, 1, 1]} : vector<1x18x128xf32> to vector<1x16x128xf32>
      %c7 = arith.constant 7 : index
      %158 = memref.load %arg4[%c7] : memref<81xf32, #tpu.memory_space<smem>>
      %159 = vector.broadcast %158 : f32 to vector<1x16x128xf32>
      %160 = arith.mulf %159, %157 : vector<1x16x128xf32>
      %161 = arith.addf %148, %160 : vector<1x16x128xf32>
      %c34 = arith.constant 34 : index
      %162 = memref.load %arg4[%c34] : memref<81xf32, #tpu.memory_space<smem>>
      %163 = vector.broadcast %162 : f32 to vector<1x16x128xf32>
      %164 = arith.mulf %163, %157 : vector<1x16x128xf32>
      %165 = arith.addf %152, %164 : vector<1x16x128xf32>
      %c61 = arith.constant 61 : index
      %166 = memref.load %arg4[%c61] : memref<81xf32, #tpu.memory_space<smem>>
      %167 = vector.broadcast %166 : f32 to vector<1x16x128xf32>
      %168 = arith.mulf %167, %157 : vector<1x16x128xf32>
      %169 = arith.addf %156, %168 : vector<1x16x128xf32>
      %170 = vector.extract_strided_slice %143 {offsets = [0, 2, 0], sizes = [1, 16, 128], strides = [1, 1, 1]} : vector<1x18x128xf32> to vector<1x16x128xf32>
      %c8 = arith.constant 8 : index
      %171 = memref.load %arg4[%c8] : memref<81xf32, #tpu.memory_space<smem>>
      %172 = vector.broadcast %171 : f32 to vector<1x16x128xf32>
      %173 = arith.mulf %172, %170 : vector<1x16x128xf32>
      %174 = arith.addf %161, %173 : vector<1x16x128xf32>
      %c35 = arith.constant 35 : index
      %175 = memref.load %arg4[%c35] : memref<81xf32, #tpu.memory_space<smem>>
      %176 = vector.broadcast %175 : f32 to vector<1x16x128xf32>
      %177 = arith.mulf %176, %170 : vector<1x16x128xf32>
      %178 = arith.addf %165, %177 : vector<1x16x128xf32>
      %c62 = arith.constant 62 : index
      %179 = memref.load %arg4[%c62] : memref<81xf32, #tpu.memory_space<smem>>
      %180 = vector.broadcast %179 : f32 to vector<1x16x128xf32>
      %181 = arith.mulf %180, %170 : vector<1x16x128xf32>
      %182 = arith.addf %169, %181 : vector<1x16x128xf32>
      %c0_i32_72 = arith.constant 0 : i32
      %183 = arith.addi %53, %c0_i32_72 : i32
      %c1_73 = arith.constant 1 : index
      %184 = arith.index_cast %183 : i32 to index
      %c0_74 = arith.constant 0 : index
      %c0_75 = arith.constant 0 : index
      %185 = vector.load %arg7[%c1_73, %184, %c0_74, %c0_75] : memref<3x18x18x128xf32, #tpu.memory_space<vmem>>, vector<1x1x18x128xf32>
      %186 = vector.shape_cast %185 : vector<1x1x18x128xf32> to vector<1x18x128xf32>
      %187 = vector.extract_strided_slice %186 {offsets = [0, 0, 0], sizes = [1, 16, 128], strides = [1, 1, 1]} : vector<1x18x128xf32> to vector<1x16x128xf32>
      %c9 = arith.constant 9 : index
      %188 = memref.load %arg4[%c9] : memref<81xf32, #tpu.memory_space<smem>>
      %189 = vector.broadcast %188 : f32 to vector<1x16x128xf32>
      %190 = arith.mulf %189, %187 : vector<1x16x128xf32>
      %191 = arith.addf %174, %190 : vector<1x16x128xf32>
      %c36 = arith.constant 36 : index
      %192 = memref.load %arg4[%c36] : memref<81xf32, #tpu.memory_space<smem>>
      %193 = vector.broadcast %192 : f32 to vector<1x16x128xf32>
      %194 = arith.mulf %193, %187 : vector<1x16x128xf32>
      %195 = arith.addf %178, %194 : vector<1x16x128xf32>
      %c63 = arith.constant 63 : index
      %196 = memref.load %arg4[%c63] : memref<81xf32, #tpu.memory_space<smem>>
      %197 = vector.broadcast %196 : f32 to vector<1x16x128xf32>
      %198 = arith.mulf %197, %187 : vector<1x16x128xf32>
      %199 = arith.addf %182, %198 : vector<1x16x128xf32>
      %200 = vector.extract_strided_slice %186 {offsets = [0, 1, 0], sizes = [1, 16, 128], strides = [1, 1, 1]} : vector<1x18x128xf32> to vector<1x16x128xf32>
      %c10 = arith.constant 10 : index
      %201 = memref.load %arg4[%c10] : memref<81xf32, #tpu.memory_space<smem>>
      %202 = vector.broadcast %201 : f32 to vector<1x16x128xf32>
      %203 = arith.mulf %202, %200 : vector<1x16x128xf32>
      %204 = arith.addf %191, %203 : vector<1x16x128xf32>
      %c37 = arith.constant 37 : index
      %205 = memref.load %arg4[%c37] : memref<81xf32, #tpu.memory_space<smem>>
      %206 = vector.broadcast %205 : f32 to vector<1x16x128xf32>
      %207 = arith.mulf %206, %200 : vector<1x16x128xf32>
      %208 = arith.addf %195, %207 : vector<1x16x128xf32>
      %c64 = arith.constant 64 : index
      %209 = memref.load %arg4[%c64] : memref<81xf32, #tpu.memory_space<smem>>
      %210 = vector.broadcast %209 : f32 to vector<1x16x128xf32>
      %211 = arith.mulf %210, %200 : vector<1x16x128xf32>
      %212 = arith.addf %199, %211 : vector<1x16x128xf32>
      %213 = vector.extract_strided_slice %186 {offsets = [0, 2, 0], sizes = [1, 16, 128], strides = [1, 1, 1]} : vector<1x18x128xf32> to vector<1x16x128xf32>
      %c11 = arith.constant 11 : index
      %214 = memref.load %arg4[%c11] : memref<81xf32, #tpu.memory_space<smem>>
      %215 = vector.broadcast %214 : f32 to vector<1x16x128xf32>
      %216 = arith.mulf %215, %213 : vector<1x16x128xf32>
      %217 = arith.addf %204, %216 : vector<1x16x128xf32>
      %c38 = arith.constant 38 : index
      %218 = memref.load %arg4[%c38] : memref<81xf32, #tpu.memory_space<smem>>
      %219 = vector.broadcast %218 : f32 to vector<1x16x128xf32>
      %220 = arith.mulf %219, %213 : vector<1x16x128xf32>
      %221 = arith.addf %208, %220 : vector<1x16x128xf32>
      %c65 = arith.constant 65 : index
      %222 = memref.load %arg4[%c65] : memref<81xf32, #tpu.memory_space<smem>>
      %223 = vector.broadcast %222 : f32 to vector<1x16x128xf32>
      %224 = arith.mulf %223, %213 : vector<1x16x128xf32>
      %225 = arith.addf %212, %224 : vector<1x16x128xf32>
      %c1_i32_76 = arith.constant 1 : i32
      %226 = arith.addi %53, %c1_i32_76 : i32
      %c1_77 = arith.constant 1 : index
      %227 = arith.index_cast %226 : i32 to index
      %c0_78 = arith.constant 0 : index
      %c0_79 = arith.constant 0 : index
      %228 = vector.load %arg7[%c1_77, %227, %c0_78, %c0_79] : memref<3x18x18x128xf32, #tpu.memory_space<vmem>>, vector<1x1x18x128xf32>
      %229 = vector.shape_cast %228 : vector<1x1x18x128xf32> to vector<1x18x128xf32>
      %230 = vector.extract_strided_slice %229 {offsets = [0, 0, 0], sizes = [1, 16, 128], strides = [1, 1, 1]} : vector<1x18x128xf32> to vector<1x16x128xf32>
      %c12 = arith.constant 12 : index
      %231 = memref.load %arg4[%c12] : memref<81xf32, #tpu.memory_space<smem>>
      %232 = vector.broadcast %231 : f32 to vector<1x16x128xf32>
      %233 = arith.mulf %232, %230 : vector<1x16x128xf32>
      %234 = arith.addf %217, %233 : vector<1x16x128xf32>
      %c39 = arith.constant 39 : index
      %235 = memref.load %arg4[%c39] : memref<81xf32, #tpu.memory_space<smem>>
      %236 = vector.broadcast %235 : f32 to vector<1x16x128xf32>
      %237 = arith.mulf %236, %230 : vector<1x16x128xf32>
      %238 = arith.addf %221, %237 : vector<1x16x128xf32>
      %c66 = arith.constant 66 : index
      %239 = memref.load %arg4[%c66] : memref<81xf32, #tpu.memory_space<smem>>
      %240 = vector.broadcast %239 : f32 to vector<1x16x128xf32>
      %241 = arith.mulf %240, %230 : vector<1x16x128xf32>
      %242 = arith.addf %225, %241 : vector<1x16x128xf32>
      %243 = vector.extract_strided_slice %229 {offsets = [0, 1, 0], sizes = [1, 16, 128], strides = [1, 1, 1]} : vector<1x18x128xf32> to vector<1x16x128xf32>
      %c13 = arith.constant 13 : index
      %244 = memref.load %arg4[%c13] : memref<81xf32, #tpu.memory_space<smem>>
      %245 = vector.broadcast %244 : f32 to vector<1x16x128xf32>
      %246 = arith.mulf %245, %243 : vector<1x16x128xf32>
      %247 = arith.addf %234, %246 : vector<1x16x128xf32>
      %c40 = arith.constant 40 : index
      %248 = memref.load %arg4[%c40] : memref<81xf32, #tpu.memory_space<smem>>
      %249 = vector.broadcast %248 : f32 to vector<1x16x128xf32>
      %250 = arith.mulf %249, %243 : vector<1x16x128xf32>
      %251 = arith.addf %238, %250 : vector<1x16x128xf32>
      %c67 = arith.constant 67 : index
      %252 = memref.load %arg4[%c67] : memref<81xf32, #tpu.memory_space<smem>>
      %253 = vector.broadcast %252 : f32 to vector<1x16x128xf32>
      %254 = arith.mulf %253, %243 : vector<1x16x128xf32>
      %255 = arith.addf %242, %254 : vector<1x16x128xf32>
      %256 = vector.extract_strided_slice %229 {offsets = [0, 2, 0], sizes = [1, 16, 128], strides = [1, 1, 1]} : vector<1x18x128xf32> to vector<1x16x128xf32>
      %c14 = arith.constant 14 : index
      %257 = memref.load %arg4[%c14] : memref<81xf32, #tpu.memory_space<smem>>
      %258 = vector.broadcast %257 : f32 to vector<1x16x128xf32>
      %259 = arith.mulf %258, %256 : vector<1x16x128xf32>
      %260 = arith.addf %247, %259 : vector<1x16x128xf32>
      %c41 = arith.constant 41 : index
      %261 = memref.load %arg4[%c41] : memref<81xf32, #tpu.memory_space<smem>>
      %262 = vector.broadcast %261 : f32 to vector<1x16x128xf32>
      %263 = arith.mulf %262, %256 : vector<1x16x128xf32>
      %264 = arith.addf %251, %263 : vector<1x16x128xf32>
      %c68 = arith.constant 68 : index
      %265 = memref.load %arg4[%c68] : memref<81xf32, #tpu.memory_space<smem>>
      %266 = vector.broadcast %265 : f32 to vector<1x16x128xf32>
      %267 = arith.mulf %266, %256 : vector<1x16x128xf32>
      %268 = arith.addf %255, %267 : vector<1x16x128xf32>
      %c2_i32_80 = arith.constant 2 : i32
      %269 = arith.addi %53, %c2_i32_80 : i32
      %c1_81 = arith.constant 1 : index
      %270 = arith.index_cast %269 : i32 to index
      %c0_82 = arith.constant 0 : index
      %c0_83 = arith.constant 0 : index
      %271 = vector.load %arg7[%c1_81, %270, %c0_82, %c0_83] : memref<3x18x18x128xf32, #tpu.memory_space<vmem>>, vector<1x1x18x128xf32>
      %272 = vector.shape_cast %271 : vector<1x1x18x128xf32> to vector<1x18x128xf32>
      %273 = vector.extract_strided_slice %272 {offsets = [0, 0, 0], sizes = [1, 16, 128], strides = [1, 1, 1]} : vector<1x18x128xf32> to vector<1x16x128xf32>
      %c15 = arith.constant 15 : index
      %274 = memref.load %arg4[%c15] : memref<81xf32, #tpu.memory_space<smem>>
      %275 = vector.broadcast %274 : f32 to vector<1x16x128xf32>
      %276 = arith.mulf %275, %273 : vector<1x16x128xf32>
      %277 = arith.addf %260, %276 : vector<1x16x128xf32>
      %c42 = arith.constant 42 : index
      %278 = memref.load %arg4[%c42] : memref<81xf32, #tpu.memory_space<smem>>
      %279 = vector.broadcast %278 : f32 to vector<1x16x128xf32>
      %280 = arith.mulf %279, %273 : vector<1x16x128xf32>
      %281 = arith.addf %264, %280 : vector<1x16x128xf32>
      %c69 = arith.constant 69 : index
      %282 = memref.load %arg4[%c69] : memref<81xf32, #tpu.memory_space<smem>>
      %283 = vector.broadcast %282 : f32 to vector<1x16x128xf32>
      %284 = arith.mulf %283, %273 : vector<1x16x128xf32>
      %285 = arith.addf %268, %284 : vector<1x16x128xf32>
      %286 = vector.extract_strided_slice %272 {offsets = [0, 1, 0], sizes = [1, 16, 128], strides = [1, 1, 1]} : vector<1x18x128xf32> to vector<1x16x128xf32>
      %c16 = arith.constant 16 : index
      %287 = memref.load %arg4[%c16] : memref<81xf32, #tpu.memory_space<smem>>
      %288 = vector.broadcast %287 : f32 to vector<1x16x128xf32>
      %289 = arith.mulf %288, %286 : vector<1x16x128xf32>
      %290 = arith.addf %277, %289 : vector<1x16x128xf32>
      %c43 = arith.constant 43 : index
      %291 = memref.load %arg4[%c43] : memref<81xf32, #tpu.memory_space<smem>>
      %292 = vector.broadcast %291 : f32 to vector<1x16x128xf32>
      %293 = arith.mulf %292, %286 : vector<1x16x128xf32>
      %294 = arith.addf %281, %293 : vector<1x16x128xf32>
      %c70 = arith.constant 70 : index
      %295 = memref.load %arg4[%c70] : memref<81xf32, #tpu.memory_space<smem>>
      %296 = vector.broadcast %295 : f32 to vector<1x16x128xf32>
      %297 = arith.mulf %296, %286 : vector<1x16x128xf32>
      %298 = arith.addf %285, %297 : vector<1x16x128xf32>
      %299 = vector.extract_strided_slice %272 {offsets = [0, 2, 0], sizes = [1, 16, 128], strides = [1, 1, 1]} : vector<1x18x128xf32> to vector<1x16x128xf32>
      %c17_84 = arith.constant 17 : index
      %300 = memref.load %arg4[%c17_84] : memref<81xf32, #tpu.memory_space<smem>>
      %301 = vector.broadcast %300 : f32 to vector<1x16x128xf32>
      %302 = arith.mulf %301, %299 : vector<1x16x128xf32>
      %303 = arith.addf %290, %302 : vector<1x16x128xf32>
      %c44 = arith.constant 44 : index
      %304 = memref.load %arg4[%c44] : memref<81xf32, #tpu.memory_space<smem>>
      %305 = vector.broadcast %304 : f32 to vector<1x16x128xf32>
      %306 = arith.mulf %305, %299 : vector<1x16x128xf32>
      %307 = arith.addf %294, %306 : vector<1x16x128xf32>
      %c71 = arith.constant 71 : index
      %308 = memref.load %arg4[%c71] : memref<81xf32, #tpu.memory_space<smem>>
      %309 = vector.broadcast %308 : f32 to vector<1x16x128xf32>
      %310 = arith.mulf %309, %299 : vector<1x16x128xf32>
      %311 = arith.addf %298, %310 : vector<1x16x128xf32>
      %c0_i32_85 = arith.constant 0 : i32
      %312 = arith.addi %53, %c0_i32_85 : i32
      %c2_86 = arith.constant 2 : index
      %313 = arith.index_cast %312 : i32 to index
      %c0_87 = arith.constant 0 : index
      %c0_88 = arith.constant 0 : index
      %314 = vector.load %arg7[%c2_86, %313, %c0_87, %c0_88] : memref<3x18x18x128xf32, #tpu.memory_space<vmem>>, vector<1x1x18x128xf32>
      %315 = vector.shape_cast %314 : vector<1x1x18x128xf32> to vector<1x18x128xf32>
      %316 = vector.extract_strided_slice %315 {offsets = [0, 0, 0], sizes = [1, 16, 128], strides = [1, 1, 1]} : vector<1x18x128xf32> to vector<1x16x128xf32>
      %c18 = arith.constant 18 : index
      %317 = memref.load %arg4[%c18] : memref<81xf32, #tpu.memory_space<smem>>
      %318 = vector.broadcast %317 : f32 to vector<1x16x128xf32>
      %319 = arith.mulf %318, %316 : vector<1x16x128xf32>
      %320 = arith.addf %303, %319 : vector<1x16x128xf32>
      %c45 = arith.constant 45 : index
      %321 = memref.load %arg4[%c45] : memref<81xf32, #tpu.memory_space<smem>>
      %322 = vector.broadcast %321 : f32 to vector<1x16x128xf32>
      %323 = arith.mulf %322, %316 : vector<1x16x128xf32>
      %324 = arith.addf %307, %323 : vector<1x16x128xf32>
      %c72 = arith.constant 72 : index
      %325 = memref.load %arg4[%c72] : memref<81xf32, #tpu.memory_space<smem>>
      %326 = vector.broadcast %325 : f32 to vector<1x16x128xf32>
      %327 = arith.mulf %326, %316 : vector<1x16x128xf32>
      %328 = arith.addf %311, %327 : vector<1x16x128xf32>
      %329 = vector.extract_strided_slice %315 {offsets = [0, 1, 0], sizes = [1, 16, 128], strides = [1, 1, 1]} : vector<1x18x128xf32> to vector<1x16x128xf32>
      %c19 = arith.constant 19 : index
      %330 = memref.load %arg4[%c19] : memref<81xf32, #tpu.memory_space<smem>>
      %331 = vector.broadcast %330 : f32 to vector<1x16x128xf32>
      %332 = arith.mulf %331, %329 : vector<1x16x128xf32>
      %333 = arith.addf %320, %332 : vector<1x16x128xf32>
      %c46 = arith.constant 46 : index
      %334 = memref.load %arg4[%c46] : memref<81xf32, #tpu.memory_space<smem>>
      %335 = vector.broadcast %334 : f32 to vector<1x16x128xf32>
      %336 = arith.mulf %335, %329 : vector<1x16x128xf32>
      %337 = arith.addf %324, %336 : vector<1x16x128xf32>
      %c73 = arith.constant 73 : index
      %338 = memref.load %arg4[%c73] : memref<81xf32, #tpu.memory_space<smem>>
      %339 = vector.broadcast %338 : f32 to vector<1x16x128xf32>
      %340 = arith.mulf %339, %329 : vector<1x16x128xf32>
      %341 = arith.addf %328, %340 : vector<1x16x128xf32>
      %342 = vector.extract_strided_slice %315 {offsets = [0, 2, 0], sizes = [1, 16, 128], strides = [1, 1, 1]} : vector<1x18x128xf32> to vector<1x16x128xf32>
      %c20 = arith.constant 20 : index
      %343 = memref.load %arg4[%c20] : memref<81xf32, #tpu.memory_space<smem>>
      %344 = vector.broadcast %343 : f32 to vector<1x16x128xf32>
      %345 = arith.mulf %344, %342 : vector<1x16x128xf32>
      %346 = arith.addf %333, %345 : vector<1x16x128xf32>
      %c47 = arith.constant 47 : index
      %347 = memref.load %arg4[%c47] : memref<81xf32, #tpu.memory_space<smem>>
      %348 = vector.broadcast %347 : f32 to vector<1x16x128xf32>
      %349 = arith.mulf %348, %342 : vector<1x16x128xf32>
      %350 = arith.addf %337, %349 : vector<1x16x128xf32>
      %c74 = arith.constant 74 : index
      %351 = memref.load %arg4[%c74] : memref<81xf32, #tpu.memory_space<smem>>
      %352 = vector.broadcast %351 : f32 to vector<1x16x128xf32>
      %353 = arith.mulf %352, %342 : vector<1x16x128xf32>
      %354 = arith.addf %341, %353 : vector<1x16x128xf32>
      %c1_i32_89 = arith.constant 1 : i32
      %355 = arith.addi %53, %c1_i32_89 : i32
      %c2_90 = arith.constant 2 : index
      %356 = arith.index_cast %355 : i32 to index
      %c0_91 = arith.constant 0 : index
      %c0_92 = arith.constant 0 : index
      %357 = vector.load %arg7[%c2_90, %356, %c0_91, %c0_92] : memref<3x18x18x128xf32, #tpu.memory_space<vmem>>, vector<1x1x18x128xf32>
      %358 = vector.shape_cast %357 : vector<1x1x18x128xf32> to vector<1x18x128xf32>
      %359 = vector.extract_strided_slice %358 {offsets = [0, 0, 0], sizes = [1, 16, 128], strides = [1, 1, 1]} : vector<1x18x128xf32> to vector<1x16x128xf32>
      %c21 = arith.constant 21 : index
      %360 = memref.load %arg4[%c21] : memref<81xf32, #tpu.memory_space<smem>>
      %361 = vector.broadcast %360 : f32 to vector<1x16x128xf32>
      %362 = arith.mulf %361, %359 : vector<1x16x128xf32>
      %363 = arith.addf %346, %362 : vector<1x16x128xf32>
      %c48 = arith.constant 48 : index
      %364 = memref.load %arg4[%c48] : memref<81xf32, #tpu.memory_space<smem>>
      %365 = vector.broadcast %364 : f32 to vector<1x16x128xf32>
      %366 = arith.mulf %365, %359 : vector<1x16x128xf32>
      %367 = arith.addf %350, %366 : vector<1x16x128xf32>
      %c75 = arith.constant 75 : index
      %368 = memref.load %arg4[%c75] : memref<81xf32, #tpu.memory_space<smem>>
      %369 = vector.broadcast %368 : f32 to vector<1x16x128xf32>
      %370 = arith.mulf %369, %359 : vector<1x16x128xf32>
      %371 = arith.addf %354, %370 : vector<1x16x128xf32>
      %372 = vector.extract_strided_slice %358 {offsets = [0, 1, 0], sizes = [1, 16, 128], strides = [1, 1, 1]} : vector<1x18x128xf32> to vector<1x16x128xf32>
      %c22 = arith.constant 22 : index
      %373 = memref.load %arg4[%c22] : memref<81xf32, #tpu.memory_space<smem>>
      %374 = vector.broadcast %373 : f32 to vector<1x16x128xf32>
      %375 = arith.mulf %374, %372 : vector<1x16x128xf32>
      %376 = arith.addf %363, %375 : vector<1x16x128xf32>
      %c49 = arith.constant 49 : index
      %377 = memref.load %arg4[%c49] : memref<81xf32, #tpu.memory_space<smem>>
      %378 = vector.broadcast %377 : f32 to vector<1x16x128xf32>
      %379 = arith.mulf %378, %372 : vector<1x16x128xf32>
      %380 = arith.addf %367, %379 : vector<1x16x128xf32>
      %c76 = arith.constant 76 : index
      %381 = memref.load %arg4[%c76] : memref<81xf32, #tpu.memory_space<smem>>
      %382 = vector.broadcast %381 : f32 to vector<1x16x128xf32>
      %383 = arith.mulf %382, %372 : vector<1x16x128xf32>
      %384 = arith.addf %371, %383 : vector<1x16x128xf32>
      %385 = vector.extract_strided_slice %358 {offsets = [0, 2, 0], sizes = [1, 16, 128], strides = [1, 1, 1]} : vector<1x18x128xf32> to vector<1x16x128xf32>
      %c23 = arith.constant 23 : index
      %386 = memref.load %arg4[%c23] : memref<81xf32, #tpu.memory_space<smem>>
      %387 = vector.broadcast %386 : f32 to vector<1x16x128xf32>
      %388 = arith.mulf %387, %385 : vector<1x16x128xf32>
      %389 = arith.addf %376, %388 : vector<1x16x128xf32>
      %c50 = arith.constant 50 : index
      %390 = memref.load %arg4[%c50] : memref<81xf32, #tpu.memory_space<smem>>
      %391 = vector.broadcast %390 : f32 to vector<1x16x128xf32>
      %392 = arith.mulf %391, %385 : vector<1x16x128xf32>
      %393 = arith.addf %380, %392 : vector<1x16x128xf32>
      %c77 = arith.constant 77 : index
      %394 = memref.load %arg4[%c77] : memref<81xf32, #tpu.memory_space<smem>>
      %395 = vector.broadcast %394 : f32 to vector<1x16x128xf32>
      %396 = arith.mulf %395, %385 : vector<1x16x128xf32>
      %397 = arith.addf %384, %396 : vector<1x16x128xf32>
      %c2_i32_93 = arith.constant 2 : i32
      %398 = arith.addi %53, %c2_i32_93 : i32
      %c2_94 = arith.constant 2 : index
      %399 = arith.index_cast %398 : i32 to index
      %c0_95 = arith.constant 0 : index
      %c0_96 = arith.constant 0 : index
      %400 = vector.load %arg7[%c2_94, %399, %c0_95, %c0_96] : memref<3x18x18x128xf32, #tpu.memory_space<vmem>>, vector<1x1x18x128xf32>
      %401 = vector.shape_cast %400 : vector<1x1x18x128xf32> to vector<1x18x128xf32>
      %402 = vector.extract_strided_slice %401 {offsets = [0, 0, 0], sizes = [1, 16, 128], strides = [1, 1, 1]} : vector<1x18x128xf32> to vector<1x16x128xf32>
      %c24 = arith.constant 24 : index
      %403 = memref.load %arg4[%c24] : memref<81xf32, #tpu.memory_space<smem>>
      %404 = vector.broadcast %403 : f32 to vector<1x16x128xf32>
      %405 = arith.mulf %404, %402 : vector<1x16x128xf32>
      %406 = arith.addf %389, %405 : vector<1x16x128xf32>
      %c51 = arith.constant 51 : index
      %407 = memref.load %arg4[%c51] : memref<81xf32, #tpu.memory_space<smem>>
      %408 = vector.broadcast %407 : f32 to vector<1x16x128xf32>
      %409 = arith.mulf %408, %402 : vector<1x16x128xf32>
      %410 = arith.addf %393, %409 : vector<1x16x128xf32>
      %c78 = arith.constant 78 : index
      %411 = memref.load %arg4[%c78] : memref<81xf32, #tpu.memory_space<smem>>
      %412 = vector.broadcast %411 : f32 to vector<1x16x128xf32>
      %413 = arith.mulf %412, %402 : vector<1x16x128xf32>
      %414 = arith.addf %397, %413 : vector<1x16x128xf32>
      %415 = vector.extract_strided_slice %401 {offsets = [0, 1, 0], sizes = [1, 16, 128], strides = [1, 1, 1]} : vector<1x18x128xf32> to vector<1x16x128xf32>
      %c25 = arith.constant 25 : index
      %416 = memref.load %arg4[%c25] : memref<81xf32, #tpu.memory_space<smem>>
      %417 = vector.broadcast %416 : f32 to vector<1x16x128xf32>
      %418 = arith.mulf %417, %415 : vector<1x16x128xf32>
      %419 = arith.addf %406, %418 : vector<1x16x128xf32>
      %c52 = arith.constant 52 : index
      %420 = memref.load %arg4[%c52] : memref<81xf32, #tpu.memory_space<smem>>
      %421 = vector.broadcast %420 : f32 to vector<1x16x128xf32>
      %422 = arith.mulf %421, %415 : vector<1x16x128xf32>
      %423 = arith.addf %410, %422 : vector<1x16x128xf32>
      %c79 = arith.constant 79 : index
      %424 = memref.load %arg4[%c79] : memref<81xf32, #tpu.memory_space<smem>>
      %425 = vector.broadcast %424 : f32 to vector<1x16x128xf32>
      %426 = arith.mulf %425, %415 : vector<1x16x128xf32>
      %427 = arith.addf %414, %426 : vector<1x16x128xf32>
      %428 = vector.extract_strided_slice %401 {offsets = [0, 2, 0], sizes = [1, 16, 128], strides = [1, 1, 1]} : vector<1x18x128xf32> to vector<1x16x128xf32>
      %c26 = arith.constant 26 : index
      %429 = memref.load %arg4[%c26] : memref<81xf32, #tpu.memory_space<smem>>
      %430 = vector.broadcast %429 : f32 to vector<1x16x128xf32>
      %431 = arith.mulf %430, %428 : vector<1x16x128xf32>
      %432 = arith.addf %419, %431 : vector<1x16x128xf32>
      %c53 = arith.constant 53 : index
      %433 = memref.load %arg4[%c53] : memref<81xf32, #tpu.memory_space<smem>>
      %434 = vector.broadcast %433 : f32 to vector<1x16x128xf32>
      %435 = arith.mulf %434, %428 : vector<1x16x128xf32>
      %436 = arith.addf %423, %435 : vector<1x16x128xf32>
      %c80 = arith.constant 80 : index
      %437 = memref.load %arg4[%c80] : memref<81xf32, #tpu.memory_space<smem>>
      %438 = vector.broadcast %437 : f32 to vector<1x16x128xf32>
      %439 = arith.mulf %438, %428 : vector<1x16x128xf32>
      %440 = arith.addf %427, %439 : vector<1x16x128xf32>
      %441 = math.tanh %432 : vector<1x16x128xf32>
      %cst_97 = arith.constant 5.000000e-01 : f32
      %442 = vector.broadcast %cst_97 : f32 to vector<1x16x128xf32>
      %443 = arith.mulf %442, %441 : vector<1x16x128xf32>
      %cst_98 = arith.constant 5.000000e-01 : f32
      %444 = vector.broadcast %cst_98 : f32 to vector<1x16x128xf32>
      %445 = arith.addf %443, %444 : vector<1x16x128xf32>
      %c0_99 = arith.constant 0 : index
      %446 = arith.index_cast %53 : i32 to index
      %c0_100 = arith.constant 0 : index
      %c0_101 = arith.constant 0 : index
      %447 = vector.load %arg6[%c0_99, %446, %c0_100, %c0_101] : memref<3x16x16x128xf32, #tpu.memory_space<vmem>>, vector<1x1x16x128xf32>
      %448 = vector.shape_cast %447 : vector<1x1x16x128xf32> to vector<1x16x128xf32>
      %449 = vector.shape_cast %445 : vector<1x16x128xf32> to vector<1x1x16x128xf32>
      tpu.vector_store %arg6[%c0_99, %446, %c0_100, %c0_101], %449 {strides = array<i32>} : memref<3x16x16x128xf32, #tpu.memory_space<vmem>>, vector<1x1x16x128xf32>,
      %450 = math.tanh %436 : vector<1x16x128xf32>
      %cst_102 = arith.constant 5.000000e-01 : f32
      %451 = vector.broadcast %cst_102 : f32 to vector<1x16x128xf32>
      %452 = arith.mulf %451, %450 : vector<1x16x128xf32>
      %cst_103 = arith.constant 5.000000e-01 : f32
      %453 = vector.broadcast %cst_103 : f32 to vector<1x16x128xf32>
      %454 = arith.addf %452, %453 : vector<1x16x128xf32>
      %c1_104 = arith.constant 1 : index
      %455 = arith.index_cast %53 : i32 to index
      %c0_105 = arith.constant 0 : index
      %c0_106 = arith.constant 0 : index
      %456 = vector.load %arg6[%c1_104, %455, %c0_105, %c0_106] : memref<3x16x16x128xf32, #tpu.memory_space<vmem>>, vector<1x1x16x128xf32>
      %457 = vector.shape_cast %456 : vector<1x1x16x128xf32> to vector<1x16x128xf32>
      %458 = vector.shape_cast %454 : vector<1x16x128xf32> to vector<1x1x16x128xf32>
      tpu.vector_store %arg6[%c1_104, %455, %c0_105, %c0_106], %458 {strides = array<i32>} : memref<3x16x16x128xf32, #tpu.memory_space<vmem>>, vector<1x1x16x128xf32>,
      %459 = math.tanh %440 : vector<1x16x128xf32>
      %cst_107 = arith.constant 5.000000e-01 : f32
      %460 = vector.broadcast %cst_107 : f32 to vector<1x16x128xf32>
      %461 = arith.mulf %460, %459 : vector<1x16x128xf32>
      %cst_108 = arith.constant 5.000000e-01 : f32
      %462 = vector.broadcast %cst_108 : f32 to vector<1x16x128xf32>
      %463 = arith.addf %461, %462 : vector<1x16x128xf32>
      %c2_109 = arith.constant 2 : index
      %464 = arith.index_cast %53 : i32 to index
      %c0_110 = arith.constant 0 : index
      %c0_111 = arith.constant 0 : index
      %465 = vector.load %arg6[%c2_109, %464, %c0_110, %c0_111] : memref<3x16x16x128xf32, #tpu.memory_space<vmem>>, vector<1x1x16x128xf32>
      %466 = vector.shape_cast %465 : vector<1x1x16x128xf32> to vector<1x16x128xf32>
      %467 = vector.shape_cast %463 : vector<1x16x128xf32> to vector<1x1x16x128xf32>
      tpu.vector_store %arg6[%c2_109, %464, %c0_110, %c0_111], %467 {strides = array<i32>} : memref<3x16x16x128xf32, #tpu.memory_space<vmem>>, vector<1x1x16x128xf32>,
    }
    %c16_i32_55 = arith.constant 16 : i32
    return
  }
  func.func @transform_0(%arg0: i32) -> (i32, i32, i32, i32) {
    %c0_i32 = arith.constant 0 : i32
    %c0_i32_0 = arith.constant 0 : i32
    %c0_i32_1 = arith.constant 0 : i32
    %c0_i32_2 = arith.constant 0 : i32
    return %c0_i32, %c0_i32_0, %c0_i32_1, %arg0 : i32, i32, i32, i32
  }
  func.func @transform_1(%arg0: i32) -> i32 {
    %c0_i32 = arith.constant 0 : i32
    %c0_i32_0 = arith.constant 0 : i32
    return %c0_i32 : i32
  }
  func.func @transform_2(%arg0: i32) -> i32 {
    %c0_i32 = arith.constant 0 : i32
    %c0_i32_0 = arith.constant 0 : i32
    return %c0_i32 : i32
  }
  func.func @transform_3(%arg0: i32) -> i32 {
    %c0_i32 = arith.constant 0 : i32
    %c0_i32_0 = arith.constant 0 : i32
    return %c0_i32 : i32
  }
  func.func @transform_4(%arg0: i32) -> i32 {
    %c0_i32 = arith.constant 0 : i32
    %c0_i32_0 = arith.constant 0 : i32
    return %c0_i32 : i32
  }
  func.func @transform_5(%arg0: i32) -> (i32, i32, i32, i32) {
    %c0_i32 = arith.constant 0 : i32
    %c0_i32_0 = arith.constant 0 : i32
    %c0_i32_1 = arith.constant 0 : i32
    %c0_i32_2 = arith.constant 0 : i32
    return %c0_i32, %c0_i32_0, %c0_i32_1, %arg0 : i32, i32, i32, i32
  }
}

</mosaic_0001>

<bundles_post_ra>
// kernel: magnet_detector_forward.1
= control target key start
LH: loop header
LB: loop body
LE: loop exit
PB: predicated region body
PF: predicated region fallthrough
CT: control target
= control target key end

     0   :  { %10 = vsyncpa [#allocation4], 0  ;;  %s4457_s0 = inlined_call_operand.vmem [shape: f32[3,18,18,128], index: 0, kind: input, shape index: {}]   ;;  %s4458_s1 = inlined_call_operand.vmem [shape: f32[81], index: 1, kind: input, shape index: {}]   ;;  %s4459_s2 = inlined_call_operand.vmem [shape: f32[3], index: 2, kind: input, shape index: {}]   ;;  %s4460_s3 = inlined_call_operand.vmem [shape: f32[81], index: 3, kind: input, shape index: {}]   ;;  %s4461_s4 = inlined_call_operand.vmem [shape: f32[3], index: 4, kind: input, shape index: {}]   ;;  %s4462_s5 = inlined_call_operand.vmem [shape: f32[3,16,16,128], index: 5, kind: output, shape index: {}]  }
   0x1   :  { %11 = vsyncpa [#allocation6], 0  ;;  %s31_s20 = sshll.u32 %s4459_s2, 4  ;;  %s32_s20 = int_to_ptr.vmem [resolvable:$true] %s31_s20 }
   0x2   :  { %12 = vsyncpa [#allocation9], 0  ;;  %s21_s23 = sshll.u32 %s4458_s1, 4  ;;  %s2885_s24 = scalar_lea.vmem %s32_s20, 16  ;;  %s22_s23 = int_to_ptr.vmem [resolvable:$true] %s21_s23 }
   0x3   :  { %p2886_p0 = scmp.ne.s32.totalorder %s32_s20, %s2885_s24  ;;  %p2890_p1 = scmp.lt.s32.totalorder %s32_s20, %s32_s20 }
   0x4   :  { %p2891_p2 = scmp.lt.s32.totalorder %s2885_s24, %s2885_s24 }
   0x6   :  { %p2892_p3 = por %p2891_p2, %p2890_p1 }
   0x8   :  { %p2893_p4 = pnand %p2892_p3, %p2886_p0 }
   0xa   :  { %2896 = shalt.err (!%p2893_p4)
}
   0xb   :  { %s2955_s25 = smov [#allocation5]   ;;  %s2897_s26 = scalar_lea.vmem %s22_s23, 16 }
   0xc   :  { %34 = dma.vmem_to_smem %s32_s20, 16, %s2955_s25, [#allocation6]  }
   0xd   :  { %p2898_p5 = scmp.ne.s32.totalorder %s22_s23, %s2897_s26  ;;  %p2902_p6 = scmp.lt.s32.totalorder %s22_s23, %s22_s23 }
   0xe   :  { %p2903_p7 = scmp.lt.s32.totalorder %s2897_s26, %s2897_s26 }
  0x10   :  { %p2904_p8 = por %p2903_p7, %p2902_p6 }
  0x12   :  { %p2905_p9 = pnand %p2904_p8, %p2898_p5 }
  0x14   :  { %2908 = shalt.err (!%p2905_p9)
}
  0x15   :  { %s2956_s2 = smov [#allocation3]   ;;  %s41_s28 = sshll.u32 %s4460_s3, 4  ;;  %s42_s28 = int_to_ptr.vmem [resolvable:$true] %s41_s28 }
  0x16   :  { %24 = dma.vmem_to_smem %s22_s23, 16, %s2956_s2, [#allocation4]  }
  0x17   :  { %s51_s6 = sshll.u32 %s4461_s4, 4  ;;  %s2909_s7 = scalar_lea.vmem %s42_s28, 16  ;;  %s52_s6 = int_to_ptr.vmem [resolvable:$true] %s51_s6 }
  0x18   :  { %p2910_p10 = scmp.ne.s32.totalorder %s42_s28, %s2909_s7  ;;  %p2914_p11 = scmp.lt.s32.totalorder %s42_s28, %s42_s28 }
  0x19   :  { %p2915_p12 = scmp.lt.s32.totalorder %s2909_s7, %s2909_s7 }
  0x1b   :  { %p2916_p13 = por %p2915_p12, %p2914_p11 }
  0x1d   :  { %p2917_p0 = pnand %p2916_p13, %p2910_p10 }
  0x1f   :  { %2920 = shalt.err (!%p2917_p0)
}
  0x20   :  { %s2957_s8 = smov [#allocation7]   ;;  %s2921_s9 = scalar_lea.vmem %s52_s6, 16 }
  0x21   :  { %44 = dma.vmem_to_smem %s42_s28, 16, %s2957_s8, [#allocation6]  }
  0x22   :  { %p2922_p1 = scmp.ne.s32.totalorder %s52_s6, %s2921_s9  ;;  %p2926_p2 = scmp.lt.s32.totalorder %s52_s6, %s52_s6 }
  0x23   :  { %p2927_p3 = scmp.lt.s32.totalorder %s2921_s9, %s2921_s9 }
  0x25   :  { %p2928_p4 = por %p2927_p3, %p2926_p2 }
  0x27   :  { %p2929_p5 = pnand %p2928_p4, %p2922_p1 }
  0x29   :  { %2932 = shalt.err (!%p2929_p5)
}
  0x2a   :  { %s2958_s3 = smov [#allocation8]  }
  0x2b   :  { %54 = dma.vmem_to_smem %s52_s6, 16, %s2958_s3, [#allocation9]  }
  0x2c   :  { %2941 = dma.done.wait [#allocation4], 16  }
  0x2d   :  { %2942 = vsyncadd [#allocation4], 4294967280 }
  0x2e   :  { %2943 = dma.done.wait [#allocation6], 32  }
  0x2f   :  { %2944 = vsyncadd [#allocation6], 4294967264 }
  0x30   :  { %2945 = dma.done.wait [#allocation9], 16  }
  0x31   :  { %2946 = vsyncadd [#allocation9], 4294967280 }
  0x32   :  { %67 = sfence }
  0x33   :  { %s3002_s4 = sld [smem:[#allocation5]]  ;;  %s3004_s10 = sld [smem:[#allocation5 + $0x1]]  ;;  %v2959_v0 = vmov 0.0  }
  0x34   :  { %68 = vst [vmem:[#allocation2] sm:$0xff] %v2959_v0  ;;  %69 = vst [vmem:[#allocation2 + $0x8] sm:$0xff] %v2959_v0  ;;  %s3120_s11 = sld [smem:[#allocation5 + $0x2]]  ;;  %s3122_s12 = sld [smem:[#allocation8]] }
  0x35   :  { %70 = vst [vmem:[#allocation2 + $0x10] sm:$0x3] %v2959_v0  ;;  %72 = vst [vmem:[#allocation2 + $0x198] sm:$0xff] %v2959_v0  ;;  %s3124_s13 = sld [smem:[#allocation8 + $0x1]]  ;;  %s3126_s14 = sld [smem:[#allocation8 + $0x2]] }
  0x36   :  { %73 = vst [vmem:[#allocation2 + $0x1a0] sm:$0xff] %v2959_v0  ;;  %74 = vst [vmem:[#allocation2 + $0x1a8] sm:$0x3] %v2959_v0  ;;  %s3134_s15 = smov 0  }
  0x37   :  { %76 = vst [vmem:[#allocation2 + $0x18] sm:$0x1] %v2959_v0  ;;  %77 = vst [vmem:[#allocation2 + $0x30] sm:$0x1] %v2959_v0 }
  0x38   :  { %78 = vst [vmem:[#allocation2 + $0x48] sm:$0x1] %v2959_v0  ;;  %79 = vst [vmem:[#allocation2 + $0x60] sm:$0x1] %v2959_v0 }
  0x39   :  { %80 = vst [vmem:[#allocation2 + $0x78] sm:$0x1] %v2959_v0  ;;  %81 = vst [vmem:[#allocation2 + $0x90] sm:$0x1] %v2959_v0  ;;  %v191_v1 = vstv %s3002_s4  ;;  %v193_v2 = vstv %s3004_s10 }
  0x3a   :  { %82 = vst [vmem:[#allocation2 + $0xa8] sm:$0x1] %v2959_v0  ;;  %83 = vst [vmem:[#allocation2 + $0xc0] sm:$0x1] %v2959_v0  ;;  %v195_v3 = vstv %s3120_s11  ;;  %v197_v4 = vstv %s3122_s12 }
  0x3b   :  { %84 = vst [vmem:[#allocation2 + $0xd8] sm:$0x1] %v2959_v0  ;;  %85 = vst [vmem:[#allocation2 + $0xf0] sm:$0x1] %v2959_v0  ;;  %v199_v5 = vstv %s3124_s13  ;;  %v201_v6 = vstv %s3126_s14 }
  0x3c   :  { %86 = vst [vmem:[#allocation2 + $0x108] sm:$0x1] %v2959_v0  ;;  %87 = vst [vmem:[#allocation2 + $0x120] sm:$0x1] %v2959_v0 }
  0x3d   :  { %88 = vst [vmem:[#allocation2 + $0x138] sm:$0x1] %v2959_v0  ;;  %89 = vst [vmem:[#allocation2 + $0x150] sm:$0x1] %v2959_v0 }
  0x3e   :  { %90 = vst [vmem:[#allocation2 + $0x168] sm:$0x1] %v2959_v0  ;;  %91 = vst [vmem:[#allocation2 + $0x180] sm:$0x1] %v2959_v0 }
  0x3f   :  { %92 = vst [vmem:[#allocation2 + $0x29] sm:$0x1] %v2959_v0  ;;  %93 = vst [vmem:[#allocation2 + $0x41] sm:$0x1] %v2959_v0 }
  0x40   :  { %94 = vst [vmem:[#allocation2 + $0x59] sm:$0x1] %v2959_v0  ;;  %95 = vst [vmem:[#allocation2 + $0x71] sm:$0x1] %v2959_v0 }
  0x41   :  { %96 = vst [vmem:[#allocation2 + $0x89] sm:$0x1] %v2959_v0  ;;  %97 = vst [vmem:[#allocation2 + $0xa1] sm:$0x1] %v2959_v0 }
  0x42   :  { %98 = vst [vmem:[#allocation2 + $0xb9] sm:$0x1] %v2959_v0  ;;  %99 = vst [vmem:[#allocation2 + $0xd1] sm:$0x1] %v2959_v0 }
  0x43   :  { %100 = vst [vmem:[#allocation2 + $0xe9] sm:$0x1] %v2959_v0  ;;  %101 = vst [vmem:[#allocation2 + $0x101] sm:$0x1] %v2959_v0 }
  0x44   :  { %102 = vst [vmem:[#allocation2 + $0x119] sm:$0x1] %v2959_v0  ;;  %103 = vst [vmem:[#allocation2 + $0x131] sm:$0x1] %v2959_v0 }
  0x45   :  { %104 = vst [vmem:[#allocation2 + $0x149] sm:$0x1] %v2959_v0  ;;  %105 = vst [vmem:[#allocation2 + $0x161] sm:$0x1] %v2959_v0 }
  0x46   :  { %106 = vst [vmem:[#allocation2 + $0x179] sm:$0x1] %v2959_v0  ;;  %107 = vst [vmem:[#allocation2 + $0x191] sm:$0x1] %v2959_v0 }
  0x47   :  { %109 = vst [vmem:[#allocation2 + $0x1b0] sm:$0xff] %v2959_v0  ;;  %110 = vst [vmem:[#allocation2 + $0x1b8] sm:$0xff] %v2959_v0 }
  0x48   :  { %111 = vst [vmem:[#allocation2 + $0x1c0] sm:$0x3] %v2959_v0  ;;  %113 = vst [vmem:[#allocation2 + $0x348] sm:$0xff] %v2959_v0 }
  0x49   :  { %114 = vst [vmem:[#allocation2 + $0x350] sm:$0xff] %v2959_v0  ;;  %115 = vst [vmem:[#allocation2 + $0x358] sm:$0x3] %v2959_v0 }
  0x4a   :  { %117 = vst [vmem:[#allocation2 + $0x1c8] sm:$0x1] %v2959_v0  ;;  %118 = vst [vmem:[#allocation2 + $0x1e0] sm:$0x1] %v2959_v0 }
  0x4b   :  { %119 = vst [vmem:[#allocation2 + $0x1f8] sm:$0x1] %v2959_v0  ;;  %120 = vst [vmem:[#allocation2 + $0x210] sm:$0x1] %v2959_v0 }
  0x4c   :  { %121 = vst [vmem:[#allocation2 + $0x228] sm:$0x1] %v2959_v0  ;;  %122 = vst [vmem:[#allocation2 + $0x240] sm:$0x1] %v2959_v0 }
  0x4d   :  { %123 = vst [vmem:[#allocation2 + $0x258] sm:$0x1] %v2959_v0  ;;  %124 = vst [vmem:[#allocation2 + $0x270] sm:$0x1] %v2959_v0 }
  0x4e   :  { %125 = vst [vmem:[#allocation2 + $0x288] sm:$0x1] %v2959_v0  ;;  %126 = vst [vmem:[#allocation2 + $0x2a0] sm:$0x1] %v2959_v0 }
  0x4f   :  { %127 = vst [vmem:[#allocation2 + $0x2b8] sm:$0x1] %v2959_v0  ;;  %128 = vst [vmem:[#allocation2 + $0x2d0] sm:$0x1] %v2959_v0 }
  0x50   :  { %129 = vst [vmem:[#allocation2 + $0x2e8] sm:$0x1] %v2959_v0  ;;  %130 = vst [vmem:[#allocation2 + $0x300] sm:$0x1] %v2959_v0 }
  0x51   :  { %131 = vst [vmem:[#allocation2 + $0x318] sm:$0x1] %v2959_v0  ;;  %132 = vst [vmem:[#allocation2 + $0x330] sm:$0x1] %v2959_v0 }
  0x52   :  { %133 = vst [vmem:[#allocation2 + $0x1d9] sm:$0x1] %v2959_v0  ;;  %134 = vst [vmem:[#allocation2 + $0x1f1] sm:$0x1] %v2959_v0 }
  0x53   :  { %135 = vst [vmem:[#allocation2 + $0x209] sm:$0x1] %v2959_v0  ;;  %136 = vst [vmem:[#allocation2 + $0x221] sm:$0x1] %v2959_v0 }
  0x54   :  { %137 = vst [vmem:[#allocation2 + $0x239] sm:$0x1] %v2959_v0  ;;  %138 = vst [vmem:[#allocation2 + $0x251] sm:$0x1] %v2959_v0 }
  0x55   :  { %139 = vst [vmem:[#allocation2 + $0x269] sm:$0x1] %v2959_v0  ;;  %140 = vst [vmem:[#allocation2 + $0x281] sm:$0x1] %v2959_v0 }
  0x56   :  { %141 = vst [vmem:[#allocation2 + $0x299] sm:$0x1] %v2959_v0  ;;  %142 = vst [vmem:[#allocation2 + $0x2b1] sm:$0x1] %v2959_v0 }
  0x57   :  { %143 = vst [vmem:[#allocation2 + $0x2c9] sm:$0x1] %v2959_v0  ;;  %144 = vst [vmem:[#allocation2 + $0x2e1] sm:$0x1] %v2959_v0 }
  0x58   :  { %145 = vst [vmem:[#allocation2 + $0x2f9] sm:$0x1] %v2959_v0  ;;  %146 = vst [vmem:[#allocation2 + $0x311] sm:$0x1] %v2959_v0 }
  0x59   :  { %147 = vst [vmem:[#allocation2 + $0x329] sm:$0x1] %v2959_v0  ;;  %148 = vst [vmem:[#allocation2 + $0x341] sm:$0x1] %v2959_v0 }
  0x5a   :  { %150 = vst [vmem:[#allocation2 + $0x360] sm:$0xff] %v2959_v0  ;;  %151 = vst [vmem:[#allocation2 + $0x368] sm:$0xff] %v2959_v0 }
  0x5b   :  { %152 = vst [vmem:[#allocation2 + $0x370] sm:$0x3] %v2959_v0  ;;  %154 = vst [vmem:[#allocation2 + $0x4f8] sm:$0xff] %v2959_v0 }
  0x5c   :  { %155 = vst [vmem:[#allocation2 + $0x500] sm:$0xff] %v2959_v0  ;;  %156 = vst [vmem:[#allocation2 + $0x508] sm:$0x3] %v2959_v0 }
  0x5d   :  { %158 = vst [vmem:[#allocation2 + $0x378] sm:$0x1] %v2959_v0  ;;  %159 = vst [vmem:[#allocation2 + $0x390] sm:$0x1] %v2959_v0 }
  0x5e   :  { %160 = vst [vmem:[#allocation2 + $0x3a8] sm:$0x1] %v2959_v0  ;;  %161 = vst [vmem:[#allocation2 + $0x3c0] sm:$0x1] %v2959_v0 }
  0x5f   :  { %162 = vst [vmem:[#allocation2 + $0x3d8] sm:$0x1] %v2959_v0  ;;  %163 = vst [vmem:[#allocation2 + $0x3f0] sm:$0x1] %v2959_v0 }
  0x60   :  { %164 = vst [vmem:[#allocation2 + $0x408] sm:$0x1] %v2959_v0  ;;  %165 = vst [vmem:[#allocation2 + $0x420] sm:$0x1] %v2959_v0 }
  0x61   :  { %166 = vst [vmem:[#allocation2 + $0x438] sm:$0x1] %v2959_v0  ;;  %167 = vst [vmem:[#allocation2 + $0x450] sm:$0x1] %v2959_v0 }
  0x62   :  { %168 = vst [vmem:[#allocation2 + $0x468] sm:$0x1] %v2959_v0  ;;  %169 = vst [vmem:[#allocation2 + $0x480] sm:$0x1] %v2959_v0 }
  0x63   :  { %170 = vst [vmem:[#allocation2 + $0x498] sm:$0x1] %v2959_v0  ;;  %171 = vst [vmem:[#allocation2 + $0x4b0] sm:$0x1] %v2959_v0 }
  0x64   :  { %172 = vst [vmem:[#allocation2 + $0x4c8] sm:$0x1] %v2959_v0  ;;  %173 = vst [vmem:[#allocation2 + $0x4e0] sm:$0x1] %v2959_v0 }
  0x65   :  { %174 = vst [vmem:[#allocation2 + $0x389] sm:$0x1] %v2959_v0  ;;  %175 = vst [vmem:[#allocation2 + $0x3a1] sm:$0x1] %v2959_v0 }
  0x66   :  { %176 = vst [vmem:[#allocation2 + $0x3b9] sm:$0x1] %v2959_v0  ;;  %177 = vst [vmem:[#allocation2 + $0x3d1] sm:$0x1] %v2959_v0 }
  0x67   :  { %178 = vst [vmem:[#allocation2 + $0x3e9] sm:$0x1] %v2959_v0  ;;  %179 = vst [vmem:[#allocation2 + $0x401] sm:$0x1] %v2959_v0 }
  0x68   :  { %180 = vst [vmem:[#allocation2 + $0x419] sm:$0x1] %v2959_v0  ;;  %181 = vst [vmem:[#allocation2 + $0x431] sm:$0x1] %v2959_v0 }
  0x69   :  { %182 = vst [vmem:[#allocation2 + $0x449] sm:$0x1] %v2959_v0  ;;  %183 = vst [vmem:[#allocation2 + $0x461] sm:$0x1] %v2959_v0 }
  0x6a   :  { %184 = vst [vmem:[#allocation2 + $0x479] sm:$0x1] %v2959_v0  ;;  %185 = vst [vmem:[#allocation2 + $0x491] sm:$0x1] %v2959_v0 }
  0x6b   :  { %186 = vst [vmem:[#allocation2 + $0x4a9] sm:$0x1] %v2959_v0  ;;  %187 = vst [vmem:[#allocation2 + $0x4c1] sm:$0x1] %v2959_v0 }
  0x6c   :  { %188 = vst [vmem:[#allocation2 + $0x4d9] sm:$0x1] %v2959_v0  ;;  %189 = vst [vmem:[#allocation2 + $0x4f1] sm:$0x1] %v2959_v0 }
  0x6d LB: > { %s213_s16 = sld [smem:[#allocation3]]  ;;  %s2619_s17 = sld [smem:[#allocation3 + $0x1b]]  ;;  %vm239_vm0 = vcmask 1046528   ;;  %vm291_vm1 = vcmask 1045504   ;;  %s2949_s15 = sphi %s3134_s15, %s207_s15  }
  0x6e   : > { %s208_s18 = smul.u32 24, %s2949_s15  ;;  %s2620_s19 = sld [smem:[#allocation3 + $0x36]] }
  0x6f   : > { %s2621_s20 = sld [smem:[#allocation3 + $0x1]]  ;;  %s2622_s21 = sld [smem:[#allocation3 + $0x1c]] }
  0x70   : > { %s3145_s24 = scalar_lea.vmem %s4457_s0, %s208_s18  ;;  %s3153_s25 = sld [smem:[#allocation3 + $0x37]] }
  0x71   : > { %v3148_v7 = vld [vmem:[%s3145_s24] sm:$0xff]  ;;  %v3151_v8 = vld [vmem:[%s3145_s24 + $0x8] sm:$0xff]  ;;  %s3155_s26 = sld [smem:[#allocation3 + $0x2]]  ;;  %v3162_v16 = vld [vmem:[%s3145_s24 + $0x10] sm:$0x3]  ;;  %s3174_s2 = sld [smem:[#allocation3 + $0x1d]] }
  0x72   : > { %s3182_s1 = sld [smem:[#allocation3 + $0x38]]  ;;  %s3184_s27 = sld [smem:[#allocation3 + $0x3]] }
  0x73   : > { %v214_v9 = vstv %s213_s16  ;;  %v220_v12 = vstv %s2619_s17  ;;  %s3201_s28 = sld [smem:[#allocation3 + $0x1e]]  ;;  %s3210_s29 = sld [smem:[#allocation3 + $0x39]] }
  0x74   : > { %v215_v10 = vmul.f32 %v214_v9, %v3148_v7  ;;  %v216_v11 = vmul.f32 %v214_v9, %v3151_v8  ;;  %v221_v13 = vmul.f32 %v220_v12, %v3148_v7  ;;  %v222_v14 = vmul.f32 %v220_v12, %v3151_v8  ;;  %s3212_s30 = sld [smem:[#allocation3 + $0x4]]  ;;  %s3226_s6 = sld [smem:[#allocation3 + $0x1f]] }
  0x75   : > { %v226_v15 = vstv %s2620_s19  ;;  %v232_v23 = vstv %s2621_s20  ;;  %v250_v24 = vstv %s2622_s21  ;;  %s3231_s7 = sld [smem:[#allocation3 + $0x3a]]  ;;  %s3236_s8 = sld [smem:[#allocation3 + $0x5]] }
  0x76   : > { %v217_v17 = vadd.f32 %v215_v10, %v191_v1  ;;  %v218_v18 = vadd.f32 %v216_v11, %v191_v1  ;;  %v227_v19 = vmul.f32 %v226_v15, %v3148_v7  ;;  %v228_v20 = vmul.f32 %v226_v15, %v3151_v8  ;;  %s3238_s9 = sld [smem:[#allocation3 + $0x20]]  ;;  %s3263_s3 = sld [smem:[#allocation3 + $0x3b]] }
  0x77   : > { %v223_v21 = vadd.f32 %v221_v13, %v193_v2  ;;  %v224_v22 = vadd.f32 %v222_v14, %v193_v2  ;;  %v233_v27 = vmul.f32 %v232_v23, %v3148_v7  ;;  %v234_v28 = vmul.f32 %v232_v23, %v3151_v8  ;;  %s3265_s16 = sld [smem:[#allocation3 + $0x6]]  ;;  %s3273_s17 = sld [smem:[#allocation3 + $0x21]] }
  0x78   : > { %v229_v25 = vadd.f32 %v227_v19, %v195_v3  ;;  %v230_v26 = vadd.f32 %v228_v20, %v195_v3  ;;  %v235_v29 = vmul.f32 %v232_v23, %v3162_v16  ;;  %v251_v30 = vmul.f32 %v250_v24, %v3148_v7  ;;  %v3222_v19 = vld [vmem:[%s3145_s24 + $0x20] sm:$0xff]  ;;  %s3281_s19 = sld [smem:[#allocation3 + $0x3c]]  ;;  %s3284_s20 = sld [smem:[#allocation3 + $0x7]] }
  0x79   : > { %v252_v31 = vmul.f32 %v250_v24, %v3151_v8  ;;  %v253_v32 = vmul.f32 %v250_v24, %v3162_v16  ;;  %v240_v33 = vrot.slane %v233_v27, 1  ;;  %v241_v34 = vrot.slane %v234_v28, 1  ;;  %s3296_s21 = sld [smem:[#allocation3 + $0x22]]  ;;  %s3300_s22 = sld [smem:[#allocation3 + $0x3d]] }
  0x7a   : > { %v267_v35 = vstv %s3153_s25  ;;  %v284_v36 = vstv %s3155_s26  ;;  %v243_v37 = vrot.slane %v235_v29, 1  ;;  %v257_v38 = vrot.slane %v251_v30, 1  ;;  %s3302_s23 = sld [smem:[#allocation3 + $0x8]]  ;;  %s3327_s25 = sld [smem:[#allocation3 + $0x23]] }
  0x7b   : > { %v258_v39 = vrot.slane %v252_v31, 1  ;;  %v260_v40 = vrot.slane %v253_v32, 1  ;;  %v242_v41 = vsel %vm239_vm0, %v240_v33, %v241_v34  ;;  %v268_v42 = vmul.f32 %v267_v35, %v3148_v7  ;;  %s3329_s26 = sld [smem:[#allocation3 + $0x3e]]  ;;  %s207_s15 = sadd.s32 1, %s2949_s15  }
  0x7c   : > { %v269_v43 = vmul.f32 %v267_v35, %v3151_v8  ;;  %v270_v44 = vmul.f32 %v267_v35, %v3162_v16  ;;  %v244_v45 = vsel %vm239_vm0, %v241_v34, %v243_v37  ;;  %v247_v46 = vadd.f32 %v242_v41, %v217_v17  ;;  %p204_p6 = scmp.ge.s32.totalorder %s207_s15, 16  }
  0x7d   : > { %v259_v47 = vsel %vm239_vm0, %v257_v38, %v258_v39  ;;  %v261_v48 = vsel %vm239_vm0, %v258_v39, %v260_v40  ;;  %v248_v49 = vadd.f32 %v244_v45, %v218_v18  ;;  %v274_v52 = vrot.slane %v268_v42, 1  ;;  %v3219_v18 = vld [vmem:[%s3145_s24 + $0x18] sm:$0xff]  ;;  %v3243_v39 = vld [vmem:[%s3145_s24 + $0x28] sm:$0x3] }
  0x7e   : > { %v264_v50 = vadd.f32 %v259_v47, %v223_v21  ;;  %v265_v51 = vadd.f32 %v261_v48, %v224_v22  ;;  %v275_v53 = vrot.slane %v269_v43, 1  ;;  %v277_v54 = vrot.slane %v270_v44, 1 }
  0x7f   : > { %v285_v55 = vmul.f32 %v284_v36, %v3148_v7  ;;  %v286_v56 = vmul.f32 %v284_v36, %v3151_v8  ;;  %v287_v57 = vmul.f32 %v284_v36, %v3162_v16  ;;  %v302_v58 = vstv %s3174_s2  ;;  %s3339_s2 = sld [smem:[#allocation3 + $0x9]] }
  0x80   : > { %v319_v59 = vstv %s3182_s1  ;;  %v342_v60 = vstv %s3184_s27  ;;  %v276_v61 = vsel %vm239_vm0, %v274_v52, %v275_v53  ;;  %v278_v62 = vsel %vm239_vm0, %v275_v53, %v277_v54  ;;  %s3345_s1 = sld [smem:[#allocation3 + $0x24]]  ;;  %s3347_s27 = sld [smem:[#allocation3 + $0x3f]] }
  0x81   : > { %v292_v63 = vrot.slane %v285_v55, 2  ;;  %v293_v0 = vrot.slane %v286_v56, 2  ;;  %v281_v9 = vadd.f32 %v276_v61, %v229_v25  ;;  %v282_v10 = vadd.f32 %v278_v62, %v230_v26 }
  0x82   : > { %v295_v11 = vrot.slane %v287_v57, 2  ;;  %v303_v12 = vmul.f32 %v302_v58, %v3148_v7  ;;  %v304_v14 = vmul.f32 %v302_v58, %v3151_v8  ;;  %v305_v15 = vmul.f32 %v302_v58, %v3162_v16 }
  0x83   : > { %v294_v13 = vsel %vm291_vm1, %v292_v63, %v293_v0  ;;  %v320_v17 = vmul.f32 %v319_v59, %v3148_v7  ;;  %v321_v23 = vmul.f32 %v319_v59, %v3151_v8  ;;  %v322_v27 = vmul.f32 %v319_v59, %v3162_v16 }
  0x84   : > { %v296_v20 = vsel %vm291_vm1, %v293_v0, %v295_v11  ;;  %v299_v21 = vadd.f32 %v294_v13, %v247_v46  ;;  %v309_v22 = vrot.slane %v303_v12, 2  ;;  %v310_v25 = vrot.slane %v304_v14, 2 }
  0x85   : > { %v300_v24 = vadd.f32 %v296_v20, %v248_v49  ;;  %v312_v26 = vrot.slane %v305_v15, 2  ;;  %v326_v28 = vrot.slane %v320_v17, 2  ;;  %v327_v7 = vrot.slane %v321_v23, 2 }
  0x86   : > { %v343_v29 = vmul.f32 %v3219_v18, %v342_v60  ;;  %v344_v30 = vmul.f32 %v3222_v19, %v342_v60  ;;  %v311_v31 = vsel %vm291_vm1, %v309_v22, %v310_v25  ;;  %v329_v32 = vrot.slane %v322_v27, 2 }
  0x87   : > { %v313_v8 = vsel %vm291_vm1, %v310_v25, %v312_v26  ;;  %v348_v33 = vstv %s3201_s28  ;;  %v316_v16 = vadd.f32 %v311_v31, %v264_v50  ;;  %v328_v35 = vsel %vm291_vm1, %v326_v28, %v327_v7  ;;  %s3358_s28 = sld [smem:[#allocation3 + $0xa]] }
  0x88   : > { %v317_v34 = vadd.f32 %v313_v8, %v265_v51  ;;  %v345_v36 = vadd.f32 %v343_v29, %v299_v21  ;;  %v330_v37 = vsel %vm291_vm1, %v327_v7, %v329_v32  ;;  %v333_v38 = vadd.f32 %v328_v35, %v281_v9 }
  0x89   : > { %v346_v40 = vadd.f32 %v344_v30, %v300_v24  ;;  %v349_v41 = vmul.f32 %v3219_v18, %v348_v33  ;;  %v334_v42 = vadd.f32 %v330_v37, %v282_v10  ;;  %v350_v43 = vmul.f32 %v3222_v19, %v348_v33 }
  0x8a   : > { %v354_v44 = vstv %s3210_s29  ;;  %v360_v45 = vstv %s3212_s30  ;;  %v377_v53 = vstv %s3226_s6  ;;  %v394_v63 = vstv %s3231_s7  ;;  %s3360_s29 = sld [smem:[#allocation3 + $0x25]]  ;;  %s3369_s30 = sld [smem:[#allocation3 + $0x40]] }
  0x8b   : > { %v351_v46 = vadd.f32 %v349_v41, %v316_v16  ;;  %v355_v47 = vmul.f32 %v3219_v18, %v354_v44  ;;  %v356_v48 = vmul.f32 %v3222_v19, %v354_v44  ;;  %v361_v49 = vmul.f32 %v3219_v18, %v360_v45  ;;  %s3392_s6 = sld [smem:[#allocation3 + $0xb]]  ;;  %s3394_s7 = sld [smem:[#allocation3 + $0x26]] }
  0x8c   : > { %v352_v50 = vadd.f32 %v350_v43, %v317_v34  ;;  %v362_v51 = vmul.f32 %v3222_v19, %v360_v45  ;;  %v363_v52 = vmul.f32 %v3243_v39, %v360_v45  ;;  %v378_v57 = vmul.f32 %v3219_v18, %v377_v53 }
  0x8d   : > { %v357_v54 = vadd.f32 %v355_v47, %v333_v38  ;;  %v358_v55 = vadd.f32 %v356_v48, %v334_v42  ;;  %v367_v56 = vrot.slane %v361_v49, 1  ;;  %v379_v60 = vmul.f32 %v3222_v19, %v377_v53  ;;  %v3293_v47 = vld [vmem:[%s3145_s24 + $0x38] sm:$0xff] }
  0x8e   : > { %v368_v58 = vrot.slane %v362_v51, 1  ;;  %v370_v59 = vrot.slane %v363_v52, 1  ;;  %v380_v61 = vmul.f32 %v3243_v39, %v377_v53  ;;  %v384_v62 = vrot.slane %v378_v57, 1 }
  0x8f   : > { %v411_v0 = vstv %s3236_s8  ;;  %v428_v9 = vstv %s3238_s9  ;;  %v385_v12 = vrot.slane %v379_v60, 1  ;;  %v395_v17 = vmul.f32 %v3219_v18, %v394_v63  ;;  %s3396_s8 = sld [smem:[#allocation3 + $0x41]]  ;;  %s3398_s9 = sld [smem:[#allocation3 + $0xc]] }
  0x90   : > { %v369_v10 = vsel %vm239_vm0, %v367_v56, %v368_v58  ;;  %v371_v11 = vsel %vm239_vm0, %v368_v58, %v370_v59  ;;  %v387_v13 = vrot.slane %v380_v61, 1  ;;  %v396_v20 = vmul.f32 %v3222_v19, %v394_v63 }
  0x91   : > { %v374_v14 = vadd.f32 %v369_v10, %v345_v36  ;;  %v375_v15 = vadd.f32 %v371_v11, %v346_v40  ;;  %v386_v21 = vsel %vm239_vm0, %v384_v62, %v385_v12  ;;  %v397_v23 = vmul.f32 %v3243_v39, %v394_v63  ;;  %v3313_v10 = vld [vmem:[%s3145_s24 + $0x40] sm:$0x3] }
  0x92   : > { %v388_v22 = vsel %vm239_vm0, %v385_v12, %v387_v13  ;;  %v412_v24 = vmul.f32 %v3219_v18, %v411_v0  ;;  %v391_v25 = vadd.f32 %v386_v21, %v351_v46  ;;  %v401_v27 = vrot.slane %v395_v17, 1  ;;  %v3290_v46 = vld [vmem:[%s3145_s24 + $0x30] sm:$0xff] }
  0x93   : > { %v392_v26 = vadd.f32 %v388_v22, %v352_v50  ;;  %v402_v28 = vrot.slane %v396_v20, 1  ;;  %v404_v7 = vrot.slane %v397_v23, 1  ;;  %v413_v29 = vmul.f32 %v3222_v19, %v411_v0 }
  0x94   : > { %v414_v30 = vmul.f32 %v3243_v39, %v411_v0  ;;  %v418_v31 = vrot.slane %v412_v24, 2  ;;  %v429_v32 = vmul.f32 %v3219_v18, %v428_v9  ;;  %v430_v33 = vmul.f32 %v3222_v19, %v428_v9 }
  0x95   : > { %v403_v8 = vsel %vm239_vm0, %v401_v27, %v402_v28  ;;  %v431_v16 = vmul.f32 %v3243_v39, %v428_v9  ;;  %v405_v34 = vsel %vm239_vm0, %v402_v28, %v404_v7  ;;  %v419_v36 = vrot.slane %v413_v29, 2 }
  0x96   : > { %v408_v35 = vadd.f32 %v403_v8, %v357_v54  ;;  %v421_v37 = vrot.slane %v414_v30, 2  ;;  %v409_v38 = vadd.f32 %v405_v34, %v358_v55  ;;  %v435_v40 = vrot.slane %v429_v32, 2 }
  0x97   : > { %v436_v41 = vrot.slane %v430_v33, 2  ;;  %v438_v42 = vrot.slane %v431_v16, 2  ;;  %v420_v43 = vsel %vm291_vm1, %v418_v31, %v419_v36  ;;  %v445_v45 = vstv %s3263_s3  ;;  %s3422_s3 = sld [smem:[#allocation3 + $0x27]] }
  0x98   : > { %v422_v44 = vsel %vm291_vm1, %v419_v36, %v421_v37  ;;  %v468_v48 = vstv %s3265_s16  ;;  %v425_v49 = vadd.f32 %v420_v43, %v374_v14  ;;  %v446_v55 = vmul.f32 %v3219_v18, %v445_v45  ;;  %s3426_s16 = sld [smem:[#allocation3 + $0x42]] }
  0x99   : > { %v426_v50 = vadd.f32 %v422_v44, %v375_v15  ;;  %v437_v51 = vsel %vm291_vm1, %v435_v40, %v436_v41  ;;  %v439_v52 = vsel %vm291_vm1, %v436_v41, %v438_v42  ;;  %v447_v56 = vmul.f32 %v3222_v19, %v445_v45 }
  0x9a   : > { %v442_v53 = vadd.f32 %v437_v51, %v391_v25  ;;  %v443_v54 = vadd.f32 %v439_v52, %v392_v26  ;;  %v448_v57 = vmul.f32 %v3243_v39, %v445_v45  ;;  %v469_v58 = vmul.f32 %v3290_v46, %v468_v48 }
  0x9b   : > { %v470_v59 = vmul.f32 %v3293_v47, %v468_v48  ;;  %v474_v60 = vstv %s3273_s17  ;;  %v452_v61 = vrot.slane %v446_v55, 2  ;;  %v453_v62 = vrot.slane %v447_v56, 2  ;;  %s3430_s17 = sld [smem:[#allocation3 + $0xd]] }
  0x9c   : > { %v475_v63 = vmul.f32 %v3290_v46, %v474_v60  ;;  %v476_v0 = vmul.f32 %v3293_v47, %v474_v60  ;;  %v455_v9 = vrot.slane %v448_v57, 2  ;;  %v471_v18 = vadd.f32 %v469_v58, %v425_v49 }
  0x9d   : > { %v472_v19 = vadd.f32 %v470_v59, %v426_v50  ;;  %v480_v39 = vstv %s3281_s19  ;;  %v454_v11 = vsel %vm291_vm1, %v452_v61, %v453_v62  ;;  %v486_v21 = vstv %s3284_s20  ;;  %s3432_s19 = sld [smem:[#allocation3 + $0x28]]  ;;  %s3449_s20 = sld [smem:[#allocation3 + $0x43]] }
  0x9e   : > { %v477_v12 = vadd.f32 %v475_v63, %v442_v53  ;;  %v478_v13 = vadd.f32 %v476_v0, %v443_v54  ;;  %v481_v14 = vmul.f32 %v3290_v46, %v480_v39  ;;  %v456_v15 = vsel %vm291_vm1, %v453_v62, %v455_v9 }
  0x9f   : > { %v459_v17 = vadd.f32 %v454_v11, %v408_v35  ;;  %v482_v20 = vmul.f32 %v3293_v47, %v480_v39  ;;  %v460_v22 = vadd.f32 %v456_v15, %v409_v38  ;;  %v487_v23 = vmul.f32 %v3290_v46, %v486_v21 }
  0xa0   : > { %v488_v24 = vmul.f32 %v3293_v47, %v486_v21  ;;  %v489_v25 = vmul.f32 %v3313_v10, %v486_v21  ;;  %v503_v27 = vstv %s3296_s21  ;;  %v520_v28 = vstv %s3300_s22  ;;  %s3451_s21 = sld [smem:[#allocation3 + $0xe]]  ;;  %s3466_s22 = sld [smem:[#allocation3 + $0x29]] }
  0xa1   : > { %v483_v26 = vadd.f32 %v481_v14, %v459_v17  ;;  %v537_v7 = vstv %s3302_s23  ;;  %v484_v29 = vadd.f32 %v482_v20, %v460_v22  ;;  %v493_v30 = vrot.slane %v487_v23, 1  ;;  %v3367_v22 = vld [vmem:[%s3145_s24 + $0x1b0] sm:$0xff]  ;;  %s3472_s23 = sld [smem:[#allocation3 + $0x44]] }
  0xa2   : > { %v494_v31 = vrot.slane %v488_v24, 1  ;;  %v496_v8 = vrot.slane %v489_v25, 1  ;;  %v504_v32 = vmul.f32 %v3290_v46, %v503_v27  ;;  %v505_v33 = vmul.f32 %v3293_v47, %v503_v27 }
  0xa3   : > { %v506_v16 = vmul.f32 %v3313_v10, %v503_v27  ;;  %v521_v34 = vmul.f32 %v3290_v46, %v520_v28  ;;  %v522_v37 = vmul.f32 %v3293_v47, %v520_v28  ;;  %v523_v38 = vmul.f32 %v3313_v10, %v520_v28  ;;  %v3373_v28 = vld [vmem:[%s3145_s24 + $0x1b8] sm:$0xff] }
  0xa4   : > { %v495_v35 = vsel %vm239_vm0, %v493_v30, %v494_v31  ;;  %v497_v36 = vsel %vm239_vm0, %v494_v31, %v496_v8  ;;  %v510_v42 = vrot.slane %v504_v32, 1  ;;  %v511_v43 = vrot.slane %v505_v33, 1 }
  0xa5   : > { %v500_v40 = vadd.f32 %v495_v35, %v471_v18  ;;  %v501_v41 = vadd.f32 %v497_v36, %v472_v19  ;;  %v513_v44 = vrot.slane %v506_v16, 1  ;;  %v527_v45 = vrot.slane %v521_v34, 1  ;;  %v3383_v35 = vld [vmem:[%s3145_s24 + $0x1c0] sm:$0x3] }
  0xa6   : > { %v528_v48 = vrot.slane %v522_v37, 1  ;;  %v530_v49 = vrot.slane %v523_v38, 1  ;;  %v512_v50 = vsel %vm239_vm0, %v510_v42, %v511_v43  ;;  %v538_v51 = vmul.f32 %v3290_v46, %v537_v7 }
  0xa7   : > { %v539_v52 = vmul.f32 %v3293_v47, %v537_v7  ;;  %v540_v53 = vmul.f32 %v3313_v10, %v537_v7  ;;  %v514_v54 = vsel %vm239_vm0, %v511_v43, %v513_v44  ;;  %v517_v55 = vadd.f32 %v512_v50, %v477_v12 }
  0xa8   : > { %v529_v56 = vsel %vm239_vm0, %v527_v45, %v528_v48  ;;  %v531_v57 = vsel %vm239_vm0, %v528_v48, %v530_v49  ;;  %v518_v58 = vadd.f32 %v514_v54, %v478_v13  ;;  %v544_v61 = vrot.slane %v538_v51, 2 }
  0xa9   : > { %v534_v59 = vadd.f32 %v529_v56, %v483_v26  ;;  %v535_v60 = vadd.f32 %v531_v57, %v484_v29  ;;  %v545_v62 = vrot.slane %v539_v52, 2  ;;  %v547_v63 = vrot.slane %v540_v53, 2 }
  0xaa   : > { %v554_v0 = vstv %s3327_s25  ;;  %v571_v9 = vstv %s3329_s26  ;;  %v599_v7 = vstv %s3345_s1  ;;  %v611_v43 = vstv %s3358_s28  ;;  %s3474_s25 = sld [smem:[#allocation3 + $0xf]]  ;;  %s3487_s26 = sld [smem:[#allocation3 + $0x2a]] }
  0xab   : > { %v555_v18 = vmul.f32 %v3290_v46, %v554_v0  ;;  %v556_v19 = vmul.f32 %v3293_v47, %v554_v0  ;;  %v557_v39 = vmul.f32 %v3313_v10, %v554_v0  ;;  %v572_v11 = vmul.f32 %v3290_v46, %v571_v9  ;;  %s3510_s1 = sld [smem:[#allocation3 + $0x10]]  ;;  %s3517_s28 = sld [smem:[#allocation3 + $0x46]] }
  0xac   : > { %v546_v12 = vsel %vm291_vm1, %v544_v61, %v545_v62  ;;  %v548_v13 = vsel %vm291_vm1, %v545_v62, %v547_v63  ;;  %v573_v14 = vmul.f32 %v3293_v47, %v571_v9  ;;  %v574_v15 = vmul.f32 %v3313_v10, %v571_v9 }
  0xad   : > { %v551_v17 = vadd.f32 %v546_v12, %v500_v40  ;;  %v552_v20 = vadd.f32 %v548_v13, %v501_v41  ;;  %v561_v21 = vrot.slane %v555_v18, 2  ;;  %v562_v46 = vrot.slane %v556_v19, 2 }
  0xae   : > { %v564_v23 = vrot.slane %v557_v39, 2  ;;  %v578_v24 = vrot.slane %v572_v11, 2  ;;  %v579_v25 = vrot.slane %v573_v14, 2  ;;  %v581_v26 = vrot.slane %v574_v15, 2 }
  0xaf   : > { %v563_v27 = vsel %vm291_vm1, %v561_v21, %v562_v46  ;;  %v593_v47 = vstv %s3339_s2  ;;  %v605_v10 = vstv %s3347_s27  ;;  %v600_v37 = vmul.f32 %v3367_v22, %v599_v7  ;;  %s3496_s2 = sld [smem:[#allocation3 + $0x45]]  ;;  %s3512_s27 = sld [smem:[#allocation3 + $0x2b]] }
  0xb0   : > { %v565_v29 = vsel %vm291_vm1, %v562_v46, %v564_v23  ;;  %v568_v30 = vadd.f32 %v563_v27, %v517_v55  ;;  %v580_v31 = vsel %vm291_vm1, %v578_v24, %v579_v25  ;;  %v582_v8 = vsel %vm291_vm1, %v579_v25, %v581_v26 }
  0xb1   : > { %v569_v32 = vadd.f32 %v565_v29, %v518_v58  ;;  %v585_v33 = vadd.f32 %v580_v31, %v534_v59  ;;  %v586_v16 = vadd.f32 %v582_v8, %v535_v60  ;;  %v594_v34 = vmul.f32 %v3367_v22, %v593_v47 }
  0xb2   : > { %v595_v36 = vmul.f32 %v3373_v28, %v593_v47  ;;  %v601_v38 = vmul.f32 %v3373_v28, %v599_v7  ;;  %v606_v40 = vmul.f32 %v3367_v22, %v605_v10  ;;  %v607_v42 = vmul.f32 %v3373_v28, %v605_v10 }
  0xb3   : > { %v596_v41 = vadd.f32 %v594_v34, %v551_v17  ;;  %v628_v44 = vstv %s3360_s29  ;;  %v602_v48 = vadd.f32 %v600_v37, %v568_v30  ;;  %v612_v52 = vmul.f32 %v3367_v22, %v611_v43  ;;  %s3519_s29 = sld [smem:[#allocation3 + $0x11]] }
  0xb4   : > { %v597_v45 = vadd.f32 %v595_v36, %v552_v20  ;;  %v603_v49 = vadd.f32 %v601_v38, %v569_v32  ;;  %v608_v50 = vadd.f32 %v606_v40, %v585_v33  ;;  %v609_v51 = vadd.f32 %v607_v42, %v586_v16 }
  0xb5   : > { %v613_v53 = vmul.f32 %v3373_v28, %v611_v43  ;;  %v614_v54 = vmul.f32 %v3383_v35, %v611_v43  ;;  %v629_v55 = vmul.f32 %v3367_v22, %v628_v44  ;;  %v630_v56 = vmul.f32 %v3373_v28, %v628_v44 }
  0xb6   : > { %v631_v57 = vmul.f32 %v3383_v35, %v628_v44  ;;  %v645_v58 = vstv %s3369_s30  ;;  %v618_v59 = vrot.slane %v612_v52, 1  ;;  %v662_v24 = vstv %s3392_s6  ;;  %s3543_s30 = sld [smem:[#allocation3 + $0x2c]]  ;;  %s3545_s6 = sld [smem:[#allocation3 + $0x47]] }
  0xb7   : > { %v619_v60 = vrot.slane %v613_v53, 1  ;;  %v621_v61 = vrot.slane %v614_v54, 1  ;;  %v646_v62 = vmul.f32 %v3367_v22, %v645_v58  ;;  %v635_v63 = vrot.slane %v629_v55, 1  ;;  %v3443_v53 = vld [vmem:[%s3145_s24 + $0x1d0] sm:$0xff] }
  0xb8   : > { %v636_v0 = vrot.slane %v630_v56, 1  ;;  %v638_v9 = vrot.slane %v631_v57, 1  ;;  %v647_v18 = vmul.f32 %v3373_v28, %v645_v58  ;;  %v648_v11 = vmul.f32 %v3383_v35, %v645_v58 }
  0xb9   : > { %v620_v19 = vsel %vm239_vm0, %v618_v59, %v619_v60  ;;  %v622_v39 = vsel %vm239_vm0, %v619_v60, %v621_v61  ;;  %v652_v12 = vrot.slane %v646_v62, 1  ;;  %v679_v25 = vstv %s3394_s7  ;;  %s3548_s7 = sld [smem:[#allocation3 + $0x12]] }
  0xba   : > { %v625_v13 = vadd.f32 %v620_v19, %v596_v41  ;;  %v626_v14 = vadd.f32 %v622_v39, %v597_v45  ;;  %v637_v15 = vsel %vm239_vm0, %v635_v63, %v636_v0  ;;  %v639_v17 = vsel %vm239_vm0, %v636_v0, %v638_v9  ;;  %v3457_v0 = vld [vmem:[%s3145_s24 + $0x1d8] sm:$0x3] }
  0xbb   : > { %v642_v20 = vadd.f32 %v637_v15, %v602_v48  ;;  %v643_v21 = vadd.f32 %v639_v17, %v603_v49  ;;  %v653_v46 = vrot.slane %v647_v18, 1  ;;  %v655_v23 = vrot.slane %v648_v11, 1  ;;  %v3439_v48 = vld [vmem:[%s3145_s24 + $0x1c8] sm:$0xff] }
  0xbc   : > { %v696_v26 = vstv %s3396_s8  ;;  %v718_v27 = vstv %s3398_s9  ;;  %v663_v10 = vmul.f32 %v3367_v22, %v662_v24  ;;  %v664_v29 = vmul.f32 %v3373_v28, %v662_v24  ;;  %s3562_s8 = sld [smem:[#allocation3 + $0x2d]]  ;;  %s3569_s9 = sld [smem:[#allocation3 + $0x48]] }
  0xbd   : > { %v654_v47 = vsel %vm239_vm0, %v652_v12, %v653_v46  ;;  %v656_v7 = vsel %vm239_vm0, %v653_v46, %v655_v23  ;;  %v665_v8 = vmul.f32 %v3383_v35, %v662_v24  ;;  %v680_v32 = vmul.f32 %v3367_v22, %v679_v25 }
  0xbe   : > { %v659_v30 = vadd.f32 %v654_v47, %v608_v50  ;;  %v660_v31 = vadd.f32 %v656_v7, %v609_v51  ;;  %v669_v33 = vrot.slane %v663_v10, 2  ;;  %v670_v16 = vrot.slane %v664_v29, 2 }
  0xbf   : > { %v681_v34 = vmul.f32 %v3373_v28, %v679_v25  ;;  %v682_v36 = vmul.f32 %v3383_v35, %v679_v25  ;;  %v672_v37 = vrot.slane %v665_v8, 2  ;;  %v686_v38 = vrot.slane %v680_v32, 2 }
  0xc0   : > { %v697_v40 = vmul.f32 %v3367_v22, %v696_v26  ;;  %v698_v41 = vmul.f32 %v3373_v28, %v696_v26  ;;  %v671_v42 = vsel %vm291_vm1, %v669_v33, %v670_v16  ;;  %v699_v45 = vmul.f32 %v3383_v35, %v696_v26 }
  0xc1   : > { %v687_v43 = vrot.slane %v681_v34, 2  ;;  %v689_v44 = vrot.slane %v682_v36, 2  ;;  %v673_v49 = vsel %vm291_vm1, %v670_v16, %v672_v37  ;;  %v676_v50 = vadd.f32 %v671_v42, %v625_v13 }
  0xc2   : > { %v703_v51 = vrot.slane %v697_v40, 2  ;;  %v704_v52 = vrot.slane %v698_v41, 2  ;;  %v677_v22 = vadd.f32 %v673_v49, %v626_v14  ;;  %v706_v55 = vrot.slane %v699_v45, 2 }
  0xc3   : > { %v688_v28 = vsel %vm291_vm1, %v686_v38, %v687_v43  ;;  %v690_v54 = vsel %vm291_vm1, %v687_v43, %v689_v44  ;;  %v719_v58 = vmul.f32 %v3439_v48, %v718_v27  ;;  %v720_v61 = vmul.f32 %v3443_v53, %v718_v27 }
  0xc4   : > { %v693_v56 = vadd.f32 %v688_v28, %v642_v20  ;;  %v694_v35 = vadd.f32 %v690_v54, %v643_v21  ;;  %v705_v57 = vsel %vm291_vm1, %v703_v51, %v704_v52  ;;  %v707_v59 = vsel %vm291_vm1, %v704_v52, %v706_v55 }
  0xc5   : > { %v710_v60 = vadd.f32 %v705_v57, %v659_v30  ;;  %v724_v62 = vstv %s3422_s3  ;;  %v711_v63 = vadd.f32 %v707_v59, %v660_v31  ;;  %v721_v9 = vadd.f32 %v719_v58, %v676_v50  ;;  %s3571_s3 = sld [smem:[#allocation3 + $0x13]] }
  0xc6   : > { %v725_v18 = vmul.f32 %v3439_v48, %v724_v62  ;;  %v726_v19 = vmul.f32 %v3443_v53, %v724_v62  ;;  %v722_v39 = vadd.f32 %v720_v61, %v677_v22  ;;  %v730_v11 = vstv %s3426_s16  ;;  %s3586_s16 = sld [smem:[#allocation3 + $0x2e]] }
  0xc7   : > { %v736_v12 = vstv %s3430_s17  ;;  %v753_v13 = vstv %s3432_s19  ;;  %v731_v17 = vmul.f32 %v3439_v48, %v730_v11  ;;  %v732_v20 = vmul.f32 %v3443_v53, %v730_v11  ;;  %v3505_v11 = vld [vmem:[%s3145_s24 + $0x1e0] sm:$0xff]  ;;  %s3588_s17 = sld [smem:[#allocation3 + $0x49]]  ;;  %s3605_s19 = sld [smem:[#allocation3 + $0x14]] }
  0xc8   : > { %v727_v14 = vadd.f32 %v725_v18, %v693_v56  ;;  %v728_v15 = vadd.f32 %v726_v19, %v694_v35  ;;  %v737_v21 = vmul.f32 %v3439_v48, %v736_v12  ;;  %v738_v46 = vmul.f32 %v3443_v53, %v736_v12 }
  0xc9   : > { %v739_v23 = vmul.f32 %v3457_v0, %v736_v12  ;;  %v754_v24 = vmul.f32 %v3439_v48, %v753_v13  ;;  %v733_v25 = vadd.f32 %v731_v17, %v710_v60  ;;  %v734_v26 = vadd.f32 %v732_v20, %v711_v63  ;;  %v3508_v12 = vld [vmem:[%s3145_s24 + $0x1e8] sm:$0xff] }
  0xca   : > { %v755_v27 = vmul.f32 %v3443_v53, %v753_v13  ;;  %v756_v47 = vmul.f32 %v3457_v0, %v753_v13  ;;  %v743_v7 = vrot.slane %v737_v21, 1  ;;  %v744_v10 = vrot.slane %v738_v46, 1 }
  0xcb   : > { %v746_v29 = vrot.slane %v739_v23, 1  ;;  %v760_v30 = vrot.slane %v754_v24, 1  ;;  %v770_v32 = vstv %s3449_s20  ;;  %v787_v33 = vstv %s3451_s21  ;;  %s3614_s20 = sld [smem:[#allocation3 + $0x2f]]  ;;  %s3616_s21 = sld [smem:[#allocation3 + $0x4a]] }
  0xcc   : > { %v761_v31 = vrot.slane %v755_v27, 1  ;;  %v763_v8 = vrot.slane %v756_v47, 1  ;;  %v745_v16 = vsel %vm239_vm0, %v743_v7, %v744_v10  ;;  %v771_v36 = vmul.f32 %v3439_v48, %v770_v32 }
  0xcd   : > { %v747_v34 = vsel %vm239_vm0, %v744_v10, %v746_v29  ;;  %v772_v37 = vmul.f32 %v3443_v53, %v770_v32  ;;  %v750_v38 = vadd.f32 %v745_v16, %v721_v9  ;;  %v773_v45 = vmul.f32 %v3457_v0, %v770_v32 }
  0xce   : > { %v751_v40 = vadd.f32 %v747_v34, %v722_v39  ;;  %v762_v41 = vsel %vm239_vm0, %v760_v30, %v761_v31  ;;  %v764_v42 = vsel %vm239_vm0, %v761_v31, %v763_v8  ;;  %v777_v49 = vrot.slane %v771_v36, 1  ;;  %v3528_v8 = vld [vmem:[%s3145_s24 + $0x1f0] sm:$0x3] }
  0xcf   : > { %v767_v43 = vadd.f32 %v762_v41, %v727_v14  ;;  %v768_v44 = vadd.f32 %v764_v42, %v728_v15  ;;  %v778_v50 = vrot.slane %v772_v37, 1  ;;  %v788_v51 = vmul.f32 %v3439_v48, %v787_v33 }
  0xd0   : > { %v789_v52 = vmul.f32 %v3443_v53, %v787_v33  ;;  %v790_v22 = vmul.f32 %v3457_v0, %v787_v33  ;;  %v780_v28 = vrot.slane %v773_v45, 1  ;;  %v804_v54 = vstv %s3466_s22  ;;  %s3619_s22 = sld [smem:[#allocation3 + $0x15]] }
  0xd1   : > { %v821_v55 = vstv %s3472_s23  ;;  %v843_v56 = vstv %s3474_s25  ;;  %v779_v35 = vsel %vm239_vm0, %v777_v49, %v778_v50  ;;  %v794_v57 = vrot.slane %v788_v51, 2  ;;  %s3635_s23 = sld [smem:[#allocation3 + $0x30]]  ;;  %s3641_s25 = sld [smem:[#allocation3 + $0x4b]] }
  0xd2   : > { %v795_v58 = vrot.slane %v789_v52, 2  ;;  %v797_v59 = vrot.slane %v790_v22, 2  ;;  %v781_v60 = vsel %vm239_vm0, %v778_v50, %v780_v28  ;;  %v784_v61 = vadd.f32 %v779_v35, %v733_v25 }
  0xd3   : > { %v805_v62 = vmul.f32 %v3439_v48, %v804_v54  ;;  %v806_v63 = vmul.f32 %v3443_v53, %v804_v54  ;;  %v785_v9 = vadd.f32 %v781_v60, %v734_v26  ;;  %v807_v39 = vmul.f32 %v3457_v0, %v804_v54 }
  0xd4   : > { %v796_v18 = vsel %vm291_vm1, %v794_v57, %v795_v58  ;;  %v798_v19 = vsel %vm291_vm1, %v795_v58, %v797_v59  ;;  %v822_v21 = vmul.f32 %v3439_v48, %v821_v55  ;;  %v823_v46 = vmul.f32 %v3443_v53, %v821_v55 }
  0xd5   : > { %v801_v13 = vadd.f32 %v796_v18, %v750_v38  ;;  %v802_v14 = vadd.f32 %v798_v19, %v751_v40  ;;  %v811_v15 = vrot.slane %v805_v62, 2  ;;  %v812_v17 = vrot.slane %v806_v63, 2 }
  0xd6   : > { %v814_v20 = vrot.slane %v807_v39, 2  ;;  %v824_v23 = vmul.f32 %v3457_v0, %v821_v55  ;;  %v844_v25 = vmul.f32 %v3505_v11, %v843_v56  ;;  %v845_v26 = vmul.f32 %v3508_v12, %v843_v56 }
  0xd7   : > { %v813_v24 = vsel %vm291_vm1, %v811_v15, %v812_v17  ;;  %v849_v27 = vstv %s3487_s26  ;;  %v828_v7 = vrot.slane %v822_v21, 2  ;;  %v829_v53 = vrot.slane %v823_v46, 2  ;;  %s3643_s26 = sld [smem:[#allocation3 + $0x16]] }
  0xd8   : > { %v815_v47 = vsel %vm291_vm1, %v812_v17, %v814_v20  ;;  %v818_v48 = vadd.f32 %v813_v24, %v767_v43  ;;  %v831_v0 = vrot.slane %v824_v23, 2  ;;  %v846_v29 = vadd.f32 %v844_v25, %v801_v13 }
  0xd9   : > { %v819_v10 = vadd.f32 %v815_v47, %v768_v44  ;;  %v847_v30 = vadd.f32 %v845_v26, %v802_v14  ;;  %v830_v31 = vsel %vm291_vm1, %v828_v7, %v829_v53  ;;  %v850_v32 = vmul.f32 %v3505_v11, %v849_v27 }
  0xda   : > { %v851_v33 = vmul.f32 %v3508_v12, %v849_v27  ;;  %v855_v16 = vstv %s3496_s2  ;;  %v832_v34 = vsel %vm291_vm1, %v829_v53, %v831_v0  ;;  %v835_v36 = vadd.f32 %v830_v31, %v784_v61  ;;  %s3648_s2 = sld [smem:[#allocation3 + $0x31]] }
  0xdb   : > { %v856_v37 = vmul.f32 %v3505_v11, %v855_v16  ;;  %v857_v38 = vmul.f32 %v3508_v12, %v855_v16  ;;  %v836_v40 = vadd.f32 %v832_v34, %v785_v9  ;;  %v852_v41 = vadd.f32 %v850_v32, %v818_v48 }
  0xdc   : > { %v853_v42 = vadd.f32 %v851_v33, %v819_v10  ;;  %v861_v43 = vstv %s3510_s1  ;;  %v878_v52 = vstv %s3512_s27  ;;  %v895_v22 = vstv %s3517_s28  ;;  %s3650_s1 = sld [smem:[#allocation3 + $0x4c]]  ;;  %s3670_s27 = sld [smem:[#allocation3 + $0x17]] }
  0xdd   : > { %v858_v44 = vadd.f32 %v856_v37, %v835_v36  ;;  %v862_v45 = vmul.f32 %v3505_v11, %v861_v43  ;;  %v863_v49 = vmul.f32 %v3508_v12, %v861_v43  ;;  %v864_v50 = vmul.f32 %v3528_v8, %v861_v43  ;;  %v3578_v36 = vld [vmem:[%s3145_s24 + $0x360] sm:$0xff]  ;;  %s3683_s28 = sld [smem:[#allocation3 + $0x32]] }
  0xde   : > { %v859_v51 = vadd.f32 %v857_v38, %v836_v40  ;;  %v912_v28 = vstv %s3519_s29  ;;  %v879_v35 = vmul.f32 %v3505_v11, %v878_v52  ;;  %v880_v57 = vmul.f32 %v3508_v12, %v878_v52  ;;  %s3689_s29 = sld [smem:[#allocation3 + $0x4d]] }
  0xdf   : > { %v868_v54 = vrot.slane %v862_v45, 1  ;;  %v869_v55 = vrot.slane %v863_v49, 1  ;;  %v871_v56 = vrot.slane %v864_v50, 1  ;;  %v881_v58 = vmul.f32 %v3528_v8, %v878_v52 }
  0xe0   : > { %v896_v59 = vmul.f32 %v3505_v11, %v895_v22  ;;  %v897_v60 = vmul.f32 %v3508_v12, %v895_v22  ;;  %v885_v63 = vrot.slane %v879_v35, 1  ;;  %v898_v9 = vmul.f32 %v3528_v8, %v895_v22 }
  0xe1   : > { %v870_v61 = vsel %vm239_vm0, %v868_v54, %v869_v55  ;;  %v872_v62 = vsel %vm239_vm0, %v869_v55, %v871_v56  ;;  %v886_v39 = vrot.slane %v880_v57, 1  ;;  %v888_v13 = vrot.slane %v881_v58, 1 }
  0xe2   : > { %v875_v18 = vadd.f32 %v870_v61, %v846_v29  ;;  %v876_v19 = vadd.f32 %v872_v62, %v847_v30  ;;  %v902_v14 = vrot.slane %v896_v59, 1  ;;  %v903_v15 = vrot.slane %v897_v60, 1 }
  0xe3   : > { %v905_v17 = vrot.slane %v898_v9, 1  ;;  %v913_v20 = vmul.f32 %v3505_v11, %v912_v28  ;;  %v887_v21 = vsel %vm239_vm0, %v885_v63, %v886_v39  ;;  %v889_v46 = vsel %vm239_vm0, %v886_v39, %v888_v13 }
  0xe4   : > { %v914_v23 = vmul.f32 %v3508_v12, %v912_v28  ;;  %v915_v24 = vmul.f32 %v3528_v8, %v912_v28  ;;  %v892_v25 = vadd.f32 %v887_v21, %v852_v41  ;;  %v893_v26 = vadd.f32 %v889_v46, %v853_v42  ;;  %v3584_v42 = vld [vmem:[%s3145_s24 + $0x368] sm:$0xff] }
  0xe5   : > { %v904_v27 = vsel %vm239_vm0, %v902_v14, %v903_v15  ;;  %v906_v47 = vsel %vm239_vm0, %v903_v15, %v905_v17  ;;  %v919_v53 = vrot.slane %v913_v20, 2  ;;  %v929_v29 = vstv %s3543_s30  ;;  %s3691_s30 = sld [smem:[#allocation3 + $0x18]] }
  0xe6   : > { %v909_v48 = vadd.f32 %v904_v27, %v858_v44  ;;  %v910_v7 = vadd.f32 %v906_v47, %v859_v51  ;;  %v920_v10 = vrot.slane %v914_v23, 2  ;;  %v922_v0 = vrot.slane %v915_v24, 2 }
  0xe7   : > { %v946_v30 = vstv %s3545_s6  ;;  %v968_v31 = vstv %s3548_s7  ;;  %v930_v33 = vmul.f32 %v3505_v11, %v929_v29  ;;  %v931_v16 = vmul.f32 %v3508_v12, %v929_v29  ;;  %s3706_s6 = sld [smem:[#allocation3 + $0x33]]  ;;  %s3713_s7 = sld [smem:[#allocation3 + $0x4e]] }
  0xe8   : > { %v921_v32 = vsel %vm291_vm1, %v919_v53, %v920_v10  ;;  %v932_v34 = vmul.f32 %v3528_v8, %v929_v29  ;;  %v923_v37 = vsel %vm291_vm1, %v920_v10, %v922_v0  ;;  %v947_v40 = vmul.f32 %v3505_v11, %v946_v30 }
  0xe9   : > { %v926_v38 = vadd.f32 %v921_v32, %v875_v18  ;;  %v948_v41 = vmul.f32 %v3508_v12, %v946_v30  ;;  %v927_v43 = vadd.f32 %v923_v37, %v876_v19  ;;  %v936_v44 = vrot.slane %v930_v33, 2 }
  0xea   : > { %v937_v45 = vrot.slane %v931_v16, 2  ;;  %v939_v49 = vrot.slane %v932_v34, 2  ;;  %v949_v50 = vmul.f32 %v3528_v8, %v946_v30  ;;  %v953_v51 = vrot.slane %v947_v40, 2  ;;  %v3598_v8 = vld [vmem:[%s3145_s24 + $0x370] sm:$0x3] }
  0xeb   : > { %v954_v52 = vrot.slane %v948_v41, 2  ;;  %v969_v11 = vmul.f32 %v3578_v36, %v968_v31  ;;  %v970_v28 = vmul.f32 %v3584_v42, %v968_v31  ;;  %v974_v54 = vstv %s3562_s8  ;;  %s3717_s8 = sld [smem:[#allocation3 + $0x19]] }
  0xec   : > { %v938_v12 = vsel %vm291_vm1, %v936_v44, %v937_v45  ;;  %v940_v22 = vsel %vm291_vm1, %v937_v45, %v939_v49  ;;  %v956_v57 = vrot.slane %v949_v50, 2  ;;  %v975_v61 = vmul.f32 %v3578_v36, %v974_v54 }
  0xed   : > { %v943_v55 = vadd.f32 %v938_v12, %v892_v25  ;;  %v944_v56 = vadd.f32 %v940_v22, %v893_v26  ;;  %v955_v35 = vsel %vm291_vm1, %v953_v51, %v954_v52  ;;  %v971_v59 = vadd.f32 %v969_v11, %v926_v38 }
  0xee   : > { %v960_v58 = vadd.f32 %v955_v35, %v909_v48  ;;  %v972_v60 = vadd.f32 %v970_v28, %v927_v43  ;;  %v957_v62 = vsel %vm291_vm1, %v954_v52, %v956_v57  ;;  %v976_v63 = vmul.f32 %v3584_v42, %v974_v54 }
  0xef   : > { %v980_v9 = vstv %s3569_s9  ;;  %v986_v18 = vstv %s3571_s3  ;;  %v961_v19 = vadd.f32 %v957_v62, %v910_v7  ;;  %v977_v39 = vadd.f32 %v975_v61, %v943_v55  ;;  %s3719_s9 = sld [smem:[#allocation3 + $0x34]]  ;;  %s3738_s3 = sld [smem:[#allocation3 + $0x4f]] }
  0xf0   : > { %v981_v13 = vmul.f32 %v3578_v36, %v980_v9  ;;  %v982_v14 = vmul.f32 %v3584_v42, %v980_v9  ;;  %v978_v15 = vadd.f32 %v976_v63, %v944_v56  ;;  %v987_v17 = vmul.f32 %v3578_v36, %v986_v18 }
  0xf1   : > { %v988_v20 = vmul.f32 %v3584_v42, %v986_v18  ;;  %v989_v21 = vmul.f32 %v3598_v8, %v986_v18  ;;  %v1003_v24 = vstv %s3586_s16  ;;  %v1020_v25 = vstv %s3588_s17  ;;  %s3741_s16 = sld [smem:[#allocation3 + $0x1a]]  ;;  %s3762_s17 = sld [smem:[#allocation3 + $0x50]] }
  0xf2   : > { %v983_v46 = vadd.f32 %v981_v13, %v960_v58  ;;  %v984_v23 = vadd.f32 %v982_v14, %v961_v19  ;;  %v993_v26 = vrot.slane %v987_v17, 1  ;;  %v1004_v48 = vmul.f32 %v3578_v36, %v1003_v24  ;;  %v3660_v13 = vld [vmem:[%s3145_s24 + $0x380] sm:$0xff] }
  0xf3   : > { %v994_v27 = vrot.slane %v988_v20, 1  ;;  %v996_v47 = vrot.slane %v989_v21, 1  ;;  %v1005_v7 = vmul.f32 %v3584_v42, %v1003_v24  ;;  %v1006_v53 = vmul.f32 %v3598_v8, %v1003_v24 }
  0xf4   : > { %v1021_v10 = vmul.f32 %v3578_v36, %v1020_v25  ;;  %v1022_v0 = vmul.f32 %v3584_v42, %v1020_v25  ;;  %v1010_v31 = vrot.slane %v1004_v48, 1  ;;  %v1023_v32 = vmul.f32 %v3598_v8, %v1020_v25 }
  0xf5   : > { %v995_v29 = vsel %vm239_vm0, %v993_v26, %v994_v27  ;;  %v997_v30 = vsel %vm239_vm0, %v994_v27, %v996_v47  ;;  %v1011_v34 = vrot.slane %v1005_v7, 1  ;;  %v1013_v37 = vrot.slane %v1006_v53, 1 }
  0xf6   : > { %v1000_v33 = vadd.f32 %v995_v29, %v971_v59  ;;  %v1001_v16 = vadd.f32 %v997_v30, %v972_v60  ;;  %v1027_v38 = vrot.slane %v1021_v10, 1  ;;  %v1028_v40 = vrot.slane %v1022_v0, 1  ;;  %v3673_v30 = vld [vmem:[%s3145_s24 + $0x388] sm:$0x3] }
  0xf7   : > { %v1030_v41 = vrot.slane %v1023_v32, 1  ;;  %v1037_v43 = vstv %s3605_s19  ;;  %v1012_v44 = vsel %vm239_vm0, %v1010_v31, %v1011_v34  ;;  %v1014_v45 = vsel %vm239_vm0, %v1011_v34, %v1013_v37  ;;  %s2563_s19 = scalar_lea.vmem [#allocation2], %s208_s18  ;;  %s3797_s18 = smov (%p204_p6), 0  }
  0xf8   : > { %v1038_v49 = vmul.f32 %v3578_v36, %v1037_v43  ;;  %v1039_v50 = vmul.f32 %v3584_v42, %v1037_v43  ;;  %v1017_v51 = vadd.f32 %v1012_v44, %v977_v39  ;;  %v1018_v52 = vadd.f32 %v1014_v45, %v978_v15  ;;  %v3657_v39 = vld [vmem:[%s3145_s24 + $0x378] sm:$0xff] }
  0xf9   : > { %v1029_v11 = vsel %vm239_vm0, %v1027_v38, %v1028_v40  ;;  %v1031_v12 = vsel %vm239_vm0, %v1028_v40, %v1030_v41  ;;  %v1040_v54 = vmul.f32 %v3598_v8, %v1037_v43  ;;  %v1054_v35 = vstv %s3614_s20 }
  0xfa   : > { %v1034_v22 = vadd.f32 %v1029_v11, %v983_v46  ;;  %v1035_v28 = vadd.f32 %v1031_v12, %v984_v23  ;;  %v1044_v55 = vrot.slane %v1038_v49, 2  ;;  %v1045_v56 = vrot.slane %v1039_v50, 2 }
  0xfb   : > { %v1071_v57 = vstv %s3616_s21  ;;  %v1093_v58 = vstv %s3619_s22  ;;  %v1047_v59 = vrot.slane %v1040_v54, 2  ;;  %v1055_v60 = vmul.f32 %v3578_v36, %v1054_v35 }
  0xfc   : > { %v1056_v61 = vmul.f32 %v3584_v42, %v1054_v35  ;;  %v1057_v62 = vmul.f32 %v3598_v8, %v1054_v35  ;;  %v1046_v63 = vsel %vm291_vm1, %v1044_v55, %v1045_v56  ;;  %v1072_v9 = vmul.f32 %v3578_v36, %v1071_v57 }
  0xfd   : > { %v1073_v18 = vmul.f32 %v3584_v42, %v1071_v57  ;;  %v1074_v19 = vmul.f32 %v3598_v8, %v1071_v57  ;;  %v1048_v14 = vsel %vm291_vm1, %v1045_v56, %v1047_v59  ;;  %v1051_v15 = vadd.f32 %v1046_v63, %v1000_v33 }
  0xfe   : > { %v1061_v17 = vrot.slane %v1055_v60, 2  ;;  %v1062_v20 = vrot.slane %v1056_v61, 2  ;;  %v1052_v21 = vadd.f32 %v1048_v14, %v1001_v16  ;;  %v1064_v46 = vrot.slane %v1057_v62, 2 }
  0xff   : > { %v1078_v23 = vrot.slane %v1072_v9, 2  ;;  %v1079_v24 = vrot.slane %v1073_v18, 2  ;;  %v1081_v42 = vrot.slane %v1074_v19, 2  ;;  %v1094_v8 = vmul.f32 %v3657_v39, %v1093_v58 }
 0x100   : > { %v1063_v36 = vsel %vm291_vm1, %v1061_v17, %v1062_v20  ;;  %v1095_v25 = vmul.f32 %v3660_v13, %v1093_v58  ;;  %v1065_v26 = vsel %vm291_vm1, %v1062_v20, %v1064_v46  ;;  %v1099_v48 = vstv %s3635_s23 }
 0x101   : > { %v1068_v27 = vadd.f32 %v1063_v36, %v1017_v51  ;;  %v1080_v47 = vsel %vm291_vm1, %v1078_v23, %v1079_v24  ;;  %v1069_v7 = vadd.f32 %v1065_v26, %v1018_v52  ;;  %v1082_v53 = vsel %vm291_vm1, %v1079_v24, %v1081_v42 }
 0x102   : > { %v1085_v10 = vadd.f32 %v1080_v47, %v1034_v22  ;;  %v1096_v0 = vadd.f32 %v1094_v8, %v1051_v15  ;;  %v1086_v29 = vadd.f32 %v1082_v53, %v1035_v28  ;;  %v1097_v31 = vadd.f32 %v1095_v25, %v1052_v21 }
 0x103   : > { %v1100_v32 = vmul.f32 %v3657_v39, %v1099_v48  ;;  %v1101_v33 = vmul.f32 %v3660_v13, %v1099_v48  ;;  %v1105_v16 = vstv %s3641_s25  ;;  %v1111_v34 = vstv %s3643_s26 }
 0x104   : > { %v1128_v37 = vstv %s3648_s2  ;;  %v1145_v38 = vstv %s3650_s1  ;;  %v1106_v43 = vmul.f32 %v3657_v39, %v1105_v16  ;;  %v1107_v44 = vmul.f32 %v3660_v13, %v1105_v16 }
 0x105   : > { %v1102_v40 = vadd.f32 %v1100_v32, %v1068_v27  ;;  %v1103_v41 = vadd.f32 %v1101_v33, %v1069_v7  ;;  %v1112_v45 = vmul.f32 %v3657_v39, %v1111_v34  ;;  %v1113_v49 = vmul.f32 %v3660_v13, %v1111_v34 }
 0x106   : > { %v1114_v50 = vmul.f32 %v3673_v30, %v1111_v34  ;;  %v1129_v51 = vmul.f32 %v3657_v39, %v1128_v37  ;;  %v1108_v52 = vadd.f32 %v1106_v43, %v1085_v10  ;;  %v1109_v11 = vadd.f32 %v1107_v44, %v1086_v29  ;;  %v3726_v34 = vld [vmem:[%s3145_s24 + $0x390] sm:$0xff] }
 0x107   : > { %v1130_v12 = vmul.f32 %v3660_v13, %v1128_v37  ;;  %v1131_v22 = vmul.f32 %v3673_v30, %v1128_v37  ;;  %v1118_v28 = vrot.slane %v1112_v45, 1  ;;  %v1119_v54 = vrot.slane %v1113_v49, 1  ;;  %v3729_v37 = vld [vmem:[%s3145_s24 + $0x398] sm:$0xff] }
 0x108   : > { %v1121_v55 = vrot.slane %v1114_v50, 1  ;;  %v1135_v56 = vrot.slane %v1129_v51, 1  ;;  %v1146_v58 = vmul.f32 %v3657_v39, %v1145_v38  ;;  %v1147_v59 = vmul.f32 %v3660_v13, %v1145_v38 }
 0x109   : > { %v1136_v35 = vrot.slane %v1130_v12, 1  ;;  %v1138_v57 = vrot.slane %v1131_v22, 1  ;;  %v1120_v60 = vsel %vm239_vm0, %v1118_v28, %v1119_v54  ;;  %v1148_v62 = vmul.f32 %v3673_v30, %v1145_v38 }
 0x10a   : > { %v1122_v61 = vsel %vm239_vm0, %v1119_v54, %v1121_v55  ;;  %v1162_v63 = vstv %s3670_s27  ;;  %v1125_v9 = vadd.f32 %v1120_v60, %v1096_v0  ;;  %v1152_v20 = vrot.slane %v1146_v58, 1 }
 0x10b   : > { %v1126_v18 = vadd.f32 %v1122_v61, %v1097_v31  ;;  %v1137_v19 = vsel %vm239_vm0, %v1135_v56, %v1136_v35  ;;  %v1139_v14 = vsel %vm239_vm0, %v1136_v35, %v1138_v57  ;;  %v1153_v21 = vrot.slane %v1147_v59, 1  ;;  %v3745_v56 = vld [vmem:[%s3145_s24 + $0x3a0] sm:$0x3]  ;;  %s3756_s24 = sld [smem:[#allocation3 + $0x35]] }
 0x10c   : > { %v1142_v15 = vadd.f32 %v1137_v19, %v1102_v40  ;;  %v1143_v17 = vadd.f32 %v1139_v14, %v1103_v41  ;;  %v1155_v46 = vrot.slane %v1148_v62, 1  ;;  %v1163_v23 = vmul.f32 %v3657_v39, %v1162_v63 }
 0x10d   : > { %v1164_v24 = vmul.f32 %v3660_v13, %v1162_v63  ;;  %v1165_v36 = vmul.f32 %v3673_v30, %v1162_v63  ;;  %v1154_v42 = vsel %vm239_vm0, %v1152_v20, %v1153_v21  ;;  %v1179_v8 = vstv %s3683_s28 }
 0x10e   : > { %v1196_v25 = vstv %s3689_s29  ;;  %v1218_v26 = vstv %s3691_s30  ;;  %v1156_v27 = vsel %vm239_vm0, %v1153_v21, %v1155_v46  ;;  %v1159_v47 = vadd.f32 %v1154_v42, %v1108_v52 }
 0x10f   : > { %v1169_v48 = vrot.slane %v1163_v23, 2  ;;  %v1170_v7 = vrot.slane %v1164_v24, 2  ;;  %v1160_v53 = vadd.f32 %v1156_v27, %v1109_v11  ;;  %v1172_v10 = vrot.slane %v1165_v36, 2 }
 0x110   : > { %v1180_v0 = vmul.f32 %v3657_v39, %v1179_v8  ;;  %v1181_v29 = vmul.f32 %v3660_v13, %v1179_v8  ;;  %v1182_v32 = vmul.f32 %v3673_v30, %v1179_v8  ;;  %v1197_v33 = vmul.f32 %v3657_v39, %v1196_v25 }
 0x111   : > { %v1171_v31 = vsel %vm291_vm1, %v1169_v48, %v1170_v7  ;;  %v1198_v16 = vmul.f32 %v3660_v13, %v1196_v25  ;;  %v1173_v38 = vsel %vm291_vm1, %v1170_v7, %v1172_v10  ;;  %v1199_v49 = vmul.f32 %v3673_v30, %v1196_v25 }
 0x112   : > { %v1176_v40 = vadd.f32 %v1171_v31, %v1125_v9  ;;  %v1186_v41 = vrot.slane %v1180_v0, 2  ;;  %v1187_v43 = vrot.slane %v1181_v29, 2  ;;  %v1177_v44 = vadd.f32 %v1173_v38, %v1126_v18 }
 0x113   : > { %v1189_v45 = vrot.slane %v1182_v32, 2  ;;  %v1203_v50 = vrot.slane %v1197_v33, 2  ;;  %v1204_v51 = vrot.slane %v1198_v16, 2  ;;  %v1219_v13 = vmul.f32 %v3726_v34, %v1218_v26 }
 0x114   : > { %v1188_v39 = vsel %vm291_vm1, %v1186_v41, %v1187_v43  ;;  %v1220_v52 = vmul.f32 %v3729_v37, %v1218_v26  ;;  %v1206_v22 = vrot.slane %v1199_v49, 2  ;;  %v1224_v28 = vstv %s3706_s6 }
 0x115   : > { %v1190_v11 = vsel %vm291_vm1, %v1187_v43, %v1189_v45  ;;  %v1193_v12 = vadd.f32 %v1188_v39, %v1142_v15  ;;  %v1205_v30 = vsel %vm291_vm1, %v1203_v50, %v1204_v51  ;;  %v1221_v35 = vadd.f32 %v1219_v13, %v1176_v40 }
 0x116   : > { %v1194_v54 = vadd.f32 %v1190_v11, %v1143_v17  ;;  %v1207_v55 = vsel %vm291_vm1, %v1204_v51, %v1206_v22  ;;  %v1225_v57 = vmul.f32 %v3726_v34, %v1224_v28  ;;  %v1222_v58 = vadd.f32 %v1220_v52, %v1177_v44 }
 0x117   : > { %v1230_v59 = vstv %s3713_s7  ;;  %v1236_v60 = vstv %s3717_s8  ;;  %v1253_v61 = vstv %s3719_s9  ;;  %v1210_v62 = vadd.f32 %v1205_v30, %v1159_v47 }
 0x118   : > { %v1211_v63 = vadd.f32 %v1207_v55, %v1160_v53  ;;  %v1226_v9 = vmul.f32 %v3729_v37, %v1224_v28  ;;  %v1227_v18 = vadd.f32 %v1225_v57, %v1193_v12  ;;  %v1237_v19 = vmul.f32 %v3726_v34, %v1236_v60 }
 0x119   : > { %v1238_v14 = vmul.f32 %v3729_v37, %v1236_v60  ;;  %v1239_v15 = vmul.f32 %v3745_v56, %v1236_v60  ;;  %v1254_v17 = vmul.f32 %v3726_v34, %v1253_v61  ;;  %v1231_v20 = vmul.f32 %v3726_v34, %v1230_v59 }
 0x11a   : > { %v1232_v21 = vmul.f32 %v3729_v37, %v1230_v59  ;;  %v1255_v46 = vmul.f32 %v3729_v37, %v1253_v61  ;;  %v1256_v23 = vmul.f32 %v3745_v56, %v1253_v61  ;;  %v1243_v24 = vrot.slane %v1237_v19, 1 }
 0x11b   : > { %v1244_v36 = vrot.slane %v1238_v14, 1  ;;  %v1246_v42 = vrot.slane %v1239_v15, 1  ;;  %v1260_v8 = vrot.slane %v1254_v17, 1  ;;  %v1228_v25 = vadd.f32 %v1226_v9, %v1194_v54 }
 0x11c   : > { %v1261_v26 = vrot.slane %v1255_v46, 1  ;;  %v1263_v27 = vrot.slane %v1256_v23, 1  ;;  %v1270_v47 = vstv %s3738_s3  ;;  %v1287_v10 = vstv %s3741_s16 }
 0x11d   : > { %v1245_v48 = vsel %vm239_vm0, %v1243_v24, %v1244_v36  ;;  %v1271_v7 = vmul.f32 %v3726_v34, %v1270_v47  ;;  %v1272_v53 = vmul.f32 %v3729_v37, %v1270_v47  ;;  %v1233_v0 = vadd.f32 %v1231_v20, %v1210_v62 }
 0x11e   : > { %v1234_v29 = vadd.f32 %v1232_v21, %v1211_v63  ;;  %v1247_v31 = vsel %vm239_vm0, %v1244_v36, %v1246_v42  ;;  %v1262_v32 = vsel %vm239_vm0, %v1260_v8, %v1261_v26  ;;  %v1250_v33 = vadd.f32 %v1245_v48, %v1221_v35 }
 0x11f   : > { %v1264_v16 = vsel %vm239_vm0, %v1261_v26, %v1263_v27  ;;  %v1273_v38 = vmul.f32 %v3745_v56, %v1270_v47  ;;  %v1277_v40 = vrot.slane %v1271_v7, 1  ;;  %v1278_v41 = vrot.slane %v1272_v53, 1 }
 0x120   : > { %v1288_v43 = vmul.f32 %v3726_v34, %v1287_v10  ;;  %v1289_v44 = vmul.f32 %v3729_v37, %v1287_v10  ;;  %v1290_v45 = vmul.f32 %v3745_v56, %v1287_v10  ;;  %v1251_v49 = vadd.f32 %v1247_v31, %v1222_v58 }
 0x121   : > { %v1267_v50 = vadd.f32 %v1262_v32, %v1227_v18  ;;  %v1280_v39 = vrot.slane %v1273_v38, 1  ;;  %v1304_v51 = vstv %s3756_s24  ;;  %v1268_v13 = vadd.f32 %v1264_v16, %v1228_v25 }
 0x122   : > { %v1294_v52 = vrot.slane %v1288_v43, 2  ;;  %v1295_v11 = vrot.slane %v1289_v44, 2  ;;  %v1297_v12 = vrot.slane %v1290_v45, 2  ;;  %v1279_v22 = vsel %vm239_vm0, %v1277_v40, %v1278_v41 }
 0x123   : > { %v1305_v28 = vmul.f32 %v3726_v34, %v1304_v51  ;;  %v1306_v30 = vmul.f32 %v3729_v37, %v1304_v51  ;;  %v1321_v54 = vstv %s3762_s17  ;;  %v1281_v55 = vsel %vm239_vm0, %v1278_v41, %v1280_v39 }
 0x124   : > { %v1296_v35 = vsel %vm291_vm1, %v1294_v52, %v1295_v11  ;;  %v1298_v57 = vsel %vm291_vm1, %v1295_v11, %v1297_v12  ;;  %v1307_v58 = vmul.f32 %v3745_v56, %v1304_v51  ;;  %v1322_v9 = vmul.f32 %v3726_v34, %v1321_v54 }
 0x125   : > { %v1301_v59 = vadd.f32 %v1296_v35, %v1250_v33  ;;  %v1302_v60 = vadd.f32 %v1298_v57, %v1251_v49  ;;  %v1311_v61 = vrot.slane %v1305_v28, 2  ;;  %v1312_v62 = vrot.slane %v1306_v30, 2 }
 0x126   : > { %v1314_v63 = vrot.slane %v1307_v58, 2  ;;  %v1323_v18 = vmul.f32 %v3729_v37, %v1321_v54  ;;  %v1324_v19 = vmul.f32 %v3745_v56, %v1321_v54  ;;  %v1284_v14 = vadd.f32 %v1279_v22, %v1233_v0 }
 0x127   : > { %v1285_v15 = vadd.f32 %v1281_v55, %v1234_v29  ;;  %v1313_v17 = vsel %vm291_vm1, %v1311_v61, %v1312_v62  ;;  %2861 = vtanh.f32 %v1301_v59  ;;  %v1328_v46 = vrot.slane %v1322_v9, 2 }
 0x128   : > { %v1315_v20 = vsel %vm291_vm1, %v1312_v62, %v1314_v63  ;;  %v1318_v21 = vadd.f32 %v1313_v17, %v1267_v50  ;;  %v1329_v23 = vrot.slane %v1323_v18, 2  ;;  %v1331_v36 = vrot.slane %v1324_v19, 2 }
 0x129   : > { %v1319_v24 = vadd.f32 %v1315_v20, %v1268_v13  ;;  %2863 = vtanh.f32 %v1302_v60 }
 0x12a   : > { %v1330_v42 = vsel %vm291_vm1, %v1328_v46, %v1329_v23  ;;  %2865 = vtanh.f32 %v1318_v21  ;;  %v1332_v34 = vsel %vm291_vm1, %v1329_v23, %v1331_v36 }
 0x12b   : > { %v1335_v37 = vadd.f32 %v1330_v42, %v1284_v14  ;;  %2867 = vtanh.f32 %v1319_v24  ;;  %v1336_v56 = vadd.f32 %v1332_v34, %v1285_v15 }
 0x12d   : > { %2869 = vtanh.f32 %v1335_v37 }
 0x12e   : > { %2871 = vtanh.f32 %v1336_v56 }
 0x131   : > { %v2862_v8 = vpop.eup %2861 }
 0x132   : > { %v1339_v25 = vmul.f32 0.5, %v2862_v8 }
 0x133   : > { %v2864_v26 = vpop.eup %2863 }
 0x134   : > { %v2866_v27 = vpop.eup %2865  ;;  %v1340_v47 = vmul.f32 0.5, %v2864_v26  ;;  %v1341_v48 = vadd.f32 0.5, %v1339_v25 }
 0x135   : > { %v2868_v7 = vpop.eup %2867  ;;  %v1348_v53 = vmul.f32 0.5, %v2866_v27 }
 0x136   : > { %v1342_v10 = vadd.f32 0.5, %v1340_v47  ;;  %2723 = vst [vmem:[%s2563_s19 + $0x19] sm:$0xff] %v1341_v48  ;;  %v1349_v0 = vmul.f32 0.5, %v2868_v7 }
 0x137   : > { %v2870_v29 = vpop.eup %2869  ;;  %v1350_v31 = vadd.f32 0.5, %v1348_v53  ;;  %206 = sbr.rel (!%p204_p6) target bundleno = 109 (0x6d), region = 102 }
 0x138   : > { %v2872_v32 = vpop.eup %2871  ;;  %2724 = vst [vmem:[%s2563_s19 + $0x21] sm:$0xff] %v1342_v10  ;;  %v1351_v33 = vadd.f32 0.5, %v1349_v0  ;;  %v1357_v16 = vmul.f32 0.5, %v2870_v29 }
 0x139   : > { %2725 = vst [vmem:[%s2563_s19 + $0x1c9] sm:$0xff] %v1350_v31  ;;  %v1358_v38 = vmul.f32 0.5, %v2872_v32 }
 0x13a   : > { %2726 = vst [vmem:[%s2563_s19 + $0x1d1] sm:$0xff] %v1351_v33  ;;  %v1359_v40 = vadd.f32 0.5, %v1357_v16 }
 0x13b   : > { %v1360_v41 = vadd.f32 0.5, %v1358_v38 }
 0x13c   : > { %2727 = vst [vmem:[%s2563_s19 + $0x379] sm:$0xff] %v1359_v40 }
 0x13d   : > { %2728 = vst [vmem:[%s2563_s19 + $0x381] sm:$0xff] %v1360_v41 }
 0x13e LB: > { %s1375_s20 = sld [smem:[#allocation7]]  ;;  %s2729_s21 = sld [smem:[#allocation7 + $0x1b]]  ;;  %s2953_s18 = sphi %s3797_s18, %s1369_s18  }
 0x13f   : > { %s1370_s22 = smul.u32 24, %s2953_s18  ;;  %s2730_s23 = sld [smem:[#allocation7 + $0x36]] }
 0x140   : > { %s2731_s25 = sld [smem:[#allocation7 + $0x1]]  ;;  %s2732_s26 = sld [smem:[#allocation7 + $0x1c]] }
 0x141   : > { %s3803_s2 = scalar_lea.vmem [#allocation2], %s1370_s22  ;;  %s3811_s0 = sld [smem:[#allocation7 + $0x37]] }
 0x142   : > { %s3813_s4 = sld [smem:[#allocation7 + $0x2]]  ;;  %s3832_s10 = sld [smem:[#allocation7 + $0x1d]] }
 0x143   : > { %s3840_s11 = sld [smem:[#allocation7 + $0x38]]  ;;  %s3842_s15 = sld [smem:[#allocation7 + $0x3]] }
 0x144   : > { %v3806_v1 = vld [vmem:[%s3803_s2] sm:$0xff]  ;;  %v3809_v2 = vld [vmem:[%s3803_s2 + $0x8] sm:$0xff]  ;;  %v1376_v3 = vstv %s1375_s20  ;;  %v1382_v45 = vstv %s2729_s21  ;;  %s3859_s1 = sld [smem:[#allocation7 + $0x1e]]  ;;  %s3868_s27 = sld [smem:[#allocation7 + $0x39]] }
 0x145   : > { %v1377_v43 = vmul.f32 %v1376_v3, %v3806_v1  ;;  %v1378_v44 = vmul.f32 %v1376_v3, %v3809_v2  ;;  %v1383_v49 = vmul.f32 %v1382_v45, %v3806_v1  ;;  %v1384_v50 = vmul.f32 %v1382_v45, %v3809_v2  ;;  %v3820_v51 = vld [vmem:[%s3803_s2 + $0x10] sm:$0x3]  ;;  %s3870_s28 = sld [smem:[#allocation7 + $0x4]]  ;;  %s3884_s29 = sld [smem:[#allocation7 + $0x1f]] }
 0x146   : > { %v1388_v39 = vstv %s2730_s23  ;;  %v1394_v30 = vstv %s2731_s25  ;;  %v1412_v54 = vstv %s2732_s26  ;;  %s3889_s30 = sld [smem:[#allocation7 + $0x3a]]  ;;  %s3894_s6 = sld [smem:[#allocation7 + $0x5]] }
 0x147   : > { %v1379_v13 = vadd.f32 %v1377_v43, %v197_v4  ;;  %v1380_v52 = vadd.f32 %v1378_v44, %v197_v4  ;;  %v1389_v11 = vmul.f32 %v1388_v39, %v3806_v1  ;;  %v1390_v12 = vmul.f32 %v1388_v39, %v3809_v2  ;;  %v3880_v39 = vld [vmem:[%s3803_s2 + $0x20] sm:$0xff]  ;;  %s3896_s7 = sld [smem:[#allocation7 + $0x20]]  ;;  %s3921_s8 = sld [smem:[#allocation7 + $0x3b]] }
 0x148   : > { %v1385_v22 = vadd.f32 %v1383_v49, %v199_v5  ;;  %v1386_v28 = vadd.f32 %v1384_v50, %v199_v5  ;;  %v1395_v57 = vmul.f32 %v1394_v30, %v3806_v1  ;;  %v1396_v58 = vmul.f32 %v1394_v30, %v3809_v2  ;;  %v3877_v50 = vld [vmem:[%s3803_s2 + $0x18] sm:$0xff]  ;;  %s3923_s9 = sld [smem:[#allocation7 + $0x6]]  ;;  %s3931_s3 = sld [smem:[#allocation7 + $0x21]] }
 0x149   : > { %v1391_v55 = vadd.f32 %v1389_v11, %v201_v6  ;;  %v1392_v35 = vadd.f32 %v1390_v12, %v201_v6  ;;  %v1397_v59 = vmul.f32 %v1394_v30, %v3820_v51  ;;  %v1413_v60 = vmul.f32 %v1412_v54, %v3806_v1  ;;  %s3939_s16 = sld [smem:[#allocation7 + $0x3c]]  ;;  %s3942_s24 = sld [smem:[#allocation7 + $0x7]] }
 0x14a   : > { %v1414_v61 = vmul.f32 %v1412_v54, %v3809_v2  ;;  %v1415_v62 = vmul.f32 %v1412_v54, %v3820_v51  ;;  %v1402_v63 = vrot.slane %v1395_v57, 1  ;;  %v1403_v9 = vrot.slane %v1396_v58, 1  ;;  %s3954_s17 = sld [smem:[#allocation7 + $0x22]]  ;;  %s3958_s19 = sld [smem:[#allocation7 + $0x3d]] }
 0x14b   : > { %v1429_v18 = vstv %s3811_s0  ;;  %v1446_v19 = vstv %s3813_s4  ;;  %v1405_v14 = vrot.slane %v1397_v59, 1  ;;  %v1419_v15 = vrot.slane %v1413_v60, 1  ;;  %s3960_s20 = sld [smem:[#allocation7 + $0x8]]  ;;  %s3985_s21 = sld [smem:[#allocation7 + $0x23]] }
 0x14c   : > { %v1420_v17 = vrot.slane %v1414_v61, 1  ;;  %v1422_v20 = vrot.slane %v1415_v62, 1  ;;  %v1404_v21 = vsel %vm239_vm0, %v1402_v63, %v1403_v9  ;;  %v1430_v46 = vmul.f32 %v1429_v18, %v3806_v1  ;;  %s3987_s22 = sld [smem:[#allocation7 + $0x3e]]  ;;  %s3997_s23 = sld [smem:[#allocation7 + $0x9]] }
 0x14d   : > { %v1431_v23 = vmul.f32 %v1429_v18, %v3809_v2  ;;  %v1432_v24 = vmul.f32 %v1429_v18, %v3820_v51  ;;  %v1406_v36 = vsel %vm239_vm0, %v1403_v9, %v1405_v14  ;;  %v1409_v42 = vadd.f32 %v1404_v21, %v1379_v13  ;;  %s4003_s25 = sld [smem:[#allocation7 + $0x24]]  ;;  %s4005_s26 = sld [smem:[#allocation7 + $0x3f]] }
 0x14e   : > { %v1421_v34 = vsel %vm239_vm0, %v1419_v15, %v1420_v17  ;;  %v1423_v37 = vsel %vm239_vm0, %v1420_v17, %v1422_v20  ;;  %v1410_v56 = vadd.f32 %v1406_v36, %v1380_v52  ;;  %v1436_v26 = vrot.slane %v1430_v46, 1  ;;  %s4016_s0 = sld [smem:[#allocation7 + $0xa]]  ;;  %s4018_s4 = sld [smem:[#allocation7 + $0x25]] }
 0x14f   : > { %v1426_v8 = vadd.f32 %v1421_v34, %v1385_v22  ;;  %v1427_v25 = vadd.f32 %v1423_v37, %v1386_v28  ;;  %v1437_v27 = vrot.slane %v1431_v23, 1  ;;  %v1439_v47 = vrot.slane %v1432_v24, 1 }
 0x150   : > { %v1447_v48 = vmul.f32 %v1446_v19, %v3806_v1  ;;  %v1448_v7 = vmul.f32 %v1446_v19, %v3809_v2  ;;  %v1449_v53 = vmul.f32 %v1446_v19, %v3820_v51  ;;  %v1464_v10 = vstv %s3832_s10  ;;  %v3901_v19 = vld [vmem:[%s3803_s2 + $0x28] sm:$0x3]  ;;  %s4027_s10 = sld [smem:[#allocation7 + $0x40]] }
 0x151   : > { %v1481_v0 = vstv %s3840_s11  ;;  %v1504_v29 = vstv %s3842_s15  ;;  %v1438_v31 = vsel %vm239_vm0, %v1436_v26, %v1437_v27  ;;  %v1440_v32 = vsel %vm239_vm0, %v1437_v27, %v1439_v47  ;;  %s4050_s11 = sld [smem:[#allocation7 + $0xb]]  ;;  %s4052_s15 = sld [smem:[#allocation7 + $0x26]] }
 0x152   : > { %v1454_v33 = vrot.slane %v1447_v48, 2  ;;  %v1455_v16 = vrot.slane %v1448_v7, 2  ;;  %v1443_v38 = vadd.f32 %v1438_v31, %v1391_v55  ;;  %v1444_v40 = vadd.f32 %v1440_v32, %v1392_v35 }
 0x153   : > { %v1457_v41 = vrot.slane %v1449_v53, 2  ;;  %v1465_v3 = vmul.f32 %v1464_v10, %v3806_v1  ;;  %v1466_v44 = vmul.f32 %v1464_v10, %v3809_v2  ;;  %v1467_v45 = vmul.f32 %v1464_v10, %v3820_v51 }
 0x154   : > { %v1456_v43 = vsel %vm291_vm1, %v1454_v33, %v1455_v16  ;;  %v1482_v49 = vmul.f32 %v1481_v0, %v3806_v1  ;;  %v1483_v12 = vmul.f32 %v1481_v0, %v3809_v2  ;;  %v1484_v54 = vmul.f32 %v1481_v0, %v3820_v51 }
 0x155   : > { %v1458_v13 = vsel %vm291_vm1, %v1455_v16, %v1457_v41  ;;  %v1461_v52 = vadd.f32 %v1456_v43, %v1409_v42  ;;  %v1471_v11 = vrot.slane %v1465_v3, 2  ;;  %v1472_v28 = vrot.slane %v1466_v44, 2 }
 0x156   : > { %v1462_v22 = vadd.f32 %v1458_v13, %v1410_v56  ;;  %v1474_v30 = vrot.slane %v1467_v45, 2  ;;  %v1488_v55 = vrot.slane %v1482_v49, 2  ;;  %v1489_v1 = vrot.slane %v1483_v12, 2 }
 0x157   : > { %v1505_v35 = vmul.f32 %v3877_v50, %v1504_v29  ;;  %v1506_v57 = vmul.f32 %v3880_v39, %v1504_v29  ;;  %v1473_v58 = vsel %vm291_vm1, %v1471_v11, %v1472_v28  ;;  %v1491_v59 = vrot.slane %v1484_v54, 2 }
 0x158   : > { %v1475_v2 = vsel %vm291_vm1, %v1472_v28, %v1474_v30  ;;  %v1510_v60 = vstv %s3859_s1  ;;  %v1478_v51 = vadd.f32 %v1473_v58, %v1426_v8  ;;  %v1490_v62 = vsel %vm291_vm1, %v1488_v55, %v1489_v1  ;;  %s4054_s1 = sld [smem:[#allocation7 + $0x41]] }
 0x159   : > { %v1479_v61 = vadd.f32 %v1475_v2, %v1427_v25  ;;  %v1507_v63 = vadd.f32 %v1505_v35, %v1461_v52  ;;  %v1492_v9 = vsel %vm291_vm1, %v1489_v1, %v1491_v59  ;;  %v1495_v18 = vadd.f32 %v1490_v62, %v1443_v38 }
 0x15a   : > { %v1508_v14 = vadd.f32 %v1506_v57, %v1462_v22  ;;  %v1511_v15 = vmul.f32 %v3877_v50, %v1510_v60  ;;  %v1496_v17 = vadd.f32 %v1492_v9, %v1444_v40  ;;  %v1512_v20 = vmul.f32 %v3880_v39, %v1510_v60 }
 0x15b   : > { %v1516_v21 = vstv %s3868_s27  ;;  %v1522_v46 = vstv %s3870_s28  ;;  %v1539_v8 = vstv %s3884_s29  ;;  %v1556_v29 = vstv %s3889_s30  ;;  %s4056_s27 = sld [smem:[#allocation7 + $0xc]]  ;;  %s4080_s28 = sld [smem:[#allocation7 + $0x27]] }
 0x15c   : > { %v1513_v23 = vadd.f32 %v1511_v15, %v1478_v51  ;;  %v1517_v24 = vmul.f32 %v3877_v50, %v1516_v21  ;;  %v1518_v36 = vmul.f32 %v3880_v39, %v1516_v21  ;;  %v1523_v42 = vmul.f32 %v3877_v50, %v1522_v46  ;;  %v3951_v21 = vld [vmem:[%s3803_s2 + $0x38] sm:$0xff]  ;;  %s4084_s29 = sld [smem:[#allocation7 + $0x42]]  ;;  %s4088_s30 = sld [smem:[#allocation7 + $0xd]] }
 0x15d   : > { %v1514_v34 = vadd.f32 %v1512_v20, %v1479_v61  ;;  %v1524_v37 = vmul.f32 %v3880_v39, %v1522_v46  ;;  %v1525_v56 = vmul.f32 %v3901_v19, %v1522_v46  ;;  %v1540_v47 = vmul.f32 %v3877_v50, %v1539_v8  ;;  %v3948_v20 = vld [vmem:[%s3803_s2 + $0x30] sm:$0xff] }
 0x15e   : > { %v1519_v25 = vadd.f32 %v1517_v24, %v1495_v18  ;;  %v1520_v26 = vadd.f32 %v1518_v36, %v1496_v17  ;;  %v1529_v27 = vrot.slane %v1523_v42, 1  ;;  %v1541_v53 = vmul.f32 %v3880_v39, %v1539_v8 }
 0x15f   : > { %v1530_v48 = vrot.slane %v1524_v37, 1  ;;  %v1532_v7 = vrot.slane %v1525_v56, 1  ;;  %v1542_v10 = vmul.f32 %v3901_v19, %v1539_v8  ;;  %v1546_v0 = vrot.slane %v1540_v47, 1 }
 0x160   : > { %v1573_v31 = vstv %s3894_s6  ;;  %v1590_v32 = vstv %s3896_s7  ;;  %v1547_v38 = vrot.slane %v1541_v53, 1  ;;  %v1557_v43 = vmul.f32 %v3877_v50, %v1556_v29  ;;  %s4090_s6 = sld [smem:[#allocation7 + $0x28]]  ;;  %s4107_s7 = sld [smem:[#allocation7 + $0x43]] }
 0x161   : > { %v1531_v33 = vsel %vm239_vm0, %v1529_v27, %v1530_v48  ;;  %v1533_v16 = vsel %vm239_vm0, %v1530_v48, %v1532_v7  ;;  %v1549_v40 = vrot.slane %v1542_v10, 1  ;;  %v1558_v44 = vmul.f32 %v3880_v39, %v1556_v29 }
 0x162   : > { %v1536_v41 = vadd.f32 %v1531_v33, %v1507_v63  ;;  %v1537_v3 = vadd.f32 %v1533_v16, %v1508_v14  ;;  %v1548_v45 = vsel %vm239_vm0, %v1546_v0, %v1547_v38  ;;  %v1559_v13 = vmul.f32 %v3901_v19, %v1556_v29  ;;  %v3971_v29 = vld [vmem:[%s3803_s2 + $0x40] sm:$0x3] }
 0x163   : > { %v1550_v49 = vsel %vm239_vm0, %v1547_v38, %v1549_v40  ;;  %v1574_v52 = vmul.f32 %v3877_v50, %v1573_v31  ;;  %v1553_v11 = vadd.f32 %v1548_v45, %v1513_v23  ;;  %v1563_v22 = vrot.slane %v1557_v43, 1 }
 0x164   : > { %v1554_v12 = vadd.f32 %v1550_v49, %v1514_v34  ;;  %v1564_v28 = vrot.slane %v1558_v44, 1  ;;  %v1566_v30 = vrot.slane %v1559_v13, 1  ;;  %v1575_v54 = vmul.f32 %v3880_v39, %v1573_v31 }
 0x165   : > { %v1576_v55 = vmul.f32 %v3901_v19, %v1573_v31  ;;  %v1580_v1 = vrot.slane %v1574_v52, 2  ;;  %v1591_v57 = vmul.f32 %v3877_v50, %v1590_v32  ;;  %v1592_v58 = vmul.f32 %v3880_v39, %v1590_v32 }
 0x166   : > { %v1565_v35 = vsel %vm239_vm0, %v1563_v22, %v1564_v28  ;;  %v1593_v2 = vmul.f32 %v3901_v19, %v1590_v32  ;;  %v1567_v59 = vsel %vm239_vm0, %v1564_v28, %v1566_v30  ;;  %v1581_v51 = vrot.slane %v1575_v54, 2 }
 0x167   : > { %v1570_v60 = vadd.f32 %v1565_v35, %v1519_v25  ;;  %v1583_v61 = vrot.slane %v1576_v55, 2  ;;  %v1571_v62 = vadd.f32 %v1567_v59, %v1520_v26  ;;  %v1597_v63 = vrot.slane %v1591_v57, 2 }
 0x168   : > { %v1598_v9 = vrot.slane %v1592_v58, 2  ;;  %v1600_v18 = vrot.slane %v1593_v2, 2  ;;  %v1582_v14 = vsel %vm291_vm1, %v1580_v1, %v1581_v51  ;;  %v1607_v17 = vstv %s3921_s8  ;;  %s4109_s8 = sld [smem:[#allocation7 + $0xe]] }
 0x169   : > { %v1584_v15 = vsel %vm291_vm1, %v1581_v51, %v1583_v61  ;;  %v1630_v46 = vstv %s3923_s9  ;;  %v1587_v23 = vadd.f32 %v1582_v14, %v1536_v41  ;;  %v1608_v56 = vmul.f32 %v3877_v50, %v1607_v17  ;;  %s4124_s9 = sld [smem:[#allocation7 + $0x29]] }
 0x16a   : > { %v1588_v24 = vadd.f32 %v1584_v15, %v1537_v3  ;;  %v1599_v36 = vsel %vm291_vm1, %v1597_v63, %v1598_v9  ;;  %v1601_v42 = vsel %vm291_vm1, %v1598_v9, %v1600_v18  ;;  %v1609_v8 = vmul.f32 %v3880_v39, %v1607_v17 }
 0x16b   : > { %v1604_v34 = vadd.f32 %v1599_v36, %v1553_v11  ;;  %v1605_v37 = vadd.f32 %v1601_v42, %v1554_v12  ;;  %v1610_v25 = vmul.f32 %v3901_v19, %v1607_v17  ;;  %v1631_v26 = vmul.f32 %v3948_v20, %v1630_v46 }
 0x16c   : > { %v1632_v27 = vmul.f32 %v3951_v21, %v1630_v46  ;;  %v1636_v47 = vstv %s3931_s3  ;;  %v1614_v48 = vrot.slane %v1608_v56, 2  ;;  %v1615_v7 = vrot.slane %v1609_v8, 2  ;;  %s4130_s3 = sld [smem:[#allocation7 + $0x44]] }
 0x16d   : > { %v1637_v53 = vmul.f32 %v3948_v20, %v1636_v47  ;;  %v1638_v10 = vmul.f32 %v3951_v21, %v1636_v47  ;;  %v1617_v0 = vrot.slane %v1610_v25, 2  ;;  %v1633_v50 = vadd.f32 %v1631_v26, %v1587_v23 }
 0x16e   : > { %v1634_v39 = vadd.f32 %v1632_v27, %v1588_v24  ;;  %v1642_v19 = vstv %s3939_s16  ;;  %v1616_v31 = vsel %vm291_vm1, %v1614_v48, %v1615_v7  ;;  %v1648_v3 = vstv %s3942_s24  ;;  %s4132_s16 = sld [smem:[#allocation7 + $0xf]]  ;;  %s4145_s24 = sld [smem:[#allocation7 + $0x2a]] }
 0x16f   : > { %v1639_v32 = vadd.f32 %v1637_v53, %v1604_v34  ;;  %v1640_v33 = vadd.f32 %v1638_v10, %v1605_v37  ;;  %v1643_v16 = vmul.f32 %v3948_v20, %v1642_v19  ;;  %v1618_v38 = vsel %vm291_vm1, %v1615_v7, %v1617_v0 }
 0x170   : > { %v1621_v40 = vadd.f32 %v1616_v31, %v1570_v60  ;;  %v1644_v41 = vmul.f32 %v3951_v21, %v1642_v19  ;;  %v1622_v43 = vadd.f32 %v1618_v38, %v1571_v62  ;;  %v1649_v44 = vmul.f32 %v3948_v20, %v1648_v3 }
 0x171   : > { %v1650_v45 = vmul.f32 %v3951_v21, %v1648_v3  ;;  %v1651_v49 = vmul.f32 %v3971_v29, %v1648_v3  ;;  %v1665_v52 = vstv %s3954_s17  ;;  %v1682_v11 = vstv %s3958_s19  ;;  %s4154_s17 = sld [smem:[#allocation7 + $0x45]]  ;;  %s4168_s19 = sld [smem:[#allocation7 + $0x10]] }
 0x172   : > { %v1645_v13 = vadd.f32 %v1643_v16, %v1621_v40  ;;  %v1699_v12 = vstv %s3960_s20  ;;  %v1646_v22 = vadd.f32 %v1644_v41, %v1622_v43  ;;  %v1655_v28 = vrot.slane %v1649_v44, 1  ;;  %v4025_v40 = vld [vmem:[%s3803_s2 + $0x1b0] sm:$0xff]  ;;  %s4170_s20 = sld [smem:[#allocation7 + $0x2b]] }
 0x173   : > { %v1656_v30 = vrot.slane %v1650_v45, 1  ;;  %v1658_v54 = vrot.slane %v1651_v49, 1  ;;  %v1666_v55 = vmul.f32 %v3948_v20, %v1665_v52  ;;  %v1667_v1 = vmul.f32 %v3951_v21, %v1665_v52  ;;  %v4031_v49 = vld [vmem:[%s3803_s2 + $0x1b8] sm:$0xff] }
 0x174   : > { %v1668_v35 = vmul.f32 %v3971_v29, %v1665_v52  ;;  %v1683_v57 = vmul.f32 %v3948_v20, %v1682_v11  ;;  %v1684_v59 = vmul.f32 %v3951_v21, %v1682_v11  ;;  %v1685_v60 = vmul.f32 %v3971_v29, %v1682_v11 }
 0x175   : > { %v1657_v58 = vsel %vm239_vm0, %v1655_v28, %v1656_v30  ;;  %v1659_v2 = vsel %vm239_vm0, %v1656_v30, %v1658_v54  ;;  %v1672_v62 = vrot.slane %v1666_v55, 1  ;;  %v1673_v63 = vrot.slane %v1667_v1, 1  ;;  %v4041_v1 = vld [vmem:[%s3803_s2 + $0x1c0] sm:$0x3] }
 0x176   : > { %v1662_v51 = vadd.f32 %v1657_v58, %v1633_v50  ;;  %v1663_v61 = vadd.f32 %v1659_v2, %v1634_v39  ;;  %v1675_v9 = vrot.slane %v1668_v35, 1  ;;  %v1689_v18 = vrot.slane %v1683_v57, 1 }
 0x177   : > { %v1690_v14 = vrot.slane %v1684_v59, 1  ;;  %v1692_v15 = vrot.slane %v1685_v60, 1  ;;  %v1674_v17 = vsel %vm239_vm0, %v1672_v62, %v1673_v63  ;;  %v1700_v46 = vmul.f32 %v3948_v20, %v1699_v12 }
 0x178   : > { %v1701_v23 = vmul.f32 %v3951_v21, %v1699_v12  ;;  %v1702_v24 = vmul.f32 %v3971_v29, %v1699_v12  ;;  %v1676_v36 = vsel %vm239_vm0, %v1673_v63, %v1675_v9  ;;  %v1679_v42 = vadd.f32 %v1674_v17, %v1639_v32 }
 0x179   : > { %v1691_v34 = vsel %vm239_vm0, %v1689_v18, %v1690_v14  ;;  %v1693_v37 = vsel %vm239_vm0, %v1690_v14, %v1692_v15  ;;  %v1680_v56 = vadd.f32 %v1676_v36, %v1640_v33  ;;  %v1706_v26 = vrot.slane %v1700_v46, 2 }
 0x17a   : > { %v1696_v8 = vadd.f32 %v1691_v34, %v1645_v13  ;;  %v1697_v25 = vadd.f32 %v1693_v37, %v1646_v22  ;;  %v1707_v27 = vrot.slane %v1701_v23, 2  ;;  %v1709_v47 = vrot.slane %v1702_v24, 2 }
 0x17b   : > { %v1716_v48 = vstv %s3985_s21  ;;  %v1733_v7 = vstv %s3987_s22  ;;  %v1761_v13 = vstv %s4003_s25  ;;  %s4175_s21 = sld [smem:[#allocation7 + $0x46]]  ;;  %s4177_s22 = sld [smem:[#allocation7 + $0x11]] }
 0x17c   : > { %v1717_v53 = vmul.f32 %v3948_v20, %v1716_v48  ;;  %v1718_v10 = vmul.f32 %v3951_v21, %v1716_v48  ;;  %v1719_v0 = vmul.f32 %v3971_v29, %v1716_v48  ;;  %v1734_v50 = vmul.f32 %v3948_v20, %v1733_v7  ;;  %s4203_s25 = sld [smem:[#allocation7 + $0x47]] }
 0x17d   : > { %v1708_v39 = vsel %vm291_vm1, %v1706_v26, %v1707_v27  ;;  %v1710_v19 = vsel %vm291_vm1, %v1707_v27, %v1709_v47  ;;  %v1735_v31 = vmul.f32 %v3951_v21, %v1733_v7  ;;  %v1736_v32 = vmul.f32 %v3971_v29, %v1733_v7 }
 0x17e   : > { %v1713_v33 = vadd.f32 %v1708_v39, %v1662_v51  ;;  %v1714_v16 = vadd.f32 %v1710_v19, %v1663_v61  ;;  %v1723_v38 = vrot.slane %v1717_v53, 2  ;;  %v1724_v20 = vrot.slane %v1718_v10, 2 }
 0x17f   : > { %v1726_v41 = vrot.slane %v1719_v0, 2  ;;  %v1740_v3 = vrot.slane %v1734_v50, 2  ;;  %v1741_v43 = vrot.slane %v1735_v31, 2  ;;  %v1743_v44 = vrot.slane %v1736_v32, 2 }
 0x180   : > { %v1725_v45 = vsel %vm291_vm1, %v1723_v38, %v1724_v20  ;;  %v1755_v21 = vstv %s3997_s23  ;;  %v1767_v29 = vstv %s4005_s26  ;;  %v1762_v57 = vmul.f32 %v4025_v40, %v1761_v13  ;;  %s4201_s23 = sld [smem:[#allocation7 + $0x2c]]  ;;  %s4206_s26 = sld [smem:[#allocation7 + $0x12]] }
 0x181   : > { %v1727_v52 = vsel %vm291_vm1, %v1724_v20, %v1726_v41  ;;  %v1730_v11 = vadd.f32 %v1725_v45, %v1679_v42  ;;  %v1742_v12 = vsel %vm291_vm1, %v1740_v3, %v1741_v43  ;;  %v1744_v22 = vsel %vm291_vm1, %v1741_v43, %v1743_v44 }
 0x182   : > { %v1731_v28 = vadd.f32 %v1727_v52, %v1680_v56  ;;  %v1747_v30 = vadd.f32 %v1742_v12, %v1696_v8  ;;  %v1748_v54 = vadd.f32 %v1744_v22, %v1697_v25  ;;  %v1756_v55 = vmul.f32 %v4025_v40, %v1755_v21 }
 0x183   : > { %v1757_v35 = vmul.f32 %v4031_v49, %v1755_v21  ;;  %v1763_v58 = vmul.f32 %v4031_v49, %v1761_v13  ;;  %v1768_v2 = vmul.f32 %v4025_v40, %v1767_v29  ;;  %v1769_v60 = vmul.f32 %v4031_v49, %v1767_v29 }
 0x184   : > { %v1758_v59 = vadd.f32 %v1756_v55, %v1713_v33  ;;  %v1773_v51 = vstv %s4016_s0  ;;  %v1790_v61 = vstv %s4018_s4  ;;  %v1764_v63 = vadd.f32 %v1762_v57, %v1730_v11  ;;  %s4220_s0 = sld [smem:[#allocation7 + $0x2d]]  ;;  %s4227_s4 = sld [smem:[#allocation7 + $0x48]] }
 0x185   : > { %v1759_v62 = vadd.f32 %v1757_v35, %v1714_v16  ;;  %v1765_v9 = vadd.f32 %v1763_v58, %v1731_v28  ;;  %v1770_v18 = vadd.f32 %v1768_v2, %v1747_v30  ;;  %v1771_v14 = vadd.f32 %v1769_v60, %v1748_v54 }
 0x186   : > { %v1774_v15 = vmul.f32 %v4025_v40, %v1773_v51  ;;  %v1775_v17 = vmul.f32 %v4031_v49, %v1773_v51  ;;  %v1776_v46 = vmul.f32 %v4041_v1, %v1773_v51  ;;  %v1791_v23 = vmul.f32 %v4025_v40, %v1790_v61  ;;  %v4097_v51 = vld [vmem:[%s3803_s2 + $0x1c8] sm:$0xff] }
 0x187   : > { %v1792_v24 = vmul.f32 %v4031_v49, %v1790_v61  ;;  %v1793_v36 = vmul.f32 %v4041_v1, %v1790_v61  ;;  %v1807_v42 = vstv %s4027_s10  ;;  %v1824_v38 = vstv %s4050_s11  ;;  %s4229_s10 = sld [smem:[#allocation7 + $0x13]]  ;;  %s4244_s11 = sld [smem:[#allocation7 + $0x2e]] }
 0x188   : > { %v1780_v34 = vrot.slane %v1774_v15, 1  ;;  %v1781_v37 = vrot.slane %v1775_v17, 1  ;;  %v1783_v56 = vrot.slane %v1776_v46, 1  ;;  %v1808_v8 = vmul.f32 %v4025_v40, %v1807_v42 }
 0x189   : > { %v1797_v25 = vrot.slane %v1791_v23, 1  ;;  %v1798_v26 = vrot.slane %v1792_v24, 1  ;;  %v1800_v27 = vrot.slane %v1793_v36, 1  ;;  %v1809_v47 = vmul.f32 %v4031_v49, %v1807_v42 }
 0x18a   : > { %v1782_v48 = vsel %vm239_vm0, %v1780_v34, %v1781_v37  ;;  %v1784_v7 = vsel %vm239_vm0, %v1781_v37, %v1783_v56  ;;  %v1810_v53 = vmul.f32 %v4041_v1, %v1807_v42  ;;  %v1814_v10 = vrot.slane %v1808_v8, 1  ;;  %v4115_v56 = vld [vmem:[%s3803_s2 + $0x1d8] sm:$0x3] }
 0x18b   : > { %v1787_v0 = vadd.f32 %v1782_v48, %v1758_v59  ;;  %v1788_v50 = vadd.f32 %v1784_v7, %v1759_v62  ;;  %v1799_v39 = vsel %vm239_vm0, %v1797_v25, %v1798_v26  ;;  %v1801_v19 = vsel %vm239_vm0, %v1798_v26, %v1800_v27 }
 0x18c   : > { %v1804_v31 = vadd.f32 %v1799_v39, %v1764_v63  ;;  %v1805_v32 = vadd.f32 %v1801_v19, %v1765_v9  ;;  %v1815_v33 = vrot.slane %v1809_v47, 1  ;;  %v1817_v16 = vrot.slane %v1810_v53, 1 }
 0x18d   : > { %v1841_v20 = vstv %s4052_s15  ;;  %v1858_v41 = vstv %s4054_s1  ;;  %v1880_v3 = vstv %s4056_s27  ;;  %v1825_v45 = vmul.f32 %v4025_v40, %v1824_v38  ;;  %s4246_s15 = sld [smem:[#allocation7 + $0x49]]  ;;  %s4263_s1 = sld [smem:[#allocation7 + $0x14]] }
 0x18e   : > { %v1816_v43 = vsel %vm239_vm0, %v1814_v10, %v1815_v33  ;;  %v1818_v44 = vsel %vm239_vm0, %v1815_v33, %v1817_v16  ;;  %v1826_v21 = vmul.f32 %v4031_v49, %v1824_v38  ;;  %v1827_v52 = vmul.f32 %v4041_v1, %v1824_v38  ;;  %s4272_s27 = sld [smem:[#allocation7 + $0x2f]] }
 0x18f   : > { %v1821_v13 = vadd.f32 %v1816_v43, %v1770_v18  ;;  %v1822_v29 = vadd.f32 %v1818_v44, %v1771_v14  ;;  %v1842_v11 = vmul.f32 %v4025_v40, %v1841_v20  ;;  %v1831_v12 = vrot.slane %v1825_v45, 2  ;;  %v4101_v18 = vld [vmem:[%s3803_s2 + $0x1d0] sm:$0xff] }
 0x190   : > { %v1832_v22 = vrot.slane %v1826_v21, 2  ;;  %v1843_v28 = vmul.f32 %v4031_v49, %v1841_v20  ;;  %v1844_v30 = vmul.f32 %v4041_v1, %v1841_v20  ;;  %v1834_v54 = vrot.slane %v1827_v52, 2 }
 0x191   : > { %v1848_v55 = vrot.slane %v1842_v11, 2  ;;  %v1859_v35 = vmul.f32 %v4025_v40, %v1858_v41  ;;  %v1860_v57 = vmul.f32 %v4031_v49, %v1858_v41  ;;  %v1861_v60 = vmul.f32 %v4041_v1, %v1858_v41 }
 0x192   : > { %v1833_v58 = vsel %vm291_vm1, %v1831_v12, %v1832_v22  ;;  %v1849_v2 = vrot.slane %v1843_v28, 2  ;;  %v1851_v59 = vrot.slane %v1844_v30, 2  ;;  %v1835_v61 = vsel %vm291_vm1, %v1832_v22, %v1834_v54 }
 0x193   : > { %v1838_v62 = vadd.f32 %v1833_v58, %v1787_v0  ;;  %v1865_v63 = vrot.slane %v1859_v35, 2  ;;  %v1866_v9 = vrot.slane %v1860_v57, 2  ;;  %v1839_v40 = vadd.f32 %v1835_v61, %v1788_v50 }
 0x194   : > { %v1850_v49 = vsel %vm291_vm1, %v1848_v55, %v1849_v2  ;;  %v1852_v14 = vsel %vm291_vm1, %v1849_v2, %v1851_v59  ;;  %v1868_v15 = vrot.slane %v1861_v60, 2  ;;  %v1881_v23 = vmul.f32 %v4097_v51, %v1880_v3 }
 0x195   : > { %v1855_v17 = vadd.f32 %v1850_v49, %v1804_v31  ;;  %v1856_v1 = vadd.f32 %v1852_v14, %v1805_v32  ;;  %v1867_v46 = vsel %vm291_vm1, %v1865_v63, %v1866_v9  ;;  %v1882_v42 = vmul.f32 %v4101_v18, %v1880_v3 }
 0x196   : > { %v1869_v24 = vsel %vm291_vm1, %v1866_v9, %v1868_v15  ;;  %v1872_v36 = vadd.f32 %v1867_v46, %v1821_v13  ;;  %v1886_v34 = vstv %s4080_s28  ;;  %v1883_v8 = vadd.f32 %v1881_v23, %v1838_v62  ;;  %s4274_s28 = sld [smem:[#allocation7 + $0x4a]] }
 0x197   : > { %v1873_v37 = vadd.f32 %v1869_v24, %v1822_v29  ;;  %v1887_v25 = vmul.f32 %v4097_v51, %v1886_v34  ;;  %v1888_v26 = vmul.f32 %v4101_v18, %v1886_v34  ;;  %v1884_v27 = vadd.f32 %v1882_v42, %v1839_v40 }
 0x198   : > { %v1892_v47 = vstv %s4084_s29  ;;  %v1898_v48 = vstv %s4088_s30  ;;  %v1915_v7 = vstv %s4090_s6  ;;  %v1932_v13 = vstv %s4107_s7  ;;  %s4277_s29 = sld [smem:[#allocation7 + $0x15]]  ;;  %s4293_s30 = sld [smem:[#allocation7 + $0x30]] }
 0x199   : > { %v1889_v53 = vadd.f32 %v1887_v25, %v1855_v17  ;;  %v1890_v10 = vadd.f32 %v1888_v26, %v1856_v1  ;;  %v1893_v0 = vmul.f32 %v4097_v51, %v1892_v47  ;;  %v1894_v50 = vmul.f32 %v4101_v18, %v1892_v47  ;;  %v4163_v25 = vld [vmem:[%s3803_s2 + $0x1e0] sm:$0xff]  ;;  %v4166_v26 = vld [vmem:[%s3803_s2 + $0x1e8] sm:$0xff]  ;;  %s4299_s6 = sld [smem:[#allocation7 + $0x4b]]  ;;  %s4301_s7 = sld [smem:[#allocation7 + $0x16]] }
 0x19a   : > { %v1899_v39 = vmul.f32 %v4097_v51, %v1898_v48  ;;  %v1900_v19 = vmul.f32 %v4101_v18, %v1898_v48  ;;  %v1901_v31 = vmul.f32 %v4115_v56, %v1898_v48  ;;  %v1916_v32 = vmul.f32 %v4097_v51, %v1915_v7 }
 0x19b   : > { %v1895_v33 = vadd.f32 %v1893_v0, %v1872_v36  ;;  %v1896_v16 = vadd.f32 %v1894_v50, %v1873_v37  ;;  %v1917_v38 = vmul.f32 %v4101_v18, %v1915_v7  ;;  %v1918_v20 = vmul.f32 %v4115_v56, %v1915_v7 }
 0x19c   : > { %v1905_v41 = vrot.slane %v1899_v39, 1  ;;  %v1906_v3 = vrot.slane %v1900_v19, 1  ;;  %v1908_v43 = vrot.slane %v1901_v31, 1  ;;  %v1922_v44 = vrot.slane %v1916_v32, 1 }
 0x19d   : > { %v1923_v45 = vrot.slane %v1917_v38, 1  ;;  %v1925_v21 = vrot.slane %v1918_v20, 1  ;;  %v1949_v29 = vstv %s4109_s8  ;;  %v1933_v12 = vmul.f32 %v4097_v51, %v1932_v13  ;;  %s4306_s8 = sld [smem:[#allocation7 + $0x31]] }
 0x19e   : > { %v1907_v52 = vsel %vm239_vm0, %v1905_v41, %v1906_v3  ;;  %v1909_v11 = vsel %vm239_vm0, %v1906_v3, %v1908_v43  ;;  %v1934_v22 = vmul.f32 %v4101_v18, %v1932_v13  ;;  %v1935_v58 = vmul.f32 %v4115_v56, %v1932_v13  ;;  %v4186_v43 = vld [vmem:[%s3803_s2 + $0x1f0] sm:$0x3] }
 0x19f   : > { %v1912_v28 = vadd.f32 %v1907_v52, %v1883_v8  ;;  %v1913_v30 = vadd.f32 %v1909_v11, %v1884_v27  ;;  %v1924_v54 = vsel %vm239_vm0, %v1922_v44, %v1923_v45  ;;  %v1926_v55 = vsel %vm239_vm0, %v1923_v45, %v1925_v21 }
 0x1a0   : > { %v1929_v35 = vadd.f32 %v1924_v54, %v1889_v53  ;;  %v1930_v57 = vadd.f32 %v1926_v55, %v1890_v10  ;;  %v1939_v2 = vrot.slane %v1933_v12, 1  ;;  %v1940_v59 = vrot.slane %v1934_v22, 1 }
 0x1a1   : > { %v1950_v60 = vmul.f32 %v4097_v51, %v1949_v29  ;;  %v1951_v61 = vmul.f32 %v4101_v18, %v1949_v29  ;;  %v1952_v62 = vmul.f32 %v4115_v56, %v1949_v29  ;;  %v1942_v63 = vrot.slane %v1935_v58, 1 }
 0x1a2   : > { %v1966_v9 = vstv %s4124_s9  ;;  %v1983_v40 = vstv %s4130_s3  ;;  %v2005_v49 = vstv %s4132_s16  ;;  %v1941_v14 = vsel %vm239_vm0, %v1939_v2, %v1940_v59  ;;  %s4308_s9 = sld [smem:[#allocation7 + $0x4c]]  ;;  %s4328_s3 = sld [smem:[#allocation7 + $0x17]] }
 0x1a3   : > { %v1956_v15 = vrot.slane %v1950_v60, 2  ;;  %v1957_v17 = vrot.slane %v1951_v61, 2  ;;  %v1959_v1 = vrot.slane %v1952_v62, 2  ;;  %v1943_v46 = vsel %vm239_vm0, %v1940_v59, %v1942_v63  ;;  %s4341_s16 = sld [smem:[#allocation7 + $0x32]] }
 0x1a4   : > { %v1946_v23 = vadd.f32 %v1941_v14, %v1895_v33  ;;  %v1967_v24 = vmul.f32 %v4097_v51, %v1966_v9  ;;  %v1968_v36 = vmul.f32 %v4101_v18, %v1966_v9  ;;  %v1947_v42 = vadd.f32 %v1943_v46, %v1896_v16 }
 0x1a5   : > { %v1958_v34 = vsel %vm291_vm1, %v1956_v15, %v1957_v17  ;;  %v1960_v37 = vsel %vm291_vm1, %v1957_v17, %v1959_v1  ;;  %v1969_v8 = vmul.f32 %v4115_v56, %v1966_v9  ;;  %v1984_v10 = vmul.f32 %v4097_v51, %v1983_v40 }
 0x1a6   : > { %v1963_v27 = vadd.f32 %v1958_v34, %v1912_v28  ;;  %v1964_v47 = vadd.f32 %v1960_v37, %v1913_v30  ;;  %v1973_v48 = vrot.slane %v1967_v24, 2  ;;  %v1974_v7 = vrot.slane %v1968_v36, 2 }
 0x1a7   : > { %v1976_v53 = vrot.slane %v1969_v8, 2  ;;  %v1985_v0 = vmul.f32 %v4101_v18, %v1983_v40  ;;  %v1986_v50 = vmul.f32 %v4115_v56, %v1983_v40  ;;  %v2006_v19 = vmul.f32 %v4163_v25, %v2005_v49 }
 0x1a8   : > { %v1975_v39 = vsel %vm291_vm1, %v1973_v48, %v1974_v7  ;;  %v2007_v31 = vmul.f32 %v4166_v26, %v2005_v49  ;;  %v2011_v32 = vstv %s4145_s24  ;;  %v1990_v16 = vrot.slane %v1984_v10, 2  ;;  %s4347_s24 = sld [smem:[#allocation7 + $0x4d]] }
 0x1a9   : > { %v1977_v33 = vsel %vm291_vm1, %v1974_v7, %v1976_v53  ;;  %v1980_v51 = vadd.f32 %v1975_v39, %v1929_v35  ;;  %v1991_v18 = vrot.slane %v1985_v0, 2  ;;  %v1993_v56 = vrot.slane %v1986_v50, 2 }
 0x1aa   : > { %v1981_v38 = vadd.f32 %v1977_v33, %v1930_v57  ;;  %v2008_v20 = vadd.f32 %v2006_v19, %v1963_v27  ;;  %v2009_v41 = vadd.f32 %v2007_v31, %v1964_v47  ;;  %v2012_v44 = vmul.f32 %v4163_v25, %v2011_v32 }
 0x1ab   : > { %v1992_v3 = vsel %vm291_vm1, %v1990_v16, %v1991_v18  ;;  %v2013_v45 = vmul.f32 %v4166_v26, %v2011_v32  ;;  %v2017_v21 = vstv %s4154_s17  ;;  %v1994_v13 = vsel %vm291_vm1, %v1991_v18, %v1993_v56  ;;  %s4349_s17 = sld [smem:[#allocation7 + $0x18]] }
 0x1ac   : > { %v1997_v29 = vadd.f32 %v1992_v3, %v1946_v23  ;;  %v2018_v52 = vmul.f32 %v4163_v25, %v2017_v21  ;;  %v2019_v11 = vmul.f32 %v4166_v26, %v2017_v21  ;;  %v1998_v12 = vadd.f32 %v1994_v13, %v1947_v42 }
 0x1ad   : > { %v2014_v22 = vadd.f32 %v2012_v44, %v1980_v51  ;;  %v2015_v28 = vadd.f32 %v2013_v45, %v1981_v38  ;;  %v2023_v30 = vstv %s4168_s19  ;;  %v2040_v2 = vstv %s4170_s20  ;;  %v4236_v45 = vld [vmem:[%s3803_s2 + $0x360] sm:$0xff]  ;;  %s4364_s19 = sld [smem:[#allocation7 + $0x33]]  ;;  %s4371_s20 = sld [smem:[#allocation7 + $0x4e]] }
 0x1ae   : > { %v2020_v54 = vadd.f32 %v2018_v52, %v1997_v29  ;;  %v2024_v55 = vmul.f32 %v4163_v25, %v2023_v30  ;;  %v2025_v35 = vmul.f32 %v4166_v26, %v2023_v30  ;;  %v2026_v57 = vmul.f32 %v4186_v43, %v2023_v30 }
 0x1af   : > { %v2021_v58 = vadd.f32 %v2019_v11, %v1998_v12  ;;  %v2057_v59 = vstv %s4175_s21  ;;  %v2074_v60 = vstv %s4177_s22  ;;  %v2041_v9 = vmul.f32 %v4163_v25, %v2040_v2  ;;  %v4242_v11 = vld [vmem:[%s3803_s2 + $0x368] sm:$0xff]  ;;  %s4375_s21 = sld [smem:[#allocation7 + $0x19]]  ;;  %s4377_s22 = sld [smem:[#allocation7 + $0x34]] }
 0x1b0   : > { %v2030_v61 = vrot.slane %v2024_v55, 1  ;;  %v2031_v62 = vrot.slane %v2025_v35, 1  ;;  %v2033_v63 = vrot.slane %v2026_v57, 1  ;;  %v2042_v40 = vmul.f32 %v4166_v26, %v2040_v2 }
 0x1b1   : > { %v2043_v49 = vmul.f32 %v4186_v43, %v2040_v2  ;;  %v2058_v14 = vmul.f32 %v4163_v25, %v2057_v59  ;;  %v2059_v15 = vmul.f32 %v4166_v26, %v2057_v59  ;;  %v2047_v46 = vrot.slane %v2041_v9, 1 }
 0x1b2   : > { %v2032_v17 = vsel %vm239_vm0, %v2030_v61, %v2031_v62  ;;  %v2034_v1 = vsel %vm239_vm0, %v2031_v62, %v2033_v63  ;;  %v2060_v23 = vmul.f32 %v4186_v43, %v2057_v59  ;;  %v2048_v42 = vrot.slane %v2042_v40, 1 }
 0x1b3   : > { %v2037_v24 = vadd.f32 %v2032_v17, %v2008_v20  ;;  %v2038_v36 = vadd.f32 %v2034_v1, %v2009_v41  ;;  %v2050_v34 = vrot.slane %v2043_v49, 1  ;;  %v2064_v37 = vrot.slane %v2058_v14, 1 }
 0x1b4   : > { %v2065_v8 = vrot.slane %v2059_v15, 1  ;;  %v2067_v27 = vrot.slane %v2060_v23, 1  ;;  %v2075_v47 = vmul.f32 %v4163_v25, %v2074_v60  ;;  %v2049_v48 = vsel %vm239_vm0, %v2047_v46, %v2048_v42 }
 0x1b5   : > { %v2051_v7 = vsel %vm239_vm0, %v2048_v42, %v2050_v34  ;;  %v2076_v53 = vmul.f32 %v4166_v26, %v2074_v60  ;;  %v2077_v10 = vmul.f32 %v4186_v43, %v2074_v60  ;;  %v2054_v0 = vadd.f32 %v2049_v48, %v2014_v22 }
 0x1b6   : > { %v2055_v50 = vadd.f32 %v2051_v7, %v2015_v28  ;;  %v2066_v39 = vsel %vm239_vm0, %v2064_v37, %v2065_v8  ;;  %v2068_v19 = vsel %vm239_vm0, %v2065_v8, %v2067_v27  ;;  %v2081_v33 = vrot.slane %v2075_v47, 2 }
 0x1b7   : > { %v2071_v31 = vadd.f32 %v2066_v39, %v2020_v54  ;;  %v2072_v32 = vadd.f32 %v2068_v19, %v2021_v58  ;;  %v2082_v51 = vrot.slane %v2076_v53, 2  ;;  %v2084_v16 = vrot.slane %v2077_v10, 2 }
 0x1b8   : > { %v2091_v18 = vstv %s4201_s23  ;;  %v2108_v38 = vstv %s4203_s25  ;;  %v2130_v56 = vstv %s4206_s26  ;;  %v2136_v2 = vstv %s4220_s0  ;;  %s4396_s23 = sld [smem:[#allocation7 + $0x4f]]  ;;  %s4399_s25 = sld [smem:[#allocation7 + $0x1a]] }
 0x1b9   : > { %v2083_v20 = vsel %vm291_vm1, %v2081_v33, %v2082_v51  ;;  %v2092_v41 = vmul.f32 %v4163_v25, %v2091_v18  ;;  %v2093_v3 = vmul.f32 %v4166_v26, %v2091_v18  ;;  %v2094_v44 = vmul.f32 %v4186_v43, %v2091_v18  ;;  %s4420_s26 = sld [smem:[#allocation7 + $0x50]]  ;;  %s2833_s0 = sshll.u32 %s2953_s18, 4 }
 0x1ba   : > { %v2085_v21 = vsel %vm291_vm1, %v2082_v51, %v2084_v16  ;;  %v2088_v13 = vadd.f32 %v2083_v20, %v2037_v24  ;;  %v2109_v29 = vmul.f32 %v4163_v25, %v2108_v38  ;;  %v2110_v52 = vmul.f32 %v4166_v26, %v2108_v38  ;;  %s1369_s18 = sadd.s32 1, %s2953_s18  }
 0x1bb   : > { %v2089_v12 = vadd.f32 %v2085_v21, %v2038_v36  ;;  %v2098_v22 = vrot.slane %v2092_v41, 2  ;;  %v2099_v28 = vrot.slane %v2093_v3, 2  ;;  %v2101_v30 = vrot.slane %v2094_v44, 2  ;;  %p1366_p7 = scmp.ge.s32.totalorder %s1369_s18, 16  }
 0x1bc   : > { %v2111_v54 = vmul.f32 %v4186_v43, %v2108_v38  ;;  %v2115_v55 = vrot.slane %v2109_v29, 2  ;;  %v2116_v35 = vrot.slane %v2110_v52, 2  ;;  %v2131_v25 = vmul.f32 %v4236_v45, %v2130_v56  ;;  %v4256_v43 = vld [vmem:[%s3803_s2 + $0x370] sm:$0x3] }
 0x1bd   : > { %v2100_v26 = vsel %vm291_vm1, %v2098_v22, %v2099_v28  ;;  %v2102_v57 = vsel %vm291_vm1, %v2099_v28, %v2101_v30  ;;  %v2132_v58 = vmul.f32 %v4242_v11, %v2130_v56  ;;  %v2137_v49 = vmul.f32 %v4236_v45, %v2136_v2 }
 0x1be   : > { %v2105_v59 = vadd.f32 %v2100_v26, %v2054_v0  ;;  %v2106_v60 = vadd.f32 %v2102_v57, %v2055_v50  ;;  %v2117_v61 = vsel %vm291_vm1, %v2115_v55, %v2116_v35  ;;  %v2118_v62 = vrot.slane %v2111_v54, 2 }
 0x1bf   : > { %v2122_v63 = vadd.f32 %v2117_v61, %v2071_v31  ;;  %v2133_v9 = vadd.f32 %v2131_v25, %v2088_v13  ;;  %v2134_v40 = vadd.f32 %v2132_v58, %v2089_v12  ;;  %v2138_v15 = vmul.f32 %v4242_v11, %v2136_v2 }
 0x1c0   : > { %v2119_v14 = vsel %vm291_vm1, %v2116_v35, %v2118_v62  ;;  %v2142_v17 = vstv %s4227_s4  ;;  %v2148_v1 = vstv %s4229_s10  ;;  %v2139_v23 = vadd.f32 %v2137_v49, %v2105_v59 }
 0x1c1   : > { %v2123_v46 = vadd.f32 %v2119_v14, %v2072_v32  ;;  %v2143_v24 = vmul.f32 %v4236_v45, %v2142_v17  ;;  %v2144_v36 = vmul.f32 %v4242_v11, %v2142_v17  ;;  %v2140_v42 = vadd.f32 %v2138_v15, %v2106_v60  ;;  %v4315_v17 = vld [vmem:[%s3803_s2 + $0x378] sm:$0xff] }
 0x1c2   : > { %v2149_v34 = vmul.f32 %v4236_v45, %v2148_v1  ;;  %v2150_v37 = vmul.f32 %v4242_v11, %v2148_v1  ;;  %v2151_v8 = vmul.f32 %v4256_v43, %v2148_v1  ;;  %v2165_v48 = vstv %s4244_s11  ;;  %v4318_v1 = vld [vmem:[%s3803_s2 + $0x380] sm:$0xff]  ;;  %s2506_s11 = scalar_lea.vmem %s4462_s5, %s2833_s0 }
 0x1c3   : > { %v2145_v27 = vadd.f32 %v2143_v24, %v2122_v63  ;;  %v2146_v47 = vadd.f32 %v2144_v36, %v2123_v46  ;;  %v2182_v7 = vstv %s4246_s15  ;;  %v2166_v50 = vmul.f32 %v4236_v45, %v2165_v48 }
 0x1c4   : > { %v2155_v53 = vrot.slane %v2149_v34, 1  ;;  %v2156_v10 = vrot.slane %v2150_v37, 1  ;;  %v2158_v0 = vrot.slane %v2151_v8, 1  ;;  %v2167_v39 = vmul.f32 %v4242_v11, %v2165_v48 }
 0x1c5   : > { %v2168_v19 = vmul.f32 %v4256_v43, %v2165_v48  ;;  %v2183_v31 = vmul.f32 %v4236_v45, %v2182_v7  ;;  %v2184_v32 = vmul.f32 %v4242_v11, %v2182_v7  ;;  %v2172_v16 = vrot.slane %v2166_v50, 1 }
 0x1c6   : > { %v2157_v33 = vsel %vm239_vm0, %v2155_v53, %v2156_v10  ;;  %v2159_v51 = vsel %vm239_vm0, %v2156_v10, %v2158_v0  ;;  %v2185_v18 = vmul.f32 %v4256_v43, %v2182_v7  ;;  %v2173_v20 = vrot.slane %v2167_v39, 1 }
 0x1c7   : > { %v2162_v38 = vadd.f32 %v2157_v33, %v2133_v9  ;;  %v2163_v56 = vadd.f32 %v2159_v51, %v2134_v40  ;;  %v2175_v41 = vrot.slane %v2168_v19, 1  ;;  %v2189_v3 = vrot.slane %v2183_v31, 1  ;;  %v4331_v31 = vld [vmem:[%s3803_s2 + $0x388] sm:$0x3] }
 0x1c8   : > { %v2190_v44 = vrot.slane %v2184_v32, 1  ;;  %v2192_v21 = vrot.slane %v2185_v18, 1  ;;  %v2199_v13 = vstv %s4263_s1  ;;  %v2174_v29 = vsel %vm239_vm0, %v2172_v16, %v2173_v20 }
 0x1c9   : > { %v2176_v52 = vsel %vm239_vm0, %v2173_v20, %v2175_v41  ;;  %v2200_v12 = vmul.f32 %v4236_v45, %v2199_v13  ;;  %v2201_v22 = vmul.f32 %v4242_v11, %v2199_v13  ;;  %v2179_v28 = vadd.f32 %v2174_v29, %v2139_v23 }
 0x1ca   : > { %v2180_v30 = vadd.f32 %v2176_v52, %v2140_v42  ;;  %v2191_v54 = vsel %vm239_vm0, %v2189_v3, %v2190_v44  ;;  %v2193_v55 = vsel %vm239_vm0, %v2190_v44, %v2192_v21  ;;  %v2202_v26 = vmul.f32 %v4256_v43, %v2199_v13 }
 0x1cb   : > { %v2196_v35 = vadd.f32 %v2191_v54, %v2145_v27  ;;  %v2197_v25 = vadd.f32 %v2193_v55, %v2146_v47  ;;  %v2206_v57 = vrot.slane %v2200_v12, 2  ;;  %v2207_v58 = vrot.slane %v2201_v22, 2 }
 0x1cc   : > { %v2216_v2 = vstv %s4272_s27  ;;  %v2233_v59 = vstv %s4274_s28  ;;  %v2255_v60 = vstv %s4277_s29  ;;  %v2209_v61 = vrot.slane %v2202_v26, 2 }
 0x1cd   : > { %v2217_v62 = vmul.f32 %v4236_v45, %v2216_v2  ;;  %v2218_v63 = vmul.f32 %v4242_v11, %v2216_v2  ;;  %v2219_v9 = vmul.f32 %v4256_v43, %v2216_v2  ;;  %v2208_v40 = vsel %vm291_vm1, %v2206_v57, %v2207_v58 }
 0x1ce   : > { %v2234_v49 = vmul.f32 %v4236_v45, %v2233_v59  ;;  %v2235_v14 = vmul.f32 %v4242_v11, %v2233_v59  ;;  %v2236_v15 = vmul.f32 %v4256_v43, %v2233_v59  ;;  %v2210_v46 = vsel %vm291_vm1, %v2207_v58, %v2209_v61 }
 0x1cf   : > { %v2213_v23 = vadd.f32 %v2208_v40, %v2162_v38  ;;  %v2223_v24 = vrot.slane %v2217_v62, 2  ;;  %v2224_v36 = vrot.slane %v2218_v63, 2  ;;  %v2214_v42 = vadd.f32 %v2210_v46, %v2163_v56 }
 0x1d0   : > { %v2226_v34 = vrot.slane %v2219_v9, 2  ;;  %v2240_v37 = vrot.slane %v2234_v49, 2  ;;  %v2241_v8 = vrot.slane %v2235_v14, 2  ;;  %v2243_v11 = vrot.slane %v2236_v15, 2 }
 0x1d1   : > { %v2225_v45 = vsel %vm291_vm1, %v2223_v24, %v2224_v36  ;;  %v2256_v43 = vmul.f32 %v4315_v17, %v2255_v60  ;;  %v2257_v27 = vmul.f32 %v4318_v1, %v2255_v60  ;;  %v2261_v53 = vstv %s4293_s30 }
 0x1d2   : > { %v2227_v47 = vsel %vm291_vm1, %v2224_v36, %v2226_v34  ;;  %v2230_v48 = vadd.f32 %v2225_v45, %v2179_v28  ;;  %v2242_v7 = vsel %vm291_vm1, %v2240_v37, %v2241_v8  ;;  %v2244_v0 = vsel %vm291_vm1, %v2241_v8, %v2243_v11 }
 0x1d3   : > { %v2231_v10 = vadd.f32 %v2227_v47, %v2180_v30  ;;  %v2247_v50 = vadd.f32 %v2242_v7, %v2196_v35  ;;  %v2258_v39 = vadd.f32 %v2256_v43, %v2213_v23  ;;  %v2248_v19 = vadd.f32 %v2244_v0, %v2197_v25 }
 0x1d4   : > { %v2259_v32 = vadd.f32 %v2257_v27, %v2214_v42  ;;  %v2262_v33 = vmul.f32 %v4315_v17, %v2261_v53  ;;  %v2263_v51 = vmul.f32 %v4318_v1, %v2261_v53  ;;  %v2267_v16 = vstv %s4299_s6 }
 0x1d5   : > { %v2273_v18 = vstv %s4301_s7  ;;  %v2290_v38 = vstv %s4306_s8  ;;  %v2307_v56 = vstv %s4308_s9  ;;  %v2268_v3 = vmul.f32 %v4315_v17, %v2267_v16 }
 0x1d6   : > { %v2264_v20 = vadd.f32 %v2262_v33, %v2230_v48  ;;  %v2265_v41 = vadd.f32 %v2263_v51, %v2231_v10  ;;  %v2269_v44 = vmul.f32 %v4318_v1, %v2267_v16  ;;  %v2274_v21 = vmul.f32 %v4315_v17, %v2273_v18  ;;  %v4384_v33 = vld [vmem:[%s3803_s2 + $0x390] sm:$0xff]  ;;  %v4387_v51 = vld [vmem:[%s3803_s2 + $0x398] sm:$0xff] }
 0x1d7   : > { %v2275_v13 = vmul.f32 %v4318_v1, %v2273_v18  ;;  %v2276_v29 = vmul.f32 %v4331_v31, %v2273_v18  ;;  %v2291_v52 = vmul.f32 %v4315_v17, %v2290_v38  ;;  %v2270_v12 = vadd.f32 %v2268_v3, %v2247_v50 }
 0x1d8   : > { %v2271_v22 = vadd.f32 %v2269_v44, %v2248_v19  ;;  %v2292_v28 = vmul.f32 %v4318_v1, %v2290_v38  ;;  %v2293_v30 = vmul.f32 %v4331_v31, %v2290_v38  ;;  %v2280_v54 = vrot.slane %v2274_v21, 1 }
 0x1d9   : > { %v2281_v55 = vrot.slane %v2275_v13, 1  ;;  %v2283_v35 = vrot.slane %v2276_v29, 1  ;;  %v2297_v25 = vrot.slane %v2291_v52, 1  ;;  %v2308_v58 = vmul.f32 %v4315_v17, %v2307_v56 }
 0x1da   : > { %v2298_v26 = vrot.slane %v2292_v28, 1  ;;  %v2300_v57 = vrot.slane %v2293_v30, 1  ;;  %v2309_v2 = vmul.f32 %v4318_v1, %v2307_v56  ;;  %v2310_v61 = vmul.f32 %v4331_v31, %v2307_v56 }
 0x1db   : > { %v2282_v59 = vsel %vm239_vm0, %v2280_v54, %v2281_v55  ;;  %v2284_v60 = vsel %vm239_vm0, %v2281_v55, %v2283_v35  ;;  %v2324_v62 = vstv %s4328_s3  ;;  %v2314_v46 = vrot.slane %v2308_v58, 1  ;;  %v4403_v54 = vld [vmem:[%s3803_s2 + $0x3a0] sm:$0x3]  ;;  %s4414_s2 = sld [smem:[#allocation7 + $0x35]] }
 0x1dc   : > { %v2287_v63 = vadd.f32 %v2282_v59, %v2258_v39  ;;  %v2288_v9 = vadd.f32 %v2284_v60, %v2259_v32  ;;  %v2299_v40 = vsel %vm239_vm0, %v2297_v25, %v2298_v26  ;;  %v2301_v49 = vsel %vm239_vm0, %v2298_v26, %v2300_v57 }
 0x1dd   : > { %v2304_v14 = vadd.f32 %v2299_v40, %v2264_v20  ;;  %v2305_v15 = vadd.f32 %v2301_v49, %v2265_v41  ;;  %v2315_v23 = vrot.slane %v2309_v2, 1  ;;  %v2317_v24 = vrot.slane %v2310_v61, 1 }
 0x1de   : > { %v2325_v36 = vmul.f32 %v4315_v17, %v2324_v62  ;;  %v2326_v42 = vmul.f32 %v4318_v1, %v2324_v62  ;;  %v2327_v34 = vmul.f32 %v4331_v31, %v2324_v62  ;;  %v2341_v8 = vstv %s4341_s16 }
 0x1df   : > { %v2316_v37 = vsel %vm239_vm0, %v2314_v46, %v2315_v23  ;;  %v2358_v45 = vstv %s4347_s24  ;;  %v2380_v11 = vstv %s4349_s17  ;;  %v2318_v43 = vsel %vm239_vm0, %v2315_v23, %v2317_v24 }
 0x1e0   : > { %v2321_v27 = vadd.f32 %v2316_v37, %v2270_v12  ;;  %v2331_v47 = vrot.slane %v2325_v36, 2  ;;  %v2332_v48 = vrot.slane %v2326_v42, 2  ;;  %v2322_v7 = vadd.f32 %v2318_v43, %v2271_v22 }
 0x1e1   : > { %v2334_v53 = vrot.slane %v2327_v34, 2  ;;  %v2342_v10 = vmul.f32 %v4315_v17, %v2341_v8  ;;  %v2343_v0 = vmul.f32 %v4318_v1, %v2341_v8  ;;  %v2344_v39 = vmul.f32 %v4331_v31, %v2341_v8 }
 0x1e2   : > { %v2333_v50 = vsel %vm291_vm1, %v2331_v47, %v2332_v48  ;;  %v2359_v19 = vmul.f32 %v4315_v17, %v2358_v45  ;;  %v2360_v32 = vmul.f32 %v4318_v1, %v2358_v45  ;;  %v2361_v3 = vmul.f32 %v4331_v31, %v2358_v45 }
 0x1e3   : > { %v2335_v16 = vsel %vm291_vm1, %v2332_v48, %v2334_v53  ;;  %v2338_v18 = vadd.f32 %v2333_v50, %v2287_v63  ;;  %v2348_v38 = vrot.slane %v2342_v10, 2  ;;  %v2349_v56 = vrot.slane %v2343_v0, 2 }
 0x1e4   : > { %v2339_v20 = vadd.f32 %v2335_v16, %v2288_v9  ;;  %v2351_v41 = vrot.slane %v2344_v39, 2  ;;  %v2365_v44 = vrot.slane %v2359_v19, 2  ;;  %v2366_v21 = vrot.slane %v2360_v32, 2 }
 0x1e5   : > { %v2350_v17 = vsel %vm291_vm1, %v2348_v38, %v2349_v56  ;;  %v2381_v1 = vmul.f32 %v4384_v33, %v2380_v11  ;;  %v2382_v13 = vmul.f32 %v4387_v51, %v2380_v11  ;;  %v2368_v12 = vrot.slane %v2361_v3, 2 }
 0x1e6   : > { %v2352_v29 = vsel %vm291_vm1, %v2349_v56, %v2351_v41  ;;  %v2355_v52 = vadd.f32 %v2350_v17, %v2304_v14  ;;  %v2386_v22 = vstv %s4364_s19  ;;  %v2367_v31 = vsel %vm291_vm1, %v2365_v44, %v2366_v21 }
 0x1e7   : > { %v2356_v28 = vadd.f32 %v2352_v29, %v2305_v15  ;;  %v2369_v30 = vsel %vm291_vm1, %v2366_v21, %v2368_v12  ;;  %v2383_v55 = vadd.f32 %v2381_v1, %v2338_v18  ;;  %v2387_v35 = vmul.f32 %v4384_v33, %v2386_v22 }
 0x1e8   : > { %v2384_v25 = vadd.f32 %v2382_v13, %v2339_v20  ;;  %v2392_v26 = vstv %s4371_s20  ;;  %v2398_v57 = vstv %s4375_s21  ;;  %v2415_v58 = vstv %s4377_s22 }
 0x1e9   : > { %v2372_v2 = vadd.f32 %v2367_v31, %v2321_v27  ;;  %v2373_v59 = vadd.f32 %v2369_v30, %v2322_v7  ;;  %v2388_v60 = vmul.f32 %v4387_v51, %v2386_v22  ;;  %v2389_v61 = vadd.f32 %v2387_v35, %v2355_v52 }
 0x1ea   : > { %v2399_v62 = vmul.f32 %v4384_v33, %v2398_v57  ;;  %v2400_v63 = vmul.f32 %v4387_v51, %v2398_v57  ;;  %v2401_v9 = vmul.f32 %v4403_v54, %v2398_v57  ;;  %v2416_v40 = vmul.f32 %v4384_v33, %v2415_v58 }
 0x1eb   : > { %v2393_v49 = vmul.f32 %v4384_v33, %v2392_v26  ;;  %v2394_v14 = vmul.f32 %v4387_v51, %v2392_v26  ;;  %v2417_v15 = vmul.f32 %v4387_v51, %v2415_v58  ;;  %v2418_v46 = vmul.f32 %v4403_v54, %v2415_v58 }
 0x1ec   : > { %v2405_v23 = vrot.slane %v2399_v62, 1  ;;  %v2406_v24 = vrot.slane %v2400_v63, 1  ;;  %v2408_v36 = vrot.slane %v2401_v9, 1  ;;  %v2422_v42 = vrot.slane %v2416_v40, 1 }
 0x1ed   : > { %v2390_v34 = vadd.f32 %v2388_v60, %v2356_v28  ;;  %v2423_v37 = vrot.slane %v2417_v15, 1  ;;  %v2425_v8 = vrot.slane %v2418_v46, 1  ;;  %v2432_v45 = vstv %s4396_s23 }
 0x1ee   : > { %v2407_v11 = vsel %vm239_vm0, %v2405_v23, %v2406_v24  ;;  %v2433_v43 = vmul.f32 %v4384_v33, %v2432_v45  ;;  %v2434_v27 = vmul.f32 %v4387_v51, %v2432_v45  ;;  %v2449_v47 = vstv %s4399_s25 }
 0x1ef   : > { %v2395_v48 = vadd.f32 %v2393_v49, %v2372_v2  ;;  %v2396_v7 = vadd.f32 %v2394_v14, %v2373_v59  ;;  %v2409_v53 = vsel %vm239_vm0, %v2406_v24, %v2408_v36  ;;  %v2424_v10 = vsel %vm239_vm0, %v2422_v42, %v2423_v37 }
 0x1f0   : > { %v2412_v0 = vadd.f32 %v2407_v11, %v2383_v55  ;;  %v2426_v50 = vsel %vm239_vm0, %v2423_v37, %v2425_v8  ;;  %v2435_v39 = vmul.f32 %v4403_v54, %v2432_v45  ;;  %v2439_v19 = vrot.slane %v2433_v43, 1 }
 0x1f1   : > { %v2440_v32 = vrot.slane %v2434_v27, 1  ;;  %v2450_v16 = vmul.f32 %v4384_v33, %v2449_v47  ;;  %v2451_v18 = vmul.f32 %v4387_v51, %v2449_v47  ;;  %v2452_v38 = vmul.f32 %v4403_v54, %v2449_v47 }
 0x1f2   : > { %v2413_v56 = vadd.f32 %v2409_v53, %v2384_v25  ;;  %v2429_v20 = vadd.f32 %v2424_v10, %v2389_v61  ;;  %v2442_v41 = vrot.slane %v2435_v39, 1  ;;  %v2466_v3 = vstv %s4414_s2 }
 0x1f3   : > { %v2430_v44 = vadd.f32 %v2426_v50, %v2390_v34  ;;  %v2456_v17 = vrot.slane %v2450_v16, 2  ;;  %v2457_v21 = vrot.slane %v2451_v18, 2  ;;  %v2459_v1 = vrot.slane %v2452_v38, 2 }
 0x1f4   : > { %v2441_v13 = vsel %vm239_vm0, %v2439_v19, %v2440_v32  ;;  %v2467_v29 = vmul.f32 %v4384_v33, %v2466_v3  ;;  %v2468_v52 = vmul.f32 %v4387_v51, %v2466_v3  ;;  %v2483_v12 = vstv %s4420_s26 }
 0x1f5   : > { %v2443_v22 = vsel %vm239_vm0, %v2440_v32, %v2442_v41  ;;  %v2458_v31 = vsel %vm291_vm1, %v2456_v17, %v2457_v21  ;;  %v2460_v28 = vsel %vm291_vm1, %v2457_v21, %v2459_v1  ;;  %v2469_v30 = vmul.f32 %v4403_v54, %v2466_v3 }
 0x1f6   : > { %v2463_v55 = vadd.f32 %v2458_v31, %v2412_v0  ;;  %v2464_v35 = vadd.f32 %v2460_v28, %v2413_v56  ;;  %v2473_v25 = vrot.slane %v2467_v29, 2  ;;  %v2474_v26 = vrot.slane %v2468_v52, 2 }
 0x1f7   : > { %v2476_v57 = vrot.slane %v2469_v30, 2  ;;  %v2484_v58 = vmul.f32 %v4384_v33, %v2483_v12  ;;  %v2485_v2 = vmul.f32 %v4387_v51, %v2483_v12  ;;  %v2486_v59 = vmul.f32 %v4403_v54, %v2483_v12 }
 0x1f8   : > { %v2446_v60 = vadd.f32 %v2441_v13, %v2395_v48  ;;  %v2447_v61 = vadd.f32 %v2443_v22, %v2396_v7  ;;  %v2475_v62 = vsel %vm291_vm1, %v2473_v25, %v2474_v26  ;;  %2873 = vtanh.f32 %v2463_v55 }
 0x1f9   : > { %v2477_v63 = vsel %vm291_vm1, %v2474_v26, %v2476_v57  ;;  %v2480_v9 = vadd.f32 %v2475_v62, %v2429_v20  ;;  %v2490_v40 = vrot.slane %v2484_v58, 2  ;;  %v2491_v49 = vrot.slane %v2485_v2, 2 }
 0x1fa   : > { %v2481_v14 = vadd.f32 %v2477_v63, %v2430_v44  ;;  %v2493_v15 = vrot.slane %v2486_v59, 2  ;;  %2875 = vtanh.f32 %v2464_v35 }
 0x1fb   : > { %v2492_v33 = vsel %vm291_vm1, %v2490_v40, %v2491_v49  ;;  %2877 = vtanh.f32 %v2480_v9 }
 0x1fc   : > { %v2494_v51 = vsel %vm291_vm1, %v2491_v49, %v2493_v15  ;;  %v2497_v54 = vadd.f32 %v2492_v33, %v2446_v60  ;;  %2879 = vtanh.f32 %v2481_v14 }
 0x1fd   : > { %v2498_v46 = vadd.f32 %v2494_v51, %v2447_v61 }
 0x1fe   : > { %2881 = vtanh.f32 %v2497_v54 }
 0x1ff   : > { %2883 = vtanh.f32 %v2498_v46 }
 0x202   : > { %v2874_v23 = vpop.eup %2873 }
 0x203   : > { %v2501_v24 = vmul.f32 0.5, %v2874_v23 }
 0x204   : > { %v2876_v36 = vpop.eup %2875 }
 0x205   : > { %v2878_v42 = vpop.eup %2877  ;;  %v2502_v34 = vmul.f32 0.5, %v2876_v36  ;;  %v2503_v37 = vadd.f32 0.5, %v2501_v24 }
 0x206   : > { %v2880_v8 = vpop.eup %2879  ;;  %v2511_v45 = vmul.f32 0.5, %v2878_v42 }
 0x207   : > { %v2504_v11 = vadd.f32 0.5, %v2502_v34  ;;  %2507 = vst [vmem:[%s2506_s11] sm:$0xff] %v2503_v37  ;;  %v2512_v43 = vmul.f32 0.5, %v2880_v8 }
 0x208   : > { %v2882_v27 = vpop.eup %2881  ;;  %v2513_v47 = vadd.f32 0.5, %v2511_v45  ;;  %1368 = sbr.rel (!%p1366_p7) target bundleno = 318 (0x13e), region = 113 }
 0x209   : > { %v2884_v48 = vpop.eup %2883  ;;  %2508 = vst [vmem:[%s2506_s11 + $0x8] sm:$0xff] %v2504_v11  ;;  %v2514_v7 = vadd.f32 0.5, %v2512_v43  ;;  %v2521_v53 = vmul.f32 0.5, %v2882_v27 }
 0x20a   : > { %2835 = vst [vmem:[%s2506_s11 + $0x100] sm:$0xff] %v2513_v47  ;;  %v2522_v10 = vmul.f32 0.5, %v2884_v48 }
 0x20b   : > { %2836 = vst [vmem:[%s2506_s11 + $0x108] sm:$0xff] %v2514_v7  ;;  %v2523_v0 = vadd.f32 0.5, %v2521_v53 }
 0x20c   : > { %v2524_v50 = vadd.f32 0.5, %v2522_v10 }
 0x20d   : > { %2838 = vst [vmem:[%s2506_s11 + $0x200] sm:$0xff] %v2523_v0 }
 0x20e   : > { %2839 = vst [vmem:[%s2506_s11 + $0x208] sm:$0xff] %v2524_v50 }
 0x20f   :  { %2533 = vsyncpa [#allocation4], 1 }
 0x210   :  { %2534 = vsyncpa [#allocation6], 1 }
 0x211   :  { %2535 = vsyncpa [#allocation9], 1 }

</bundles_post_ra>
